<compile_context>
chip_gen: v6e
topology: v6e:2x2x1
jax: 0.10.0
libtpu: 0.0.40
codegen_flags: <defaults>
</compile_context>

<pallas_src>
import functools
import numpy as np
import jax
import jax.numpy as jnp
from jax.experimental import pallas as pl
from jax.experimental.pallas import tpu as pltpu

CHANNELS = 320
LRELU_SLOPE = 0.1


# ----------------------------------------------------------------------------
# In-kernel helpers.
# ----------------------------------------------------------------------------
def _lrelu(x, slope):
    return jnp.where(x >= 0, x, x * slope)


def _im2col_3x3(x):
    """x: (N, H, W, Cin) -> (N, H, W, 9*Cin) 'same'-padded 3x3 patches.

    Tap order is (kx, ky, ci) and matches pack_conv3x3.  Row (ky) shifts are
    free non-minor slices; only the two column (kx) shifts touch the sublane
    dim.  Zero padding is built in-kernel (no jnp.pad HBM round trip).
    """
    N, H, W, cin = x.shape
    dt = x.dtype
    zrow = jnp.zeros((N, 1, W, cin), dt)
    zcol = jnp.zeros((N, H, 1, cin), dt)
    x_l = jnp.concatenate([zcol, x[:, :, :W - 1, :]], axis=2)   # column x-1
    x_r = jnp.concatenate([x[:, :, 1:, :], zcol], axis=2)       # column x+1
    pieces = []
    for xs in (x_l, x, x_r):                                    # kx = 0, 1, 2
        padded = jnp.concatenate([zrow, xs, zrow], axis=1)      # (N, H+2, W, C)
        for ky in range(3):
            pieces.append(padded[:, ky:ky + H])
    return jnp.concatenate(pieces, axis=-1)


def _matmul(lhs, w, preferred=jnp.float32):
    """(..., K) x (K, Cout) -> (..., Cout) as a single 2-D MXU matmul.

    The leading-dim merge reshape is layout-free (W is a multiple of 8)."""
    K = lhs.shape[-1]
    out = jax.lax.dot_general(
        lhs.reshape(-1, K), w,
        dimension_numbers=(((1,), (0,)), ((), ())),
        preferred_element_type=preferred)
    return out.reshape(lhs.shape[:-1] + (w.shape[-1],))


# ----------------------------------------------------------------------------
# Standalone conv (only used for the two tiny post-pixel-shuffle 3x3 convs).
# ----------------------------------------------------------------------------
def _make_conv_kernel(is3x3, slope, out_dtype):
    def kernel(x_ref, w_ref, o_ref):
        x = x_ref[...]                                   # (1, H, W, Cin) bf16
        lhs = _im2col_3x3(x) if is3x3 else x
        acc = _matmul(lhs, w_ref[...])
        if slope is not None:
            acc = _lrelu(acc, slope)
        o_ref[...] = acc.astype(out_dtype)
    return kernel


def conv2d(x, w, slope=None, out_dtype=jnp.bfloat16):
    """x: (N,H,W,Cin).  w: (9*Cin,Cout) packed 3x3 'same' conv or (Cin,Cout) 1x1."""
    x = x.astype(jnp.bfloat16)
    N, H, W, Cin = x.shape
    Cout = w.shape[-1]
    is3x3 = (w.shape[0] != Cin)
    kernel = _make_conv_kernel(is3x3, slope, out_dtype)
    return pl.pallas_call(
        kernel,
        out_shape=jax.ShapeDtypeStruct((N, H, W, Cout), out_dtype),
        grid=(N,),
        in_specs=[
            pl.BlockSpec((1, H, W, Cin), lambda n: (n, 0, 0, 0)),
            pl.BlockSpec(w.shape, lambda n: (0,) * w.ndim),
        ],
        out_specs=pl.BlockSpec((1, H, W, Cout), lambda n: (n, 0, 0, 0)),
        compiler_params=pltpu.CompilerParams(
            dimension_semantics=("parallel",)),
    )(x, w)


# ----------------------------------------------------------------------------
# Fused chain: input conv + B cascaded ResB blocks + output conv, one call.
# ----------------------------------------------------------------------------
def _make_chain_kernel(post_is_3x3, post_slope, post_dtype):
    C = CHANNELS
    Ch = C // 2

    def kernel(x_ref, win_ref, w1_ref, w2_ref, p_ref, wout_ref, o_ref, feat_ref):
        blk = pl.program_id(0)

        # First grid step: fused input conv (small Cin -> 320) + LeakyReLU
        # seeds the VMEM-resident feature.
        @pl.when(blk == 0)
        def _():
            acc = _matmul(_im2col_3x3(x_ref[...]), win_ref[...])
            feat_ref[...] = _lrelu(acc, LRELU_SLOPE).astype(jnp.bfloat16)

        feat = feat_ref[...]                # (N, H, W, 320) bf16, VMEM resident
        a = feat[..., :Ch]
        bb = feat[..., Ch:]

        # ResB: conv1 + LeakyReLU, conv2 + residual (f32 accumulation / add).
        h = _lrelu(_matmul(_im2col_3x3(bb), w1_ref[0]),
                   LRELU_SLOPE).astype(jnp.bfloat16)
        h = _matmul(_im2col_3x3(h), w2_ref[0])
        y = (h + bb.astype(jnp.float32)).astype(jnp.bfloat16)

        # channel_shuffle(concat([a, y]), 2) as two exact 0/1 permutation
        # matmuls with bf16 accumulation (each output lane gets exactly one
        # non-zero term, so bf16 is exact) -- no f32 temp / add / cast.
        z = _matmul(a, p_ref[0], preferred=jnp.bfloat16)
        z = z + _matmul(y, p_ref[1], preferred=jnp.bfloat16)
        feat_ref[...] = z

        # Last grid step: fused output conv (3x3 320->Cout or 1x1 320->Cout).
        @pl.when(blk == pl.num_programs(0) - 1)
        def _():
            lhs = _im2col_3x3(z) if post_is_3x3 else z
            acc = _matmul(lhs, wout_ref[...])
            if post_slope is not None:
                acc = _lrelu(acc, post_slope)
            o_ref[...] = acc.astype(post_dtype)

    return kernel


def fused_chain(x, w_in, w1s, w2s, pmat, w_out, *, nblocks,
                post_slope=None, post_out_dtype=jnp.bfloat16):
    """x: (N,H,W,Cin); w_in: (9*Cin,320); w1s/w2s: (>=nblocks, 9*160, 160);
    pmat: (2,160,320); w_out: (9*320,Cout) 3x3 or (320,Cout) 1x1.

    grid = (nblocks,) only: the full batch is processed per step, so each ResB
    block's weights are DMA'd once (not once per batch element) and the
    320-channel feature stays in a VMEM scratch for the entire chain."""
    x = x.astype(jnp.bfloat16)
    N, H, W, Cin = x.shape
    C = CHANNELS
    Ch = C // 2
    K_in = w_in.shape[0]
    K_out, Cout = w_out.shape
    post_is_3x3 = (K_out == 9 * C)
    kernel = _make_chain_kernel(post_is_3x3, post_slope, post_out_dtype)
    return pl.pallas_call(
        kernel,
        out_shape=jax.ShapeDtypeStruct((N, H, W, Cout), post_out_dtype),
        grid=(nblocks,),
        in_specs=[
            pl.BlockSpec((N, H, W, Cin), lambda b: (0, 0, 0, 0)),
            pl.BlockSpec((K_in, C), lambda b: (0, 0)),
            pl.BlockSpec((1, 9 * Ch, Ch), lambda b: (b, 0, 0)),
            pl.BlockSpec((1, 9 * Ch, Ch), lambda b: (b, 0, 0)),
            pl.BlockSpec((2, Ch, C), lambda b: (0, 0, 0)),
            pl.BlockSpec((K_out, Cout), lambda b: (0, 0)),
        ],
        out_specs=pl.BlockSpec((N, H, W, Cout), lambda b: (0, 0, 0, 0)),
        scratch_shapes=[pltpu.VMEM((N, H, W, C), jnp.bfloat16)],
        compiler_params=pltpu.CompilerParams(
            dimension_semantics=("arbitrary",)),
        # TODO(synk): at production resolutions add an H-tiled "parallel" axis
        # (halo'd) and an explicit vmem_limit_bytes per chip generation.
    )(x, w_in, w1s, w2s, pmat, w_out)


# ----------------------------------------------------------------------------
# Small glue ops (resampling / permutes) in plain JAX.
# ----------------------------------------------------------------------------
def avgpool2(x):
    N, H, W, C = x.shape
    return x.reshape(N, H // 2, 2, W // 2, 2, C).mean(axis=(2, 4))


def pixel_shuffle(x, r):
    N, H, W, C = x.shape
    c = C // (r * r)
    x = x.reshape(N, H, W, c, r, r)
    x = jnp.transpose(x, (0, 1, 4, 2, 5, 3))
    return x.reshape(N, H * r, W * r, c)


def bilinear_up(x, factor):
    N, H, W, C = x.shape
    return jax.image.resize(x, (N, H * factor, W * factor, C), method="bilinear")


# TODO(synk): grid_sample-style warp is a data-dependent gather, kept in plain
# JAX (single fused take_along_axis for the 4 corners) rather than a Pallas
# manual-DMA gather kernel; pixel-space offsets with border clamp are used
# instead of the original normalized-grid (*31/(w-1)) convention.
def flow_warp(img, flow):
    """img: (N,H,W,C); flow: (N,H,W,2), last dim = (dx, dy) in pixels; border pad."""
    N, H, W, C = img.shape
    ys = jnp.arange(H, dtype=img.dtype)[None, :, None]
    xs = jnp.arange(W, dtype=img.dtype)[None, None, :]
    px = jnp.clip(xs + flow[..., 0], 0.0, W - 1.0)
    py = jnp.clip(ys + flow[..., 1], 0.0, H - 1.0)
    x0 = jnp.floor(px)
    y0 = jnp.floor(py)
    x1 = jnp.minimum(x0 + 1.0, W - 1.0)
    y1 = jnp.minimum(y0 + 1.0, H - 1.0)
    wx = (px - x0)[..., None]
    wy = (py - y0)[..., None]
    x0i, x1i, y0i, y1i = (v.astype(jnp.int32) for v in (x0, x1, y0, y1))
    flat = img.reshape(N, H * W, C)
    idx = jnp.stack([y0i * W + x0i, y0i * W + x1i,
                     y1i * W + x0i, y1i * W + x1i], axis=1)      # (N, 4, H, W)
    g = jnp.take_along_axis(flat, idx.reshape(N, 4 * H * W, 1), axis=1)
    g = g.reshape(N, 4, H, W, C)
    return (g[:, 0] * (1 - wx) * (1 - wy) + g[:, 1] * wx * (1 - wy)
            + g[:, 2] * (1 - wx) * wy + g[:, 3] * wx * wy)


# ----------------------------------------------------------------------------
# Network blocks.
# ----------------------------------------------------------------------------
def ofrnet(p, pmat, x, scale):
    """x: (B, h, w, 2) f32 -> flows (B,h/2,w/2,2), (B,h,w,2), (B,h*s,w*s,2) f32."""
    B, h, w, _ = x.shape
    rnn_l12 = functools.partial(
        fused_chain, w_in=p["rnn1_conv"], w1s=p["w1"], w2s=p["w2"], pmat=pmat,
        w_out=p["rnn2_conv"], nblocks=3, post_slope=None,
        post_out_dtype=jnp.float32)
    # Level 1
    x_L1 = avgpool2(x)
    input_L1 = jnp.concatenate(
        [x_L1, jnp.zeros((B, h // 2, w // 2, 2), x.dtype)], axis=-1)
    flow_L1 = rnn_l12(input_L1)
    flow_L1_up = bilinear_up(flow_L1, 2) * 2.0
    # Level 2
    x_L2 = flow_warp(x[..., 0:1], flow_L1_up)
    input_L2 = jnp.concatenate([x_L2, x[..., 1:2], flow_L1_up], axis=-1)
    flow_L2 = rnn_l12(input_L2) + flow_L1_up
    # Level 3 (HR): rnn1 chain (blocks 0-2) + SR chain (blocks 3-5) + 1x1 conv,
    # all one pallas_call.  LeakyReLU commutes with PixelShuffle so it is fused
    # into the 1x1 conv.
    x_L3 = flow_warp(x[..., 0:1], flow_L2)
    input_L3 = jnp.concatenate([x_L3, x[..., 1:2], flow_L2], axis=-1)
    y = fused_chain(input_L3, p["rnn1_conv"], p["w1"], p["w2"], pmat,
                    p["sr_conv1"], nblocks=6,
                    post_slope=LRELU_SLOPE, post_out_dtype=jnp.bfloat16)
    y = pixel_shuffle(y, scale)
    flow_L3 = conv2d(y, p["sr_conv2"], slope=None, out_dtype=jnp.float32) \
        + bilinear_up(flow_L2, scale) * float(scale)
    return flow_L1, flow_L2, flow_L3


def srnet(p, pmat, x, scale):
    y = fused_chain(x, p["conv0"], p["w1"], p["w2"], pmat, p["conv1"],
                    nblocks=8, post_slope=LRELU_SLOPE,
                    post_out_dtype=jnp.bfloat16)
    y = pixel_shuffle(y, scale)
    return conv2d(y, p["conv2"], slope=None, out_dtype=jnp.float32)


# ----------------------------------------------------------------------------
# SOFVSR forward (matches the PyTorch module's forward semantics).
# ----------------------------------------------------------------------------
def sofvsr_forward(params, x, scale=2, is_training=True):
    b, n_frames, c, h, w = x.shape
    idx_center = (n_frames - 1) // 2
    pmat = params["shuffle"]
    frames = [jnp.transpose(x[:, i], (0, 2, 3, 1)) for i in range(n_frames)]  # NHWC

    pairs = [jnp.concatenate([frames[i], frames[idx_center]], axis=-1)
             for i in range(n_frames) if i != idx_center]
    ofr_in = jnp.concatenate(pairs, axis=0)                     # ((n-1)*b, h, w, 2c)

    f1, f2, f3 = ofrnet(params["OFR"], pmat, ofr_in, scale)
    f1 = f1.reshape(-1, b, h // 2, w // 2, 2)
    f2 = f2.reshape(-1, b, h, w, 2)
    f3 = f3.reshape(-1, b, h * scale, w * scale, 2)

    draft_cube = [frames[idx_center]]
    flow_L1, flow_L2, flow_L3 = [], [], []
    for i in range(n_frames):
        if i == idx_center:
            flow_L1.append([]); flow_L2.append([]); flow_L3.append([])
        else:
            idx = i if i < idx_center else i - 1
            flow_L1.append(jnp.transpose(f1[idx], (0, 3, 1, 2)))
            flow_L2.append(jnp.transpose(f2[idx], (0, 3, 1, 2)))
            flow_L3.append(jnp.transpose(f3[idx], (0, 3, 1, 2)))
            for si in range(scale):
                for sj in range(scale):
                    sub = f3[idx][:, si::scale, sj::scale, :] / float(scale)
                    draft_cube.append(flow_warp(frames[i], sub))
    draft_cube = jnp.concatenate(draft_cube, axis=-1)  # (b, h, w, 1+(n-1)*scale^2)

    sr = srnet(params["SR"], pmat, draft_cube, scale)  # (b, h*s, w*s, 1)
    sr = jnp.transpose(sr, (0, 3, 1, 2))               # back to NCHW

    if is_training:
        return flow_L1, flow_L2, flow_L3, sr
    return sr


# ----------------------------------------------------------------------------
# Deterministic parameter init (shapes from the module __init__: channels=320).
# Weights stored bf16 in the kernel-ready packed layouts.
# ----------------------------------------------------------------------------
def pack_conv3x3(w_hwio):
    """HWIO (ky,kx,ci,co) -> im2col rows ordered (kx,ky,ci), matching _im2col_3x3."""
    kh, kw, cin, cout = w_hwio.shape
    w = jnp.transpose(w_hwio, (1, 0, 2, 3)).reshape(kh * kw * cin, cout)
    return w.astype(jnp.bfloat16)


def _shuffle_mats(channels):
    ch = channels // 2
    top = np.zeros((ch, channels), np.float32)
    bot = np.zeros((ch, channels), np.float32)
    idx = np.arange(ch)
    top[idx, 2 * idx] = 1.0
    bot[idx, 2 * idx + 1] = 1.0
    return jnp.asarray(np.stack([top, bot]), dtype=jnp.bfloat16)


def init_params(key, channels=CHANNELS, scale=2, n_frames=3):
    keys = iter(jax.random.split(key, 64))

    def conv3(cin, cout):
        std = 1.0 / np.sqrt(9 * cin)
        w = jax.random.normal(next(keys), (3, 3, cin, cout), jnp.float32) * std
        return pack_conv3x3(w)

    def conv1x1(cin, cout):
        std = 1.0 / np.sqrt(cin)
        w = jax.random.normal(next(keys), (cin, cout), jnp.float32) * std
        return w.astype(jnp.bfloat16)

    def chain(nblocks):
        ch = channels // 2
        w1 = jnp.stack([conv3(ch, ch) for _ in range(nblocks)])
        w2 = jnp.stack([conv3(ch, ch) for _ in range(nblocks)])
        return w1, w2

    rnn1_w1, rnn1_w2 = chain(3)   # OFR RNN1 CasResB(3)
    sr_w1, sr_w2 = chain(3)       # OFR SR CasResB(3)
    ofr = dict(
        rnn1_conv=conv3(4, channels),
        w1=jnp.concatenate([rnn1_w1, sr_w1], axis=0),   # blocks 0-2: rnn1, 3-5: sr
        w2=jnp.concatenate([rnn1_w2, sr_w2], axis=0),
        rnn2_conv=conv3(channels, 2),
        sr_conv1=conv1x1(channels, 64 * scale * scale),
        sr_conv2=conv3(64, 2),
    )
    srn_w1, srn_w2 = chain(8)
    srn = dict(
        conv0=conv3(1 + (n_frames - 1) * scale * scale, channels),
        w1=srn_w1, w2=srn_w2,
        conv1=conv1x1(channels, 64 * scale * scale),
        conv2=conv3(64, 1),
    )
    return dict(OFR=ofr, SR=srn, shuffle=_shuffle_mats(channels))


if __name__ == "__main__":
    scale = 2
    b, n_frames, c, h, w = 2, 3, 1, 16, 16   # SOF-VSR operates on 1-channel (Y) frames

    key = jax.random.PRNGKey(0)
    pkey, xkey, wkey, ckey = jax.random.split(key, 4)

    # im2col weight-packing self-check against lax.conv_general_dilated.
    w_chk = jax.random.normal(wkey, (3, 3, 64, 2), jnp.float32) * 0.05
    x_chk = jax.random.normal(ckey, (2, 32, 32, 64), jnp.float32)
    out_chk = conv2d(x_chk, pack_conv3x3(w_chk), slope=None, out_dtype=jnp.float32)
    ref_chk = jax.lax.conv_general_dilated(
        x_chk.astype(jnp.bfloat16).astype(jnp.float32),
        w_chk.astype(jnp.bfloat16).astype(jnp.float32),
        window_strides=(1, 1), padding="SAME",
        dimension_numbers=("NHWC", "HWIO", "NHWC"),
        precision=jax.lax.Precision.HIGHEST)
    assert float(jnp.max(jnp.abs(out_chk - ref_chk))) < 5e-2

    params = init_params(pkey, channels=CHANNELS, scale=scale, n_frames=n_frames)
    x = jax.random.normal(xkey, (b, n_frames, c, h, w), jnp.float32)

    fwd = jax.jit(functools.partial(sofvsr_forward, scale=scale, is_training=True))
    flow_L1, flow_L2, flow_L3, SR = fwd(params, x)
    SR = jax.block_until_ready(SR)

    assert SR.shape == (b, 1, h * scale, w * scale)
    assert flow_L1[0].shape == (b, 2, h // 2, w // 2) and flow_L1[1] == []
    assert flow_L2[2].shape == (b, 2, h, w)
    assert flow_L3[0].shape == (b, 2, h * scale, w * scale)
    assert bool(jnp.all(jnp.isfinite(SR)))
    print("KERNEL_OK")
</pallas_src>

<mosaic_0001>
module attributes {stable_mosaic.version = 11 : i64} {
  func.func @kernel(%arg0: i32, %arg1: memref<1x32x32x64xbf16, #tpu.memory_space<vmem>>, %arg2: memref<576x2xbf16, #tpu.memory_space<vmem>>, %arg3: memref<1x32x32x2xf32, #tpu.memory_space<vmem>>) attributes {dimension_semantics = [#tpu.dimension_semantics<parallel>], iteration_bounds = array<i64: 2>, scalar_prefetch = 0 : i64, scratch_operands = 0 : i64, tpu.core_type = #tpu.core_type<tc>, window_params = [{transform_indices = @transform_0, window_bounds = array<i64: 1, 32, 32, 64>}, {pipeline_mode = #tpu.pipeline_mode<synchronous>, transform_indices = @transform_1, window_bounds = array<i64: 576, 2>}, {transform_indices = @transform_2, window_bounds = array<i64: 1, 32, 32, 2>}]} {
    %c0 = arith.constant 0 : index
    %c0_0 = arith.constant 0 : index
    %c0_1 = arith.constant 0 : index
    %c0_2 = arith.constant 0 : index
    %0 = vector.load %arg1[%c0, %c0_0, %c0_1, %c0_2] : memref<1x32x32x64xbf16, #tpu.memory_space<vmem>>, vector<1x32x32x64xbf16>
    %cst = arith.constant 0.000000e+00 : bf16
    %1 = vector.broadcast %cst : bf16 to vector<1x1x32x64xbf16>
    %cst_3 = arith.constant 0.000000e+00 : bf16
    %2 = vector.broadcast %cst_3 : bf16 to vector<1x32x1x64xbf16>
    %3 = vector.extract_strided_slice %0 {offsets = [0, 0, 0, 0], sizes = [1, 32, 31, 64], strides = [1, 1, 1, 1]} : vector<1x32x32x64xbf16> to vector<1x32x31x64xbf16>
    %4 = tpu.concatenate %2, %3 in 2 : vector<1x32x1x64xbf16>, vector<1x32x31x64xbf16> -> vector<1x32x32x64xbf16>
    %5 = vector.extract_strided_slice %0 {offsets = [0, 0, 1, 0], sizes = [1, 32, 31, 64], strides = [1, 1, 1, 1]} : vector<1x32x32x64xbf16> to vector<1x32x31x64xbf16>
    %6 = tpu.concatenate %5, %2 in 2 : vector<1x32x31x64xbf16>, vector<1x32x1x64xbf16> -> vector<1x32x32x64xbf16>
    %7 = tpu.concatenate %1, %4, %1 in 1 : vector<1x1x32x64xbf16>, vector<1x32x32x64xbf16>, vector<1x1x32x64xbf16> -> vector<1x34x32x64xbf16>
    %8 = vector.extract_strided_slice %7 {offsets = [0, 0, 0, 0], sizes = [1, 32, 32, 64], strides = [1, 1, 1, 1]} : vector<1x34x32x64xbf16> to vector<1x32x32x64xbf16>
    %9 = vector.extract_strided_slice %7 {offsets = [0, 1, 0, 0], sizes = [1, 32, 32, 64], strides = [1, 1, 1, 1]} : vector<1x34x32x64xbf16> to vector<1x32x32x64xbf16>
    %10 = vector.extract_strided_slice %7 {offsets = [0, 2, 0, 0], sizes = [1, 32, 32, 64], strides = [1, 1, 1, 1]} : vector<1x34x32x64xbf16> to vector<1x32x32x64xbf16>
    %11 = tpu.concatenate %1, %0, %1 in 1 : vector<1x1x32x64xbf16>, vector<1x32x32x64xbf16>, vector<1x1x32x64xbf16> -> vector<1x34x32x64xbf16>
    %12 = vector.extract_strided_slice %11 {offsets = [0, 0, 0, 0], sizes = [1, 32, 32, 64], strides = [1, 1, 1, 1]} : vector<1x34x32x64xbf16> to vector<1x32x32x64xbf16>
    %13 = vector.extract_strided_slice %11 {offsets = [0, 1, 0, 0], sizes = [1, 32, 32, 64], strides = [1, 1, 1, 1]} : vector<1x34x32x64xbf16> to vector<1x32x32x64xbf16>
    %14 = vector.extract_strided_slice %11 {offsets = [0, 2, 0, 0], sizes = [1, 32, 32, 64], strides = [1, 1, 1, 1]} : vector<1x34x32x64xbf16> to vector<1x32x32x64xbf16>
    %15 = tpu.concatenate %1, %6, %1 in 1 : vector<1x1x32x64xbf16>, vector<1x32x32x64xbf16>, vector<1x1x32x64xbf16> -> vector<1x34x32x64xbf16>
    %16 = vector.extract_strided_slice %15 {offsets = [0, 0, 0, 0], sizes = [1, 32, 32, 64], strides = [1, 1, 1, 1]} : vector<1x34x32x64xbf16> to vector<1x32x32x64xbf16>
    %17 = vector.extract_strided_slice %15 {offsets = [0, 1, 0, 0], sizes = [1, 32, 32, 64], strides = [1, 1, 1, 1]} : vector<1x34x32x64xbf16> to vector<1x32x32x64xbf16>
    %18 = vector.extract_strided_slice %15 {offsets = [0, 2, 0, 0], sizes = [1, 32, 32, 64], strides = [1, 1, 1, 1]} : vector<1x34x32x64xbf16> to vector<1x32x32x64xbf16>
    %19 = tpu.concatenate %8, %9, %10, %12, %13, %14, %16, %17, %18 in 3 : vector<1x32x32x64xbf16>, vector<1x32x32x64xbf16>, vector<1x32x32x64xbf16>, vector<1x32x32x64xbf16>, vector<1x32x32x64xbf16>, vector<1x32x32x64xbf16>, vector<1x32x32x64xbf16>, vector<1x32x32x64xbf16>, vector<1x32x32x64xbf16> -> vector<1x32x32x576xbf16>
    %c0_4 = arith.constant 0 : index
    %c0_5 = arith.constant 0 : index
    %20 = vector.load %arg2[%c0_4, %c0_5] : memref<576x2xbf16, #tpu.memory_space<vmem>>, vector<576x2xbf16>
    %21 = vector.shape_cast %19 : vector<1x32x32x576xbf16> to vector<1024x576xbf16>
    %cst_6 = arith.constant dense<0.000000e+00> : vector<1024x2xf32>
    %22 = tpu.matmul %21, %20, %cst_6 {dimension_numbers = #tpu.dot_dimension_numbers<[1], [0], [0], [1], [0, 0, 1, 1], [], []>} : vector<1024x576xbf16>, vector<576x2xbf16>, vector<1024x2xf32> -> vector<1024x2xf32>
    %23 = vector.shape_cast %22 : vector<1024x2xf32> to vector<1x32x32x2xf32>
    %c0_7 = arith.constant 0 : index
    %c0_8 = arith.constant 0 : index
    %c0_9 = arith.constant 0 : index
    %c0_10 = arith.constant 0 : index
    %24 = vector.load %arg3[%c0_7, %c0_8, %c0_9, %c0_10] : memref<1x32x32x2xf32, #tpu.memory_space<vmem>>, vector<1x32x32x2xf32>
    tpu.vector_store %arg3[%c0_7, %c0_8, %c0_9, %c0_10], %23 {strides = array<i32>} : memref<1x32x32x2xf32, #tpu.memory_space<vmem>>, vector<1x32x32x2xf32>,
    return
  }
  func.func @transform_0(%arg0: i32) -> (i32, i32, i32, i32) {
    %c0_i32 = arith.constant 0 : i32
    %c0_i32_0 = arith.constant 0 : i32
    %c0_i32_1 = arith.constant 0 : i32
    %c0_i32_2 = arith.constant 0 : i32
    return %arg0, %c0_i32, %c0_i32_0, %c0_i32_1 : i32, i32, i32, i32
  }
  func.func @transform_1(%arg0: i32) -> (i32, i32) {
    %c0_i32 = arith.constant 0 : i32
    %c0_i32_0 = arith.constant 0 : i32
    %c0_i32_1 = arith.constant 0 : i32
    return %c0_i32, %c0_i32_0 : i32, i32
  }
  func.func @transform_2(%arg0: i32) -> (i32, i32, i32, i32) {
    %c0_i32 = arith.constant 0 : i32
    %c0_i32_0 = arith.constant 0 : i32
    %c0_i32_1 = arith.constant 0 : i32
    %c0_i32_2 = arith.constant 0 : i32
    return %arg0, %c0_i32, %c0_i32_0, %c0_i32_1 : i32, i32, i32, i32
  }
}

</mosaic_0001>

<bundles_post_ra>
// kernel: tpu_custom_call.1
= control target key start
LH: loop header
LB: loop body
LE: loop exit
PB: predicated region body
PF: predicated region fallthrough
CT: control target
= control target key end

     0   :  { %7 = vsyncpa [#allocation3], 0  ;;  %s9384_s0 = inlined_call_operand.hbm [shape: bf16[2,32,32,64], index: 0, kind: input, shape index: {}]   ;;  %s9385_s1 = inlined_call_operand.vmem [shape: bf16[576,2], index: 1, kind: input, shape index: {}]   ;;  %s9386_s2 = inlined_call_operand.vmem [shape: f32[2,32,32,2], index: 2, kind: output, shape index: {}]  }
   0x1   :  { %9 = vsyncpa [#allocation3 + $0x1], 0  ;;  %s5637_s9 = smov 0   ;;  %s5639_s10 = smov 0  }
   0x2   :  { %s5641_s11 = smov 0   ;;  %s5643_s12 = smov 0  }
   0x3 LB: > { %s5656_s13 = sadd.s32 4294967295, %s5615_s12   ;;  %s5659_s14 = sadd.s32 1, %s5615_s12   ;;  %s5615_s12 = sphi %s5643_s12, %s10342_s12   ;;  %s5611_s11 = sphi %s5641_s11, %s10341_s11   ;;  %s5607_s10 = sphi %s5639_s10, %s10340_s10   ;;  %s5603_s9 = sphi %s5637_s9, %s10339_s9  }
   0x4   : > { %s19_s15 = ssub.s32 %s5615_s12, %s5659_s14  ;;  %s22_s16 = sadd.s32 1, %s5611_s11 }
   0x5   : > { %p20_p0 = scmp.eq.s32.totalorder %s19_s15, 0  ;;  %p29_p1 = scmp.ne.s32.totalorder %s5611_s11, %s5607_s10 }
   0x6   : > { %p30_p2 = scmp.eq.s32.totalorder %s5615_s12, 0  ;;  %p35_p3 = scmp.ne.s32.totalorder %s5607_s10, %s5603_s9 }
   0x7   : > { %s5669_s17 = scalar_select %p20_p0, %s5611_s11, %s22_s16  }
   0x8   : > { %p31_p4 = por %p30_p2, %p29_p1  ;;  %p36_p5 = scmp.eq.s32.totalorder %s5656_s13, 0 }
   0x9   : > { %p5348_p6 = scmp.lt.s32.totalorder %s5615_s12, 2  ;;  %s109_s19 = sand.u32 1, %s5611_s11  }
   0xa   : > { %p5673_p7 = por %p36_p5, %p35_p3  ;;  %s4921_s20 = sshll.u32 %s109_s19, 9 }
   0xb   : > { %s5104_s21 = sshll.u32 %s5615_s12, 13  ;;  %s113_s25 = scalar_lea.vmem [#allocation2], %s4921_s20 }
   0xc   : > { %s9670_s18 = scalar_select %p5673_p7, 1, 0 }
   0xd   : > { %s5682_s24 = scalar_lea.hbm %s9384_s0, %s5104_s21  ;;  %s120_s26 = sshll.u32 %s113_s25, 4  ;;  %s5684_s26 = int_to_ptr.vmem [resolvable:$true] %s120_s26 }
   0xe   : > { %p5686_p8 = pnand %p5348_p6, %p31_p4  ;;  %s5691_s28 = scalar_lea.sflag [#allocation3], %s109_s19 }
   0xf   : > { %s5553_s29 = scalar_lea.hbm %s5682_s24, 8192  ;;  %s5558_s4 = scalar_lea.hbm %s9384_s0, 16384 }
  0x10   : > { %p5554_p10 = scmp.ne.s32.totalorder %s5682_s24, %s5553_s29  ;;  %p5555_p11 = pneg %p5686_p8 }
  0x11   : > { %p5559_p0 = scmp.lt.s32.totalorder %s5682_s24, %s9384_s0  ;;  %p5560_p1 = scmp.lt.s32.totalorder %s5558_s4, %s5553_s29 }
  0x12   : > { %p5556_p12 = pnand %p5555_p11, %p5554_p10 }
  0x13   : > { %p5561_p2 = por %p5560_p1, %p5559_p0 }
  0x14   : > { %p5557_p13 = pneg %p5556_p12 }
  0x16   : > { %p5562_p3 = pnand %p5561_p2, %p5557_p13 }
  0x18   : > { %5565 = shalt.err (!%p5562_p3)
}
  0x19   : > { %s5566_s7 = scalar_lea.vmem %s5684_s26, 8192  ;;  %s5617_s8 = smov [#allocation2]  }
  0x1a   : > { %p5567_p4 = scmp.ne.s32.totalorder %s5684_s26, %s5566_s7  ;;  %s5571_s9 = sshll.u32 %s5617_s8, 4  ;;  %s5572_s9 = int_to_ptr.vmem [resolvable:$false] %s5571_s9 }
  0x1b   : > { %s5573_s15 = scalar_lea.vmem %s5572_s9, 16384  ;;  %p5574_p10 = scmp.lt.s32.totalorder %s5684_s26, %s5572_s9 }
  0x1c   : > { %p5569_p5 = pnand %p5567_p4, %p5555_p11  ;;  %p5575_p12 = scmp.lt.s32.totalorder %s5573_s15, %s5566_s7 }
  0x1e   : > { %p5570_p6 = pneg %p5569_p5  ;;  %p5576_p9 = por %p5575_p12, %p5574_p10 }
  0x20   : > { %p5577_p7 = pnand %p5576_p9, %p5570_p6 }
  0x22   : > { %5580 = shalt.err (!%p5577_p7)
}
  0x23   : > { %s5618_s16 = smov 64   ;;  %s5619_s19 = smov 4  }
  0x24   : > { %5347 = dma.hbm_to_vmem [thread:$0]  (!%p5686_p8), %s5682_s24, 8192, %s5684_s26, %s5691_s28, %s5618_s16, %s5618_s16, %s5619_s19  }
  0x25   : > { %p128_p11 = scmp.lt.s32.totalorder %s5615_s12, 3  ;;  %p9672_p13 = scmp.ge.s32.totalorder %s5615_s12, 1 }
  0x27   : > { %p129_p0 = pnand %p9672_p13, %p128_p11 }
  0x29   : > { %132 = sbr.rel (%p129_p0) target bundleno = 1012 (0x3f4), region = 28 }
  0x2e   : > { %s134_s20 = sand.u32 1, %s5607_s10   ;;  %p9673_p7 = scmp.ne.s32.totalorder %s9670_s18, 0 }
  0x2f   : > { %s4925_s21 = sshll.u32 %s134_s20, 9  ;;  %s135_s22 = scalar_lea.sflag [#allocation3], %s134_s20 }
  0x30   : > { %s5716_s23 = scalar_lea.vmem [#allocation2], %s4925_s21 }
  0x31   : > { %5598 = dma.done.wait (%p9673_p7), %s135_s22, 8192  }
  0x32   : > { %5600 = vsyncadd (%p9673_p7), %s135_s22, 4294959104  ;;  %v9411_v0 = vmov 0   ;;  %s5621_s12 = smov 64   ;;  %vm613_vm0 = vsmask.f32 256  ;;  %v5385_v1 = vld [vmem:[%s5716_s23 + $0x170] sm:$0xff]  }
  0x33   : > { %1548 = vrot.lane.b32.xlu0 %v9411_v0, %s5621_s12  ;;  %5310 = vmatprep.subr.bf16.mxu1 %v9411_v0  ;;  %v5728_v2 = vld [vmem:[%s5716_s23 + $0x180] sm:$0xff]   ;;  %vm1126_vm1 = vcmask 1040384   ;;  %v5387_v3 = vld [vmem:[%s5716_s23 + $0x178] sm:$0xff]   ;;  %v5738_v8 = vld [vmem:[%s5716_s23 + $0x8] sm:$0xff]   ;;  %vm1160_vm3 = vsmask.f32 7424 }
  0x34   : > { %3087 = vmatprep.subr.bf16.mxu0 %v9411_v0  ;;  %9674 = vst [vmem:[#allocation5_spill] sm:$0xff] %v5728_v2  ;;  %v9409_v4 = vshrl.u32 %v5728_v2, 16  ;;  %v9410_v5 = vshll.u32 %v5728_v2, 16  ;;  %v5388_v6 = vld [vmem:[%s5716_s23] sm:$0xff]   ;;  %v5741_v9 = vld [vmem:[%s5716_s23 + $0x188] sm:$0xff]   ;;  %vm5744_vm2 = vmand %vm1126_vm1, %vm613_vm0  ;;  %v622_v14 = vshrl.u32 %v5738_v8, 16 }
  0x35   : > { %9675 = vst [vmem:[#allocation6_spill] sm:$0xff] %v5741_v9  ;;  %v615_v11 = vshrl.u32 %v5388_v6, 16  ;;  %v618_v12 = vshll.u32 %v5388_v6, 16  ;;  %v625_v15 = vshll.u32 %v5738_v8, 16  ;;  %v9405_v16 = vshrl.u32 %v5741_v9, 16  ;;  %v5755_v17 = vld [vmem:[%s5716_s23 + $0x190] sm:$0xff]  }
  0x36   : > { %v977_v7 = vrot.slane %v9409_v4, 7  ;;  %9678 = vst [vmem:[#allocation7_spill] sm:$0xff] %v5755_v17  ;;  %v9407_v20 = vshll.u32 %v5741_v9, 16  ;;  %v5759_v21 = vld [vmem:[%s5716_s23 + $0x10] sm:$0xff]   ;;  %v624_v23 = vrot.slane %v622_v14, 7  ;;  %v9401_v25 = vshrl.u32 %v5755_v17, 16 }
  0x37   : > { %1642 = vrot.lane.b32.xlu0 %v5385_v1, %s5621_s12  ;;  %v617_v18 = vrot.slane %v615_v11, 7  ;;  %v1161_v19 = vrot.slane %v618_v12, 1  ;;  %v984_v24 = vrot.slane %v9405_v16, 7  ;;  %v9403_v27 = vshll.u32 %v5755_v17, 16  ;;  %v5781_v32 = vld [vmem:[%s5716_s23 + $0x198] sm:$0xff]   ;;  %v5807_v43 = vld [vmem:[%s5716_s23 + $0x1a0] sm:$0xff]  }
  0x38   : > { %v980_v13 = vor.u32 %v9410_v5, %v977_v7  ;;  %v630_v28 = vshrl.u32 %v5759_v21, 16  ;;  %v627_v29 = vor.u32 %v625_v15, %v624_v23  ;;  %v992_v31 = vrot.slane %v9401_v25, 7  ;;  %9680 = vst [vmem:[#allocation9_spill] sm:$0xff] %v5781_v32  ;;  %v5798_v37 = vld [vmem:[%s5716_s23 + $0x18] sm:$0xff]   ;;  %9682 = vst [vmem:[#allocation11_spill] sm:$0xff] %v5807_v43  ;;  %v5835_v54 = vld [vmem:[%s5716_s23 + $0x20] sm:$0xff]  }
  0x39   : > { %v620_v26 = vor.u32 %v618_v12, %v617_v18  ;;  %v987_v30 = vor.u32 %v9407_v20, %v984_v24  ;;  %v5783_v33 = vor.u32 %v1161_v19, %v615_v11  ;;  %v633_v36 = vshll.u32 %v5759_v21, 16  ;;  %v5401_v55 = vld [vmem:[%s9385_s1 + $0x38] sm:$0xff]   ;;  %v5856_v62 = vld [vmem:[%s5716_s23 + $0x1a8] sm:$0xff]   ;;  %v5404_v63 = vld [vmem:[%s9385_s1 + $0x30] sm:$0xff]   ;;  %p159_p8 = scmp.lt.s32.totalorder %s5656_s13, 1 }
  0x3a   : > { %v5763_v22 = vsel %vm5744_vm2, 0, %v980_v13  ;;  %v5790_v35 = vsel %vm613_vm0, %v617_v18, %v627_v29  ;;  %v995_v39 = vor.u32 %v9403_v27, %v992_v31  ;;  %v632_v40 = vrot.slane %v630_v28, 7  ;;  %5326 = vmatpush1.bf16.msra.mxu1 %v5401_v55  ;;  %3088 = vmatpush1.bf16.msra.mxu0 %v5401_v55  ;;  %9683 = vst [vmem:[#allocation12_spill] sm:$0xff] %v5856_v62  ;;  %v5864_v1 = vld [vmem:[%s5716_s23 + $0x28] sm:$0xff]   ;;  %v5408_v18 = vld [vmem:[%s9385_s1 + $0x20] sm:$0xff]   ;;  %v5926_v55 = vld [vmem:[%s5716_s23 + $0x1b8] sm:$0xff]  }
  0x3b   : > { %1644 = vrot.lane.b32.xlu0 %v5387_v3, %s5621_s12  ;;  %9679 = vst [vmem:[#allocation8_spill] sm:$0xff] %v5763_v22  ;;  %1515 = vrot.lane.b32.xlu1 %v5763_v22, %s5621_s12  ;;  %v5787_v34 = vsel %vm5744_vm2, 0, %v620_v26  ;;  %v5801_v38 = vsel %vm613_vm0, %v977_v7, %v987_v30  ;;  %v9399_v41 = vshrl.u32 %v5781_v32, 16  ;;  %v1166_v42 = vrot.slane %v633_v36, 1  ;;  %v5405_v3 = vld [vmem:[%s9385_s1 + $0x28] sm:$0xff]   ;;  %v5892_v26 = vld [vmem:[%s5716_s23 + $0x1b0] sm:$0xff]  }
  0x3c   : > { %9681 = vst [vmem:[#allocation10_spill] sm:$0xff] %v5801_v38  ;;  %v9400_v44 = vshll.u32 %v5781_v32, 16  ;;  %v637_v45 = vshrl.u32 %v5798_v37, 16  ;;  %v5817_v46 = vsel %vm5744_vm2, 0, %v995_v39  ;;  %v635_v47 = vor.u32 %v633_v36, %v632_v40  ;;  %5311 = vmatprep.subr.bf16.mxu1 %v9411_v0  ;;  %3089 = vmatprep.subr.bf16.mxu0 %v9411_v0  ;;  %9684 = vst [vmem:[#allocation13_spill] sm:$0xff] %v5892_v26  ;;  %v5409_v36 = vld [vmem:[%s9385_s1 + $0x18] sm:$0xff]  }
  0x3d   : > { %v999_v48 = vrot.slane %v9399_v41, 7  ;;  %v640_v49 = vshll.u32 %v5798_v37, 16  ;;  %v9396_v50 = vshrl.u32 %v5807_v43, 16  ;;  %v5840_v56 = vor.u32 %v1166_v42, %v630_v28  ;;  %9685 = vst [vmem:[#allocation14_spill] sm:$0xff] %v5926_v55  ;;  %v6138_v27 = vld [vmem:[%s5716_s23 + $0x1d8] sm:$0xff]   ;;  %v6179_v20 = vld [vmem:[%s5716_s23 + $0x1e0] sm:$0xff]  }
  0x3e   : > { %v5828_v51 = vsel %vm5744_vm2, 0, %v635_v47  ;;  %v639_v53 = vrot.slane %v637_v45, 7  ;;  %v9398_v57 = vshll.u32 %v5807_v43, 16  ;;  %v645_v61 = vshrl.u32 %v5835_v54, 16  ;;  %5327 = vmatpush1.bf16.msra.mxu1 %v5404_v63  ;;  %3090 = vmatpush1.bf16.msra.mxu0 %v5404_v63  ;;  %9693 = vst [vmem:[#allocation22_spill] sm:$0xff] %v6138_v27  ;;  %9695 = vst [vmem:[#allocation24_spill] sm:$0xff] %v6179_v20 }
  0x3f   : > { %1419 = vrot.lane.b32.xlu1 %v5787_v34, %s5621_s12  ;;  %1421 = vrot.lane.b32.xlu0 %v5790_v35, %s5621_s12  ;;  %v1002_v52 = vor.u32 %v9400_v44, %v999_v48  ;;  %v1007_v60 = vrot.slane %v9396_v50, 7  ;;  %v9393_v13 = vshrl.u32 %v5856_v62, 16  ;;  %v9395_v23 = vshll.u32 %v5856_v62, 16  ;;  %v6100_v50 = vld [vmem:[%s5716_s23 + $0x50] sm:$0xff]   ;;  %s10344_s13 = smov (!%p159_p8, %s5656_s13), 1 }
  0x40   : > { %v642_v59 = vor.u32 %v640_v49, %v639_v53  ;;  %v647_v12 = vrot.slane %v645_v61, 7  ;;  %5312 = vmatprep.subr.bf16.mxu1 %v9411_v0  ;;  %3091 = vmatprep.subr.bf16.mxu0 %v9411_v0  ;;  %v652_v24 = vshrl.u32 %v5864_v1, 16  ;;  %v655_v39 = vshll.u32 %v5864_v1, 16 }
  0x41   : > { %v5848_v58 = vsel %vm613_vm0, %v992_v31, %v1002_v52  ;;  %v1010_v11 = vor.u32 %v9398_v57, %v1007_v60  ;;  %v1014_v30 = vrot.slane %v9393_v13, 7  ;;  %v5903_v31 = vld [vmem:[%s5716_s23 + $0x30] sm:$0xff]   ;;  %v1163_v42 = vrot.slane %v625_v15, 1  ;;  %v6070_v13 = vld [vmem:[%s5716_s23 + $0x48] sm:$0xff]  }
  0x42   : > { %v5875_v7 = vsel %vm613_vm0, %v632_v40, %v642_v59  ;;  %5328 = vmatpush1.bf16.msra.mxu1 %v5405_v3  ;;  %3092 = vmatpush1.bf16.msra.mxu0 %v5405_v3  ;;  %v9391_v40 = vshrl.u32 %v5892_v26, 16  ;;  %v654_v52 = vrot.slane %v652_v24, 7  ;;  %v660_v53 = vshrl.u32 %v5903_v31, 16  ;;  %v5412_v59 = vld [vmem:[%s9385_s1 + $0x10] sm:$0xff]  }
  0x43   : > { %1517 = vrot.lane.b32.xlu1 %v5801_v38, %s5621_s12  ;;  %1646 = vrot.lane.b32.xlu0 %v5728_v2, %s5621_s12  ;;  %v5896_v28 = vsel %vm5744_vm2, 0, %v1010_v11  ;;  %v1017_v48 = vor.u32 %v9395_v23, %v1014_v30  ;;  %v5930_v15 = vor.u32 %v1163_v42, %v622_v14  ;;  %v1168_v14 = vrot.slane %v640_v49, 1  ;;  %v5413_v49 = vld [vmem:[%s9385_s1 + $0x8] sm:$0xff]   ;;  %v6259_v2 = vld [vmem:[%s5716_s23 + $0x78] sm:$0xff]  }
  0x44   : > { %5313 = vmatprep.subr.bf16.mxu1 %v9411_v0  ;;  %3093 = vmatprep.subr.bf16.mxu0 %v9411_v0  ;;  %v657_v3 = vor.u32 %v655_v39, %v654_v52  ;;  %v663_v11 = vshll.u32 %v5903_v31, 16  ;;  %v9389_v52 = vshll.u32 %v5926_v55, 16  ;;  %vm1838_vm4 = vcmask 523264  }
  0x45   : > { %v5947_v63 = vsel %vm613_vm0, %v1007_v60, %v1017_v48  ;;  %vm6392_vm5 = vmneg %vm1838_vm4  ;;  %vm1353_vm6 = vcmask 1047552   ;;  %vm4722_vm8 = vcmask 15360  }
  0x46   : > { %5329 = vmatpush1.bf16.msra.mxu1 %v5408_v18  ;;  %3094 = vmatpush1.bf16.msra.mxu0 %v5408_v18  ;;  %v5956_v18 = vor.u32 %v1168_v14, %v637_v45  ;;  %v5970_v45 = vld [vmem:[%s5716_s23 + $0x38] sm:$0xff]   ;;  %v5973_v30 = vsel %vm613_vm0, %v647_v12, %v657_v3  ;;  %v1176_v48 = vrot.slane %v663_v11, 1  ;;  %vm6455_vm7 = vmand %vm1353_vm6, %vm1160_vm3 }
  0x47   : > { %1550 = vrot.lane.b32.xlu1 %v5388_v6, %s5621_s12  ;;  %1519 = vrot.lane.b32.xlu0 %v5817_v46, %s5621_s12  ;;  %v648_v6 = vshll.u32 %v5835_v54, 16 }
  0x48   : > { %5314 = vmatprep.subr.bf16.mxu1 %v9411_v0  ;;  %3095 = vmatprep.subr.bf16.mxu0 %v9411_v0 }
  0x49   : > { %v1171_v19 = vrot.slane %v648_v6, 1  ;;  %v650_v29 = vor.u32 %v648_v6, %v647_v12  ;;  %v5951_v6 = vrot.slane %v660_v53, 7  ;;  %v5416_v12 = vld [vmem:[%s9385_s1] sm:$0xff]  }
  0x4a   : > { %5330 = vmatpush1.bf16.msra.mxu1 %v5409_v36  ;;  %3096 = vmatpush1.bf16.msra.mxu0 %v5409_v36  ;;  %v5983_v36 = vsel %vm1160_vm3, %v5840_v56, %v1168_v14  ;;  %v5417_v14 = vld [vmem:[%s9385_s1 + $0x78] sm:$0xff]  }
  0x4b   : > { %1423 = vrot.lane.b32.xlu1 %v5828_v51, %s5621_s12  ;;  %1648 = vrot.lane.b32.xlu0 %v5741_v9, %s5621_s12  ;;  %v5918_v47 = vsel %vm5744_vm2, 0, %v650_v29  ;;  %v1173_v29 = vrot.slane %v655_v39, 1  ;;  %9686 = vst [vmem:[#allocation15_spill] sm:$0xff] %v5983_v36  ;;  %v665_v56 = vor.u32 %v663_v11, %v5951_v6  ;;  %v670_v11 = vshll.u32 %v5970_v45, 16 }
  0x4c   : > { %5315 = vmatprep.subr.bf16.mxu1 %v9411_v0  ;;  %3097 = vmatprep.subr.bf16.mxu0 %v9411_v0 }
  0x4d   : > { %v6020_v3 = vsel %vm5744_vm2, 0, %v665_v56  ;;  %v5420_v56 = vld [vmem:[%s9385_s1 + $0x70] sm:$0xff]  }
  0x4e   : > { %5331 = vmatpush1.bf16.msra.mxu1 %v5412_v59  ;;  %3098 = vmatpush1.bf16.msra.mxu0 %v5412_v59  ;;  %v5992_v59 = vor.u32 %v1173_v29, %v652_v24  ;;  %v6007_v24 = vld [vmem:[%s5716_s23 + $0x1c0] sm:$0xff]  }
  0x4f   : > { %1552 = vrot.lane.b32.xlu1 %v5738_v8, %s5621_s12  ;;  %1521 = vrot.lane.b32.xlu0 %v5848_v58, %s5621_s12  ;;  %v9392_v8 = vshll.u32 %v5892_v26, 16  ;;  %9688 = vst [vmem:[#allocation17_spill] sm:$0xff] %v6007_v24 }
  0x50   : > { %5316 = vmatprep.subr.bf16.mxu1 %v9411_v0  ;;  %3099 = vmatprep.subr.bf16.mxu0 %v9411_v0 }
  0x52   : > { %5332 = vmatpush1.bf16.msra.mxu1 %v5413_v49  ;;  %3100 = vmatpush1.bf16.msra.mxu0 %v5413_v49  ;;  %v9390_v49 = vshrl.u32 %v6007_v24, 16 }
  0x53   : > { %1425 = vrot.lane.b32.xlu1 %v5875_v7, %s5621_s12  ;;  %1650 = vrot.lane.b32.xlu0 %v5755_v17, %s5621_s12 }
  0x54   : > { %5317 = vmatprep.subr.bf16.mxu1 %v9411_v0  ;;  %3101 = vmatprep.subr.bf16.mxu0 %v9411_v0 }
  0x56   : > { %5333 = vmatpush1.bf16.msra.mxu1 %v5416_v12  ;;  %3102 = vmatpush1.bf16.msra.mxu0 %v5416_v12  ;;  %v6027_v12 = vld [vmem:[%s5716_s23 + $0x40] sm:$0xff]  }
  0x57   : > { %1554 = vrot.lane.b32.xlu1 %v5759_v21, %s5621_s12  ;;  %1523 = vrot.lane.b32.xlu0 %v5896_v28, %s5621_s12  ;;  %v1172_v21 = vor.u32 %v1171_v19, %v645_v61  ;;  %v5941_v61 = vrot.slane %v9391_v40, 7  ;;  %v9388_v19 = vshrl.u32 %v5926_v55, 16  ;;  %v678_v40 = vshll.u32 %v6027_v12, 16 }
  0x58   : > { %5318 = vmatprep.subr.bf16.mxu1 %v9411_v0  ;;  %3103 = vmatprep.subr.bf16.mxu0 %v9411_v0 }
  0x59   : > { %v1025_v60 = vor.u32 %v9392_v8, %v5941_v61  ;;  %v5990_v39 = vsel %vm1160_vm3, %v1172_v21, %v1173_v29  ;;  %v667_v21 = vshrl.u32 %v5970_v45, 16  ;;  %v1181_v23 = vrot.slane %v678_v40, 1 }
  0x5a   : > { %9687 = vst [vmem:[#allocation16_spill] sm:$0xff] %v5990_v39  ;;  %5334 = vmatpush2.bf16.msra.mxu1 %v5417_v14  ;;  %3104 = vmatpush2.bf16.msra.mxu0 %v5417_v14  ;;  %v675_v14 = vshrl.u32 %v6027_v12, 16 }
  0x5b   : > { %1427 = vrot.lane.b32.xlu1 %v5918_v47, %s5621_s12  ;;  %1652 = vrot.lane.b32.xlu0 %v5781_v32, %s5621_s12  ;;  %v669_v29 = vrot.slane %v667_v21, 7 }
  0x5c   : > { %5319 = vmatprep.subr.bf16.mxu1 %v9411_v0  ;;  %3105 = vmatprep.subr.bf16.mxu0 %v9411_v0 }
  0x5e   : > { %5335 = vmatpush2.bf16.msra.mxu1 %v5420_v56  ;;  %3106 = vmatpush2.bf16.msra.mxu0 %v5420_v56  ;;  %v677_v56 = vrot.slane %v675_v14, 7 }
  0x5f   : > { %1556 = vrot.lane.b32.xlu1 %v5798_v37, %s5621_s12  ;;  %1525 = vrot.lane.b32.xlu0 %v5947_v63, %s5621_s12  ;;  %v5979_v37 = vsel %vm1160_vm3, %v5783_v33, %v1163_v42  ;;  %v6000_v33 = vsel %vm5744_vm2, 0, %v1025_v60  ;;  %v1029_v42 = vrot.slane %v9388_v19, 7  ;;  %v9394_v19 = vshll.u32 %v6007_v24, 16 }
  0x60   : > { %5320 = vmatprep.subr.bf16.mxu1 %v9411_v0  ;;  %3107 = vmatprep.subr.bf16.mxu0 %v9411_v0 }
  0x61   : > { %v1032_v60 = vor.u32 %v9389_v52, %v1029_v42  ;;  %v6040_v42 = vrot.slane %v9390_v49, 7  ;;  %v6049_v52 = vld [vmem:[%s5716_s23 + $0x1c8] sm:$0xff]  }
  0x62   : > { %9689 = vst [vmem:[#allocation18_spill] sm:$0xff] %v6049_v52  ;;  %v5421_v49 = vld [vmem:[%s9385_s1 + $0x68] sm:$0xff]   ;;  %v9397_v8 = vshrl.u32 %v6049_v52, 16 }
  0x63   : > { %1429 = vrot.lane.b32.xlu1 %v5973_v30, %s5621_s12  ;;  %1654 = vrot.lane.b32.xlu0 %v5807_v43, %s5621_s12 }
  0x64   : > { %5336 = vmatpush2.bf16.msra.mxu1 %v5421_v49  ;;  %3108 = vmatpush2.bf16.msra.mxu0 %v5421_v49  ;;  %v1044_v49 = vrot.slane %v9397_v8, 7  ;;  %v685_v8 = vshll.u32 %v6070_v13, 16 }
  0x65   : > { %5321 = vmatprep.subr.bf16.mxu1 %v9411_v0  ;;  %3109 = vmatprep.subr.bf16.mxu0 %v9411_v0 }
  0x66   : > { %v1183_v44 = vrot.slane %v685_v8, 1 }
  0x67   : > { %1558 = vrot.lane.b32.xlu1 %v5835_v54, %s5621_s12  ;;  %1527 = vrot.lane.b32.xlu0 %v6000_v33, %s5621_s12  ;;  %v1177_v54 = vor.u32 %v1176_v48, %v660_v53  ;;  %v6045_v53 = vsel %vm613_vm0, %v5941_v61, %v1032_v60  ;;  %v672_v48 = vor.u32 %v670_v11, %v669_v29  ;;  %v1178_v60 = vrot.slane %v670_v11, 1 }
  0x68   : > { %v1040_v61 = vor.u32 %v9394_v19, %v6040_v42  ;;  %v682_v19 = vshrl.u32 %v6070_v13, 16 }
  0x69   : > { %v6065_v29 = vsel %vm613_vm0, %v5951_v6, %v672_v48  ;;  %v6077_v11 = vor.u32 %v1178_v60, %v667_v21  ;;  %v5424_v6 = vld [vmem:[%s9385_s1 + $0x60] sm:$0xff]   ;;  %v6092_v21 = vld [vmem:[%s5716_s23 + $0x1d0] sm:$0xff]  }
  0x6a   : > { %v6088_v48 = vsel %vm5744_vm2, 0, %v1040_v61  ;;  %9691 = vst [vmem:[#allocation20_spill] sm:$0xff] %v6092_v21  ;;  %5337 = vmatpush2.bf16.msra.mxu1 %v5424_v6  ;;  %3110 = vmatpush2.bf16.msra.mxu0 %v5424_v6  ;;  %v5425_v61 = vld [vmem:[%s9385_s1 + $0x58] sm:$0xff]   ;;  %v9404_v57 = vshrl.u32 %v6092_v21, 16  ;;  %v684_v41 = vrot.slane %v682_v19, 7  ;;  %v9406_v25 = vshll.u32 %v6092_v21, 16 }
  0x6b   : > { %1431 = vrot.lane.b32.xlu1 %v6020_v3, %s5621_s12  ;;  %1656 = vrot.lane.b32.xlu0 %v5856_v62, %s5621_s12  ;;  %v6221_v62 = vld [vmem:[%s5716_s23 + $0x68] sm:$0xff]  }
  0x6c   : > { %5322 = vmatprep.subr.bf16.mxu1 %v9411_v0  ;;  %3111 = vmatprep.subr.bf16.mxu0 %v9411_v0  ;;  %v712_v17 = vshrl.u32 %v6221_v62, 16  ;;  %v715_v9 = vshll.u32 %v6221_v62, 16 }
  0x6e   : > { %5338 = vmatpush2.bf16.msra.mxu1 %v5425_v61  ;;  %3112 = vmatpush2.bf16.msra.mxu0 %v5425_v61 }
  0x6f   : > { %1560 = vrot.lane.b32.xlu1 %v5864_v1, %s5621_s12  ;;  %1529 = vrot.lane.b32.xlu0 %v6045_v53, %s5621_s12  ;;  %v6075_v1 = vsel %vm1160_vm3, %v1177_v54, %v1178_v60  ;;  %v9402_v54 = vshll.u32 %v6049_v52, 16  ;;  %v680_v60 = vor.u32 %v678_v40, %v677_v56 }
  0x70   : > { %9690 = vst [vmem:[#allocation19_spill] sm:$0xff] %v6075_v1  ;;  %5323 = vmatprep.subr.bf16.mxu1 %v9411_v0  ;;  %3113 = vmatprep.subr.bf16.mxu0 %v9411_v0 }
  0x71   : > { %v6113_v40 = vsel %vm5744_vm2, 0, %v680_v60  ;;  %v1047_v6 = vor.u32 %v9402_v54, %v1044_v49  ;;  %v5428_v60 = vld [vmem:[%s9385_s1 + $0x50] sm:$0xff]   ;;  %v1052_v49 = vrot.slane %v9404_v57, 7  ;;  %v687_v54 = vor.u32 %v685_v8, %v684_v41  ;;  %v5430_v57 = vld [vmem:[%s9385_s1 + $0x48] sm:$0xff]  }
  0x72   : > { %5339 = vmatpush2.bf16.msra.mxu1 %v5428_v60  ;;  %3114 = vmatpush2.bf16.msra.mxu0 %v5428_v60  ;;  %v6157_v60 = vld [vmem:[%s5716_s23 + $0x58] sm:$0xff]  }
  0x73   : > { %1433 = vrot.lane.b32.xlu1 %v6065_v29, %s5621_s12  ;;  %1658 = vrot.lane.b32.xlu0 %v5892_v26, %s5621_s12  ;;  %v6135_v61 = vsel %vm613_vm0, %v6040_v42, %v1047_v6  ;;  %v1055_v41 = vor.u32 %v9406_v25, %v1052_v49  ;;  %v693_v42 = vshll.u32 %v6100_v50, 16  ;;  %v6153_v6 = vsel %vm613_vm0, %v677_v56, %v687_v54  ;;  %v5432_v56 = vld [vmem:[%s9385_s1 + $0x40] sm:$0xff]  }
  0x74   : > { %5324 = vmatprep.subr.bf16.mxu1 %v9411_v0  ;;  %3115 = vmatprep.subr.bf16.mxu0 %v9411_v0  ;;  %v697_v25 = vshrl.u32 %v6157_v60, 16  ;;  %v700_v4 = vshll.u32 %v6157_v60, 16 }
  0x75   : > { %v1186_v16 = vrot.slane %v693_v42, 1  ;;  %v6172_v54 = vsel %vm5744_vm2, 0, %v1055_v41  ;;  %v6186_v41 = vld [vmem:[%s9385_s1 + $0x118] sm:$0xff]  }
  0x76   : > { %5340 = vmatpush2.bf16.msra.mxu1 %v5430_v57  ;;  %3116 = vmatpush2.bf16.msra.mxu0 %v5430_v57  ;;  %v1188_v43 = vrot.slane %v700_v4, 1 }
  0x77   : > { %1562 = vrot.lane.b32.xlu1 %v5903_v31, %s5621_s12  ;;  %1531 = vrot.lane.b32.xlu0 %v6088_v48, %s5621_s12  ;;  %v1182_v31 = vor.u32 %v1181_v23, %v675_v14  ;;  %v690_v23 = vshrl.u32 %v6100_v50, 16 }
  0x78   : > { %5325 = vmatprep.subr.bf16.mxu1 %v9411_v0  ;;  %3117 = vmatprep.subr.bf16.mxu0 %v9411_v0  ;;  %v699_v0 = vrot.slane %v697_v25, 7 }
  0x79   : > { %v6131_v14 = vsel %vm1160_vm3, %v1182_v31, %v1183_v44  ;;  %v692_v8 = vrot.slane %v690_v23, 7  ;;  %v9408_v31 = vshrl.u32 %v6138_v27, 16 }
  0x7a   : > { %9692 = vst [vmem:[#allocation21_spill] sm:$0xff] %v6131_v14  ;;  %5341 = vmatpush2.bf16.msra.mxu1 %v5432_v56  ;;  %3118 = vmatpush2.bf16.msra.mxu0 %v5432_v56  ;;  %v9696_v56 = vmov 0  }
  0x7b   : > { %1435 = vrot.lane.b32.xlu1 %v6113_v40, %s5621_s12  ;;  %1660 = vrot.lane.b32.xlu0 %v5926_v55, %s5621_s12  ;;  %v1059_v57 = vrot.slane %v9408_v31, 7  ;;  %v6206_v55 = vld [vmem:[%s5716_s23 + $0x1e8] sm:$0xff]  }
  0x7c   : > { %3632 = vmatprep.subr.bf16.mxu1 %v9696_v56  ;;  %5174 = vmatprep.subr.bf16.mxu0 %v6186_v41  ;;  %9697 = vst [vmem:[#allocation25_spill] sm:$0xff] %v6206_v55 }
  0x7f   : > { %1564 = vrot.lane.b32.xlu1 %v5970_v45, %s5621_s12  ;;  %1533 = vrot.lane.b32.xlu0 %v6135_v61, %s5621_s12  ;;  %v6161_v45 = vor.u32 %v1183_v44, %v682_v19  ;;  %v695_v44 = vor.u32 %v693_v42, %v692_v8  ;;  %v9417_v19 = vshll.u32 %v6138_v27, 16  ;;  %v6189_v42 = vld [vmem:[%s5716_s23 + $0x60] sm:$0xff]  }
  0x81   : > { %9694 = vst [vmem:[#allocation23_spill] sm:$0xff] %v6161_v45  ;;  %v6197_v31 = vsel %vm5744_vm2, 0, %v695_v44  ;;  %v1062_v5 = vor.u32 %v9417_v19, %v1059_v57  ;;  %v705_v44 = vshrl.u32 %v6189_v42, 16  ;;  %v702_v19 = vor.u32 %v700_v4, %v699_v0  ;;  %v6319_v45 = vld [vmem:[%s5716_s23 + $0x80] sm:$0xff]  }
  0x82   : > { %v9436_v0 = vshrl.u32 %v6206_v55, 16 }
  0x83   : > { %1437 = vrot.lane.b32.xlu1 %v6153_v6, %s5621_s12  ;;  %1662 = vrot.lane.b32.xlu0 %v6007_v24, %s5621_s12  ;;  %v9426_v24 = vshrl.u32 %v6179_v20, 16  ;;  %v6214_v57 = vsel %vm613_vm0, %v1052_v49, %v1062_v5  ;;  %v6229_v5 = vsel %vm613_vm0, %v692_v8, %v702_v19 }
  0x84   : > { %9698 = vst [vmem:[#allocation26_spill] sm:$0xff] %v6214_v57  ;;  %9699 = vst [vmem:[#allocation27_spill] sm:$0xff] %v6229_v5  ;;  %v1074_v19 = vrot.slane %v9436_v0, 7  ;;  %v714_v0 = vrot.slane %v712_v17, 7 }
  0x85   : > { %v1067_v26 = vrot.slane %v9426_v24, 7  ;;  %v6234_v24 = vld [vmem:[%s5716_s23 + $0x70] sm:$0xff]  }
  0x87   : > { %1566 = vrot.lane.b32.xlu1 %v6027_v12, %s5621_s12  ;;  %1535 = vrot.lane.b32.xlu0 %v6172_v54, %s5621_s12  ;;  %v1187_v12 = vor.u32 %v1186_v16, %v690_v23  ;;  %v9429_v16 = vshll.u32 %v6179_v20, 16  ;;  %v708_v23 = vshll.u32 %v6189_v42, 16 }
  0x89   : > { %v1070_v49 = vor.u32 %v9429_v16, %v1067_v26  ;;  %v6237_v4 = vsel %vm1160_vm3, %v1187_v12, %v1188_v43  ;;  %v1191_v32 = vrot.slane %v708_v23, 1  ;;  %v9442_v16 = vshll.u32 %v6206_v55, 16 }
  0x8a   : > { %9700 = vst [vmem:[#allocation28_spill] sm:$0xff] %v6237_v4  ;;  %v1193_v4 = vrot.slane %v715_v9, 1 }
  0x8b   : > { %1439 = vrot.lane.b32.xlu1 %v6197_v31, %s5621_s12  ;;  %1664 = vrot.lane.b32.xlu0 %v6049_v52, %s5621_s12  ;;  %v707_v52 = vrot.slane %v705_v44, 7  ;;  %v6251_v12 = vsel %vm5744_vm2, 0, %v1070_v49  ;;  %v1077_v49 = vor.u32 %v9442_v16, %v1074_v19  ;;  %v9454_v19 = vshrl.u32 %v6259_v2, 16 }
  0x8c   : > { %9702 = vst [vmem:[#allocation30_spill] sm:$0xff] %v6251_v12 }
  0x8d   : > { %v710_v8 = vor.u32 %v708_v23, %v707_v52  ;;  %v6282_v16 = vsel %vm613_vm0, %v1067_v26, %v1077_v49 }
  0x8e   : > { %9706 = vst [vmem:[#allocation34_spill] sm:$0xff] %v6282_v16 }
  0x8f   : > { %1568 = vrot.lane.b32.xlu1 %v6070_v13, %s5621_s12  ;;  %1537 = vrot.lane.b32.xlu0 %v6214_v57, %s5621_s12  ;;  %v6239_v13 = vor.u32 %v1188_v43, %v697_v25  ;;  %v720_v25 = vshrl.u32 %v6234_v24, 16  ;;  %v6255_v43 = vld [vmem:[%s5716_s23 + $0x1f0] sm:$0xff]   ;;  %v6267_v23 = vsel %vm5744_vm2, 0, %v710_v8 }
  0x90   : > { %9703 = vst [vmem:[#allocation31_spill] sm:$0xff] %v6255_v43  ;;  %9704 = vst [vmem:[#allocation32_spill] sm:$0xff] %v6267_v23  ;;  %v6287_v57 = vld [vmem:[%s5716_s23 + $0x170] sm:$0xff]  }
  0x91   : > { %9701 = vst [vmem:[#allocation29_spill] sm:$0xff] %v6239_v13  ;;  %v723_v13 = vshll.u32 %v6234_v24, 16  ;;  %9708 = vst [vmem:[#allocation36_spill] sm:$0xff] %v6287_v57 }
  0x93   : > { %1441 = vrot.lane.b32.xlu1 %v6229_v5, %s5621_s12  ;;  %1666 = vrot.lane.b32.xlu0 %v6092_v21, %s5621_s12  ;;  %v722_v21 = vrot.slane %v720_v25, 7  ;;  %v1192_v5 = vor.u32 %v1191_v32, %v705_v44  ;;  %v717_v32 = vor.u32 %v715_v9, %v714_v0  ;;  %v9710_v9 = vshrl.u32 %v6255_v43, 16 }
  0x94   : > { %v730_v0 = vshll.u32 %v6259_v2, 16 }
  0x95   : > { %v725_v44 = vor.u32 %v723_v13, %v722_v21  ;;  %v1082_v26 = vrot.slane %v9710_v9, 7  ;;  %v6305_v49 = vsel %vm613_vm0, %v707_v52, %v717_v32  ;;  %v1196_v52 = vrot.slane %v723_v13, 1 }
  0x97   : > { %1570 = vrot.lane.b32.xlu1 %v6100_v50, %s5621_s12  ;;  %1539 = vrot.lane.b32.xlu0 %v6251_v12, %s5621_s12  ;;  %v6273_v50 = vsel %vm1160_vm3, %v1192_v5, %v1193_v4  ;;  %v6313_v5 = vor.u32 %v1193_v4, %v712_v17 }
  0x98   : > { %9705 = vst [vmem:[#allocation33_spill] sm:$0xff] %v6273_v50  ;;  %v6309_v50 = vsel %vm5744_vm2, 0, %v725_v44 }
  0x99   : > { %9711 = vst [vmem:[#allocation38_spill] sm:$0xff] %v6309_v50  ;;  %9712 = vst [vmem:[#allocation39_spill] sm:$0xff] %v6313_v5 }
  0x9b   : > { %1443 = vrot.lane.b32.xlu1 %v6267_v23, %s5621_s12  ;;  %1668 = vrot.lane.b32.xlu0 %v6138_v27, %s5621_s12  ;;  %v6295_v27 = vld [vmem:[%s5716_s23 + $0x1f8] sm:$0xff]  }
  0x9c   : > { %9709 = vst [vmem:[#allocation37_spill] sm:$0xff] %v6295_v27  ;;  %v9718_v13 = vshrl.u32 %v6295_v27, 16 }
  0x9f   : > { %1572 = vrot.lane.b32.xlu1 %v6157_v60, %s5621_s12  ;;  %1541 = vrot.lane.b32.xlu0 %v6282_v16, %s5621_s12  ;;  %v729_v60 = vrot.slane %v9454_v19, 7  ;;  %v9713_v16 = vshrl.u32 %v6287_v57, 16  ;;  %v6334_v19 = vld [vmem:[%s5716_s23 + $0x178] sm:$0xff]  }
  0xa0   : > { %9716 = vst [vmem:[#allocation41_spill] sm:$0xff] %v6334_v19 }
  0xa1   : > { %v962_v23 = vrot.slane %v9713_v16, 7  ;;  %v732_v4 = vor.u32 %v730_v0, %v729_v60 }
  0xa3   : > { %1445 = vrot.lane.b32.xlu1 %v6305_v49, %s5621_s12  ;;  %1447 = vrot.lane.b32.xlu0 %v6309_v50, %s5621_s12  ;;  %v6350_v9 = vsel %vm613_vm0, %v722_v21, %v732_v4  ;;  %v1198_v50 = vrot.slane %v730_v0, 1 }
  0xa5   : > { %v6284_v12 = vpop.permute.xlu0 %1548 }
  0xa6   : > { %9707 = vst [vmem:[#allocation35_spill] sm:$0xff] %v6284_v12  ;;  %v2095_v8 = vsel %vm1838_vm4, %v5828_v51, %v6284_v12 }
  0xa7   : > { %3119 = vmatprep.mubr.bf16.mxu0 %v2095_v8  ;;  %v9714_v8 = vshll.u32 %v6255_v43, 16  ;;  %1574 = vrot.lane.b32.xlu1 %v6189_v42, %s5621_s12  ;;  %v1089_v42 = vrot.slane %v9718_v13, 7  ;;  %v1197_v43 = vor.u32 %v1196_v52, %v720_v25 }
  0xa8   : > { %1670 = vrot.lane.b32.xlu0 %v6179_v20, %s5621_s12  ;;  %v9719_v20 = vshrl.u32 %v6319_v45, 16 }
  0xa9   : > { %v1085_v32 = vor.u32 %v9714_v8, %v1082_v26  ;;  %v6328_v44 = vpop.permute.xlu0 %1642  ;;  %v9717_v8 = vshll.u32 %v6287_v57, 16 }
  0xaa   : > { %9715 = vst [vmem:[#allocation40_spill] sm:$0xff] %v6328_v44  ;;  %v2238_v16 = vsel %vm1838_vm4, %v5817_v46, %v6328_v44  ;;  %v9464_v44 = vshll.u32 %v6295_v27, 16  ;;  %v6356_v5 = vrot.slane %v9719_v20, 7  ;;  %v9723_v20 = vshrl.u32 %v6334_v19, 16 }
  0xab   : > { %v6344_v60 = vsel %vm5744_vm2, 0, %v1085_v32  ;;  %v965_v17 = vor.u32 %v9717_v8, %v962_v23  ;;  %3503 = vmatprep.mubr.bf16.mxu1 %v2238_v16  ;;  %v738_v32 = vshll.u32 %v6319_v45, 16  ;;  %v6360_v8 = vsel %vm1160_vm3, %v1197_v43, %v1198_v50  ;;  %v5435_v43 = vld [vmem:[%s9385_s1 + $0xb8] sm:$0xff]   ;;  %v6381_v16 = vld [vmem:[%s5716_s23 + $0x88] sm:$0xff]  }
  0xac   : > { %9720 = vst [vmem:[#allocation42_spill] sm:$0xff] %v6360_v8  ;;  %1543 = vrot.lane.b32.xlu1 %v6344_v60, %s5621_s12  ;;  %1449 = vrot.lane.b32.xlu0 %v6350_v9, %s5621_s12  ;;  %v969_v0 = vrot.slane %v9723_v20, 7  ;;  %v1092_v4 = vor.u32 %v9464_v44, %v1089_v42  ;;  %v9726_v42 = vshll.u32 %v6334_v19, 16 }
  0xad   : > { %v6366_v21 = vsel %vm5744_vm2, 0, %v965_v17  ;;  %v6370_v25 = vpop.permute.xlu0 %1644  ;;  %v1516_v17 = vpop.permute.xlu1 %1515  ;;  %v740_v20 = vor.u32 %v738_v32, %v6356_v5 }
  0xae   : > { %9721 = vst [vmem:[#allocation43_spill] sm:$0xff] %v6366_v21  ;;  %9722 = vst [vmem:[#allocation44_spill] sm:$0xff] %v6370_v25  ;;  %v2032_v13 = vsel %vm1838_vm4, %v6366_v21, %v1516_v17  ;;  %v2241_v57 = vsel %vm1838_vm4, %v5848_v58, %v6370_v25  ;;  %v972_v44 = vor.u32 %v9726_v42, %v969_v0  ;;  %v9727_v17 = vshrl.u32 %v6259_v2, 16 }
  0xaf   : > { %3504 = vmatmul.mubr.bf16.vlgmr.msra.gmra.mxu1 %v2032_v13  ;;  %v6405_v13 = vsel %vm613_vm0, %v1082_v26, %v1092_v4  ;;  %v9472_v25 = vshrl.u32 %v6381_v16, 16  ;;  %v5459_v26 = vld [vmem:[%s9385_s1 + $0x110] sm:$0xff]   ;;  %v1201_v0 = vrot.slane %v738_v32, 1  ;;  %v745_v4 = vshll.u32 %v6381_v16, 16  ;;  %v6450_v32 = vld [vmem:[%s5716_s23 + $0x98] sm:$0xff]  }
  0xb0   : > { %1576 = vrot.lane.b32.xlu1 %v6221_v62, %s5621_s12  ;;  %v6400_v27 = vor.u32 %v1198_v50, %v9727_v17  ;;  %3633 = vmatpush1.bf16.msra.mxu1 %v5435_v43  ;;  %v5437_v62 = vld [vmem:[%s9385_s1 + $0xb0] sm:$0xff]   ;;  %v6416_v50 = vsel %vm5744_vm2, 0, %v740_v20  ;;  %v5439_v43 = vld [vmem:[%s9385_s1 + $0xa8] sm:$0xff]  }
  0xb1   : > { %1672 = vrot.lane.b32.xlu0 %v6206_v55, %s5621_s12  ;;  %v1420_v21 = vpop.permute.xlu1 %1419  ;;  %v1422_v19 = vpop.permute.xlu0 %1421  ;;  %3511 = vmatprep.mubr.bf16.mxu1 %v2241_v57  ;;  %v2097_v57 = vsel %vm1838_vm4, %v5875_v7, %v6284_v12  ;;  %v6437_v20 = vld [vmem:[%s5716_s23 + $0x90] sm:$0xff]  }
  0xb2   : > { %3634 = vmatprep.subr.bf16.mxu1 %v9696_v56  ;;  %5029 = vmatmul.mubr.msk.bf16.vlgmr.msra.gmra.mxu0 %vm6392_vm5, %v1420_v21  ;;  %v6428_v21 = vsel %vm613_vm0, %v962_v23, %v972_v44 }
  0xb3   : > { %5175 = vmatpush3.bf16.msra.mxu0 %v6186_v41  ;;  %9728 = vst [vmem:[#allocation45_spill] sm:$0xff] %v6428_v21  ;;  %3127 = vmatprep.mubr.bf16.mxu0 %v2097_v57  ;;  %v744_v41 = vrot.slane %v9472_v25, 7  ;;  %v9732_v57 = vshrl.u32 %v6319_v45, 16 }
  0xb4   : > { %1545 = vrot.lane.b32.xlu1 %v6405_v13, %s5621_s12  ;;  %3635 = vmatpush1.bf16.msra.mxu1 %v5437_v62 }
  0xb5   : > { %v1518_v42 = vpop.permute.xlu1 %1517  ;;  %v6439_v17 = vpop.permute.xlu0 %1646  ;;  %1451 = vrot.lane.b32.xlu0 %v6416_v50, %s5621_s12  ;;  %3636 = vmatprep.subr.bf16.mxu1 %v9696_v56  ;;  %v1202_v25 = vor.u32 %v1201_v0, %v9732_v57  ;;  %v747_v12 = vor.u32 %v745_v4, %v744_v41  ;;  %v6481_v41 = vsel %vm6455_vm7, %v5930_v15, 0  ;;  %v9480_v15 = vshll.u32 %v6437_v20, 16 }
  0xb6   : > { %9729 = vst [vmem:[#allocation46_spill] sm:$0xff] %v6439_v17  ;;  %v2036_v23 = vsel %vm1838_vm4, %v6428_v21, %v1518_v42  ;;  %v2244_v44 = vsel %vm1838_vm4, %v5896_v28, %v6439_v17  ;;  %5176 = vmatprep.subr.bf16.mxu0 %v5459_v26  ;;  %v6461_v42 = vrot.slane %v745_v4, 1  ;;  %v5441_v17 = vld [vmem:[%s9385_s1 + $0xa0] sm:$0xff]   ;;  %v9478_v4 = vshrl.u32 %v6450_v32, 16 }
  0xb7   : > { %3512 = vmatmul.mubr.bf16.gmra.mxu1 %v2036_v23  ;;  %5177 = vmatpush3.bf16.msra.mxu0 %v5459_v26  ;;  %v6663_v21 = vld [vmem:[%s5716_s23 + $0xc0] sm:$0xff]  }
  0xb8   : > { %1578 = vrot.lane.b32.xlu1 %v6234_v24, %s5621_s12  ;;  %3519 = vmatprep.mubr.bf16.mxu1 %v2244_v44  ;;  %v9479_v24 = vshrl.u32 %v6437_v20, 16  ;;  %v6472_v0 = vsel %vm1160_vm3, %v1202_v25, %v6461_v42  ;;  %v5443_v44 = vld [vmem:[%s9385_s1 + $0x98] sm:$0xff]  }
  0xb9   : > { %3637 = vmatpush1.bf16.msra.mxu1 %v5439_v43  ;;  %v1551_v23 = vpop.permute.xlu1 %1550  ;;  %v1520_v55 = vpop.permute.xlu0 %1519  ;;  %1580 = vrot.lane.b32.xlu0 %v6259_v2, %s5621_s12  ;;  %9733 = vst [vmem:[#allocation47_spill] sm:$0xff] %v6472_v0 }
  0xba   : > { %3638 = vmatprep.subr.bf16.mxu1 %v9696_v56  ;;  %5031 = vmatmul.mubr.msk.bf16.gmra.mxu0 %vm6392_vm5, %v1422_v19  ;;  %v2100_v43 = vsel %vm1838_vm4, %v5918_v47, %v1551_v23  ;;  %v2040_v2 = vsel %vm1838_vm4, %v5763_v22, %v1520_v55  ;;  %v6490_v19 = vsel %vm613_vm0, %v6356_v5, %v747_v12  ;;  %v752_v25 = vrot.slane %v9479_v24, 7 }
  0xbb   : > { %3135 = vmatprep.mubr.bf16.mxu0 %v2100_v43  ;;  %v759_v12 = vrot.slane %v9478_v4, 7  ;;  %v5445_v43 = vld [vmem:[%s9385_s1 + $0x90] sm:$0xff]   ;;  %v6519_v4 = vld [vmem:[%s5716_s23 + $0xa0] sm:$0xff]  }
  0xbc   : > { %1710 = vrot.lane.b32.xlu1 %v5979_v37, %s5621_s12 }
  0xbd   : > { %3639 = vmatpush1.bf16.msra.mxu1 %v5441_v17  ;;  %v1424_v57 = vpop.permute.xlu1 %1423  ;;  %v6498_v23 = vpop.permute.xlu0 %1648  ;;  %1712 = vrot.lane.b32.xlu0 %v6481_v41, %s5621_s12  ;;  %v755_v17 = vor.u32 %v9480_v15, %v752_v25 }
  0xbe   : > { %9734 = vst [vmem:[#allocation48_spill] sm:$0xff] %v6498_v23  ;;  %3640 = vmatprep.subr.bf16.mxu1 %v9696_v56  ;;  %v2247_v55 = vsel %vm1838_vm4, %v5947_v63, %v6498_v23  ;;  %v1848_v26 = vsel %vm1838_vm4, %v5787_v34, %v1424_v57  ;;  %v6529_v57 = vld [vmem:[%s5716_s23 + $0xa8] sm:$0xff]   ;;  %v5451_v23 = vld [vmem:[%s9385_s1 + $0xf8] sm:$0xff]  }
  0xbf   : > { %3520 = vmatmul.mubr.bf16.gmra.mxu1 %v2040_v2  ;;  %v9735_v2 = vshll.u32 %v6450_v32, 16  ;;  %v6537_v15 = vsel %vm5744_vm2, 0, %v755_v17  ;;  %v9484_v17 = vshrl.u32 %v6529_v57, 16 }
  0xc0   : > { %1453 = vrot.lane.b32.xlu1 %v6490_v19, %s5621_s12  ;;  %3527 = vmatprep.mubr.bf16.mxu1 %v2247_v55 }
  0xc1   : > { %3641 = vmatpush1.bf16.msra.mxu1 %v5443_v44  ;;  %v1553_v24 = vpop.permute.xlu1 %1552  ;;  %v1522_v5 = vpop.permute.xlu0 %1521  ;;  %1714 = vrot.lane.b32.xlu0 %v5983_v36, %s5621_s12  ;;  %v762_v44 = vor.u32 %v9735_v2, %v759_v12 }
  0xc2   : > { %3642 = vmatprep.subr.bf16.mxu1 %v9696_v56  ;;  %3136 = vmatmul.mubr.bf16.gmra.mxu0 %v1848_v26  ;;  %v2103_v34 = vsel %vm1838_vm4, %v5973_v30, %v1553_v24  ;;  %v2044_v55 = vsel %vm1838_vm4, %v5801_v38, %v1522_v5  ;;  %v9482_v26 = vshrl.u32 %v6519_v4, 16  ;;  %v5447_v24 = vld [vmem:[%s9385_s1 + $0x88] sm:$0xff]  }
  0xc3   : > { %3143 = vmatprep.mubr.bf16.mxu0 %v2103_v34  ;;  %v6552_v5 = vsel %vm613_vm0, %v752_v25, %v762_v44  ;;  %v6562_v34 = vsel %vm6455_vm7, %v5956_v18, 0  ;;  %v9486_v25 = vshll.u32 %v6519_v4, 16 }
  0xc4   : > { %1582 = vrot.lane.b32.xlu1 %v6319_v45, %s5621_s12  ;;  %9737 = vst [vmem:[#allocation50_spill] sm:$0xff] %v6562_v34 }
  0xc5   : > { %3643 = vmatpush1.bf16.msra.mxu1 %v5445_v43  ;;  %v1426_v12 = vpop.permute.xlu1 %1425  ;;  %v6543_v2 = vpop.permute.xlu0 %1650  ;;  %1584 = vrot.lane.b32.xlu0 %v6381_v16, %s5621_s12 }
  0xc6   : > { %9736 = vst [vmem:[#allocation49_spill] sm:$0xff] %v6543_v2  ;;  %3644 = vmatprep.subr.bf16.mxu1 %v9696_v56  ;;  %v2250_v45 = vsel %vm1838_vm4, %v6000_v33, %v6543_v2  ;;  %v1852_v43 = vsel %vm1838_vm4, %v5790_v35, %v1426_v12  ;;  %v767_v2 = vrot.slane %v9482_v26, 7  ;;  %v5449_v35 = vld [vmem:[%s9385_s1 + $0x80] sm:$0xff]   ;;  %v9488_v12 = vshll.u32 %v6529_v57, 16  ;;  %v6588_v26 = vld [vmem:[%s5716_s23 + $0xb0] sm:$0xff]  }
  0xc7   : > { %3528 = vmatmul.mubr.bf16.gmra.mxu1 %v2044_v55  ;;  %v9489_v22 = vshrl.u32 %v6588_v26, 16 }
  0xc8   : > { %1455 = vrot.lane.b32.xlu1 %v6537_v15, %s5621_s12  ;;  %3535 = vmatprep.mubr.bf16.mxu1 %v2250_v45 }
  0xc9   : > { %3645 = vmatpush1.bf16.msra.mxu1 %v5447_v24  ;;  %v6570_v44 = vpop.permute.xlu1 %1554  ;;  %v1524_v55 = vpop.permute.xlu0 %1523  ;;  %1457 = vrot.lane.b32.xlu0 %v6552_v5, %s5621_s12  ;;  %v774_v24 = vrot.slane %v9484_v17, 7 }
  0xca   : > { %3646 = vmatprep.subr.bf16.mxu1 %v9696_v56  ;;  %3144 = vmatmul.mubr.bf16.gmra.mxu0 %v1852_v43  ;;  %v2106_v18 = vsel %vm1838_vm4, %v6020_v3, %v6570_v44  ;;  %v2048_v45 = vsel %vm1838_vm4, %v5817_v46, %v1524_v55  ;;  %v770_v43 = vor.u32 %v9486_v25, %v767_v2  ;;  %v6604_v55 = vld [vmem:[%s5716_s23 + $0xb8] sm:$0xff]  }
  0xcb   : > { %3151 = vmatprep.mubr.bf16.mxu0 %v2106_v18 }
  0xcc   : > { %1716 = vrot.lane.b32.xlu1 %v6562_v34, %s5621_s12  ;;  %v6612_v25 = vsel %vm5744_vm2, 0, %v770_v43 }
  0xcd   : > { %3647 = vmatpush1.bf16.msra.mxu1 %v5449_v35  ;;  %v1428_v17 = vpop.permute.xlu1 %1427  ;;  %v6593_v38 = vpop.permute.xlu0 %1652  ;;  %1718 = vrot.lane.b32.xlu0 %v5990_v39, %s5621_s12  ;;  %v777_v35 = vor.u32 %v9488_v12, %v774_v24  ;;  %v5453_v24 = vld [vmem:[%s9385_s1 + $0xf0] sm:$0xff]  }
  0xce   : > { %9738 = vst [vmem:[#allocation51_spill] sm:$0xff] %v6593_v38  ;;  %3648 = vmatprep.subr.bf16.mxu1 %v9696_v56  ;;  %v2253_v46 = vsel %vm1838_vm4, %v6045_v53, %v6593_v38  ;;  %v1856_v18 = vsel %vm1838_vm4, %v5828_v51, %v1428_v17 }
  0xcf   : > { %3536 = vmatmul.mubr.bf16.gmra.mxu1 %v2048_v45  ;;  %v6627_v17 = vsel %vm613_vm0, %v767_v2, %v777_v35  ;;  %v9493_v2 = vshll.u32 %v6588_v26, 16  ;;  %v5455_v35 = vld [vmem:[%s9385_s1 + $0xe8] sm:$0xff]  }
  0xd0   : > { %1586 = vrot.lane.b32.xlu1 %v6437_v20, %s5621_s12  ;;  %3543 = vmatprep.mubr.bf16.mxu1 %v2253_v46  ;;  %v6637_v46 = vsel %vm6455_vm7, %v5992_v59, 0  ;;  %v9741_v59 = vshrl.u32 %v6604_v55, 16 }
  0xd1   : > { %3649 = vmatpush2.bf16.msra.mxu1 %v5451_v23  ;;  %v6618_v12 = vpop.permute.xlu1 %1556  ;;  %v1526_v45 = vpop.permute.xlu0 %1525  ;;  %1588 = vrot.lane.b32.xlu0 %v6450_v32, %s5621_s12  ;;  %9739 = vst [vmem:[#allocation52_spill] sm:$0xff] %v6637_v46 }
  0xd2   : > { %3650 = vmatprep.subr.bf16.mxu1 %v9696_v56  ;;  %3152 = vmatmul.mubr.bf16.gmra.mxu0 %v1856_v18  ;;  %v2109_v51 = vsel %vm1838_vm4, %v6065_v29, %v6618_v12  ;;  %v2052_v43 = vsel %vm1838_vm4, %v5848_v58, %v1526_v45  ;;  %v782_v18 = vrot.slane %v9489_v22, 7  ;;  %v789_v45 = vrot.slane %v9741_v59, 7  ;;  %v5457_v59 = vld [vmem:[%s9385_s1 + $0xe0] sm:$0xff]  }
  0xd3   : > { %3159 = vmatprep.mubr.bf16.mxu0 %v2109_v51 }
  0xd4   : > { %1459 = vrot.lane.b32.xlu1 %v6612_v25, %s5621_s12  ;;  %v785_v38 = vor.u32 %v9493_v2, %v782_v18 }
  0xd5   : > { %3651 = vmatpush2.bf16.msra.mxu1 %v5453_v24  ;;  %v1430_v51 = vpop.permute.xlu1 %1429  ;;  %v6645_v23 = vpop.permute.xlu0 %1654  ;;  %1461 = vrot.lane.b32.xlu0 %v6627_v17, %s5621_s12 }
  0xd6   : > { %9740 = vst [vmem:[#allocation53_spill] sm:$0xff] %v6645_v23  ;;  %3652 = vmatprep.subr.bf16.mxu1 %v9696_v56  ;;  %v2256_v58 = vsel %vm1838_vm4, %v6088_v48, %v6645_v23  ;;  %v1860_v22 = vsel %vm1838_vm4, %v5875_v7, %v1430_v51  ;;  %v9742_v51 = vshll.u32 %v6604_v55, 16  ;;  %v6687_v23 = vsel %vm5744_vm2, 0, %v785_v38 }
  0xd7   : > { %3544 = vmatmul.mubr.bf16.gmra.mxu1 %v2052_v43 }
  0xd8   : > { %1720 = vrot.lane.b32.xlu1 %v6637_v46, %s5621_s12  ;;  %3551 = vmatprep.mubr.bf16.mxu1 %v2256_v58  ;;  %v6679_v58 = vld [vmem:[%s5716_s23 + $0xc8] sm:$0xff]  }
  0xd9   : > { %3653 = vmatpush2.bf16.msra.mxu1 %v5455_v35  ;;  %v6668_v24 = vpop.permute.xlu1 %1558  ;;  %v1528_v43 = vpop.permute.xlu0 %1527  ;;  %1722 = vrot.lane.b32.xlu0 %v6075_v1, %s5621_s12  ;;  %v792_v35 = vor.u32 %v9742_v51, %v789_v45  ;;  %v5460_v45 = vld [vmem:[%s9385_s1 + $0xd8] sm:$0xff]   ;;  %v5464_v46 = vld [vmem:[%s9385_s1 + $0xc8] sm:$0xff]  }
  0xda   : > { %3654 = vmatprep.subr.bf16.mxu1 %v9696_v56  ;;  %3160 = vmatmul.mubr.bf16.gmra.mxu0 %v1860_v22  ;;  %v2112_v7 = vsel %vm1838_vm4, %v6113_v40, %v6668_v24  ;;  %v2056_v2 = vsel %vm1838_vm4, %v5896_v28, %v1528_v43  ;;  %v9498_v22 = vshrl.u32 %v6663_v21, 16 }
  0xdb   : > { %3167 = vmatprep.mubr.bf16.mxu0 %v2112_v7  ;;  %v6702_v28 = vsel %vm613_vm0, %v782_v18, %v792_v35  ;;  %v6712_v7 = vsel %vm6455_vm7, %v6077_v11, 0  ;;  %v9504_v18 = vshll.u32 %v6663_v21, 16 }
  0xdc   : > { %1590 = vrot.lane.b32.xlu1 %v6519_v4, %s5621_s12  ;;  %9744 = vst [vmem:[#allocation55_spill] sm:$0xff] %v6702_v28  ;;  %9745 = vst [vmem:[#allocation56_spill] sm:$0xff] %v6712_v7 }
  0xdd   : > { %3655 = vmatpush2.bf16.msra.mxu1 %v5457_v59  ;;  %v1432_v51 = vpop.permute.xlu1 %1431  ;;  %v6693_v1 = vpop.permute.xlu0 %1656  ;;  %1592 = vrot.lane.b32.xlu0 %v6529_v57, %s5621_s12  ;;  %v9501_v59 = vshrl.u32 %v6679_v58, 16 }
  0xde   : > { %9743 = vst [vmem:[#allocation54_spill] sm:$0xff] %v6693_v1  ;;  %3656 = vmatprep.subr.bf16.mxu1 %v9696_v56  ;;  %v2259_v38 = vsel %vm1838_vm4, %v6135_v61, %v6693_v1  ;;  %v1864_v43 = vsel %vm1838_vm4, %v5918_v47, %v1432_v51  ;;  %v797_v1 = vrot.slane %v9498_v22, 7  ;;  %v5462_v47 = vld [vmem:[%s9385_s1 + $0xd0] sm:$0xff]   ;;  %v9507_v51 = vshll.u32 %v6679_v58, 16 }
  0xdf   : > { %3552 = vmatmul.mubr.bf16.gmra.mxu1 %v2056_v2  ;;  %v6738_v22 = vld [vmem:[%s5716_s23 + $0xd0] sm:$0xff]  }
  0xe0   : > { %1463 = vrot.lane.b32.xlu1 %v6687_v23, %s5621_s12  ;;  %3559 = vmatprep.mubr.bf16.mxu1 %v2259_v38 }
  0xe1   : > { %3657 = vmatpush2.bf16.msra.mxu1 %v5460_v45  ;;  %v6720_v2 = vpop.permute.xlu1 %1560  ;;  %v1530_v35 = vpop.permute.xlu0 %1529  ;;  %1465 = vrot.lane.b32.xlu0 %v6702_v28, %s5621_s12  ;;  %v804_v45 = vrot.slane %v9501_v59, 7 }
  0xe2   : > { %3658 = vmatprep.subr.bf16.mxu1 %v9696_v56  ;;  %3168 = vmatmul.mubr.bf16.gmra.mxu0 %v1864_v43  ;;  %v2115_v11 = vsel %vm1838_vm4, %v6153_v6, %v6720_v2  ;;  %v2060_v38 = vsel %vm1838_vm4, %v5947_v63, %v1530_v35  ;;  %v800_v43 = vor.u32 %v9504_v18, %v797_v1 }
  0xe3   : > { %3175 = vmatprep.mubr.bf16.mxu0 %v2115_v11  ;;  %v807_v35 = vor.u32 %v9507_v51, %v804_v45  ;;  %v5466_v45 = vld [vmem:[%s9385_s1 + $0xc0] sm:$0xff]  }
  0xe4   : > { %1724 = vrot.lane.b32.xlu1 %v6712_v7, %s5621_s12  ;;  %v6762_v18 = vsel %vm5744_vm2, 0, %v800_v43  ;;  %v6809_v7 = vld [vmem:[%s5716_s23 + $0xe0] sm:$0xff]  }
  0xe5   : > { %3659 = vmatpush2.bf16.msra.mxu1 %v5462_v47  ;;  %v1434_v59 = vpop.permute.xlu1 %1433  ;;  %v6743_v39 = vpop.permute.xlu0 %1658  ;;  %1726 = vrot.lane.b32.xlu0 %v6131_v14, %s5621_s12  ;;  %v6754_v47 = vld [vmem:[%s5716_s23 + $0xd8] sm:$0xff]   ;;  %9747 = vst [vmem:[#allocation58_spill] sm:$0xff] %v6762_v18  ;;  %v9510_v14 = vshrl.u32 %v6738_v22, 16 }
  0xe6   : > { %9746 = vst [vmem:[#allocation57_spill] sm:$0xff] %v6743_v39  ;;  %3660 = vmatprep.subr.bf16.mxu1 %v9696_v56  ;;  %v2262_v63 = vsel %vm1838_vm4, %v6172_v54, %v6743_v39  ;;  %v1868_v11 = vsel %vm1838_vm4, %v5973_v30, %v1434_v59  ;;  %v6777_v59 = vsel %vm613_vm0, %v797_v1, %v807_v35  ;;  %v9517_v1 = vshll.u32 %v6738_v22, 16 }
  0xe7   : > { %3560 = vmatmul.mubr.bf16.gmra.mxu1 %v2060_v38  ;;  %9749 = vst [vmem:[#allocation60_spill] sm:$0xff] %v6777_v59  ;;  %v9523_v39 = vshll.u32 %v6754_v47, 16 }
  0xe8   : > { %1594 = vrot.lane.b32.xlu1 %v6588_v26, %s5621_s12  ;;  %3567 = vmatprep.mubr.bf16.mxu1 %v2262_v63  ;;  %v9750_v63 = vld [vmem:[#allocation23_spill] sm:$0xff] }
  0xe9   : > { %3661 = vmatpush2.bf16.msra.mxu1 %v5464_v46  ;;  %v6768_v51 = vpop.permute.xlu1 %1562  ;;  %v1532_v38 = vpop.permute.xlu0 %1531  ;;  %1596 = vrot.lane.b32.xlu0 %v6604_v55, %s5621_s12  ;;  %v9516_v46 = vshrl.u32 %v6754_v47, 16 }
  0xea   : > { %9748 = vst [vmem:[#allocation59_spill] sm:$0xff] %v6768_v51  ;;  %3662 = vmatprep.subr.bf16.mxu1 %v9696_v56  ;;  %3176 = vmatmul.mubr.bf16.gmra.mxu0 %v1868_v11  ;;  %v2118_v30 = vsel %vm1838_vm4, %v6197_v31, %v6768_v51  ;;  %v2064_v43 = vsel %vm1838_vm4, %v6000_v33, %v1532_v38  ;;  %v6787_v11 = vsel %vm6455_vm7, %v9750_v63, 0  ;;  %v812_v56 = vrot.slane %v9510_v14, 7  ;;  %v9753_v33 = vld [vmem:[#allocation26_spill] sm:$0xff]  ;;  %v6887_v51 = vld [vmem:[%s5716_s23 + $0xf8] sm:$0xff]  }
  0xeb   : > { %3183 = vmatprep.mubr.bf16.mxu0 %v2118_v30  ;;  %9751 = vst [vmem:[#allocation23_spill] sm:$0xff] %v6787_v11  ;;  %v819_v63 = vrot.slane %v9516_v46, 7  ;;  %v9755_v46 = vld [vmem:[#allocation28_spill] sm:$0xff] }
  0xec   : > { %1467 = vrot.lane.b32.xlu1 %v6762_v18, %s5621_s12  ;;  %v815_v14 = vor.u32 %v9517_v1, %v812_v56  ;;  %v6824_v1 = vld [vmem:[%s5716_s23 + $0xe8] sm:$0xff]  }
  0xed   : > { %3663 = vmatpush2.bf16.msra.mxu1 %v5466_v45  ;;  %v1436_v35 = vpop.permute.xlu1 %1435  ;;  %v6792_v30 = vpop.permute.xlu0 %1660  ;;  %1469 = vrot.lane.b32.xlu0 %v6777_v59, %s5621_s12 }
  0xee   : > { %9752 = vst [vmem:[#allocation61_spill] sm:$0xff] %v6792_v30  ;;  %v2265_v38 = vsel %vm1838_vm4, %v9753_v33, %v6792_v30  ;;  %v1872_v45 = vsel %vm1838_vm4, %v6020_v3, %v1436_v35  ;;  %v9756_v3 = vld [vmem:[#allocation27_spill] sm:$0xff] }
  0xef   : > { %3568 = vmatmul.mubr.bf16.gmra.mxu1 %v2064_v43  ;;  %v5476_v43 = vld [vmem:[%s9385_s1 + $0x108] sm:$0xff]  }
  0xf0   : > { %1728 = vrot.lane.b32.xlu1 %v6787_v11, %s5621_s12  ;;  %3575 = vmatprep.mubr.bf16.mxu1 %v2265_v38  ;;  %v822_v38 = vor.u32 %v9523_v39, %v819_v63  ;;  %v6832_v11 = vsel %vm5744_vm2, 0, %v815_v14  ;;  %v9759_v63 = vld [vmem:[#allocation30_spill] sm:$0xff]  ;;  %v9761_v39 = vld [vmem:[#allocation29_spill] sm:$0xff] }
  0xf1   : > { %v6811_v30 = vpop.permute.xlu1 %1564  ;;  %v1534_v59 = vpop.permute.xlu0 %1533  ;;  %1730 = vrot.lane.b32.xlu0 %v9755_v46, %s5621_s12  ;;  %9757 = vst [vmem:[#allocation27_spill] sm:$0xff] %v6832_v11  ;;  %5178 = vmatprep.subr.bf16.mxu0 %v5476_v43 }
  0xf2   : > { %9754 = vst [vmem:[#allocation26_spill] sm:$0xff] %v6811_v30  ;;  %3184 = vmatmul.mubr.bf16.gmra.mxu0 %v1872_v45  ;;  %v2121_v35 = vsel %vm1838_vm4, %v9756_v3, %v6811_v30  ;;  %v2068_v46 = vsel %vm1838_vm4, %v6045_v53, %v1534_v59  ;;  %v9525_v45 = vshrl.u32 %v6809_v7, 16  ;;  %v6843_v53 = vsel %vm613_vm0, %v812_v56, %v822_v38 }
  0xf3   : > { %3191 = vmatprep.mubr.bf16.mxu0 %v2121_v35  ;;  %5179 = vmatpush3.bf16.msra.mxu0 %v5476_v43  ;;  %9760 = vst [vmem:[#allocation30_spill] sm:$0xff] %v6843_v53  ;;  %v6853_v43 = vsel %vm6455_vm7, %v9761_v39, 0  ;;  %v9536_v38 = vshll.u32 %v6809_v7, 16  ;;  %v9765_v39 = vshrl.u32 %v6824_v1, 16 }
  0xf4   : > { %1598 = vrot.lane.b32.xlu1 %v6663_v21, %s5621_s12  ;;  %9762 = vst [vmem:[#allocation29_spill] sm:$0xff] %v6853_v43  ;;  %v827_v56 = vrot.slane %v9525_v45, 7 }
  0xf5   : > { %v1438_v18 = vpop.permute.xlu1 %1437  ;;  %v6835_v30 = vpop.permute.xlu0 %1662  ;;  %1600 = vrot.lane.b32.xlu0 %v6679_v58, %s5621_s12 }
  0xf6   : > { %9758 = vst [vmem:[#allocation62_spill] sm:$0xff] %v6835_v30  ;;  %v2268_v35 = vsel %vm1838_vm4, %v9759_v63, %v6835_v30  ;;  %v1876_v59 = vsel %vm1838_vm4, %v6065_v29, %v1438_v18  ;;  %v9764_v29 = vld [vmem:[#allocation32_spill] sm:$0xff]  ;;  %v9538_v30 = vshll.u32 %v6824_v1, 16 }
  0xf7   : > { %3576 = vmatmul.mubr.bf16.gmra.mxu1 %v2068_v46 }
  0xf8   : > { %1471 = vrot.lane.b32.xlu1 %v6832_v11, %s5621_s12  ;;  %3583 = vmatprep.mubr.bf16.mxu1 %v2268_v35  ;;  %v834_v35 = vrot.slane %v9765_v39, 7  ;;  %v9768_v39 = vld [vmem:[#allocation34_spill] sm:$0xff] }
  0xf9   : > { %v6858_v14 = vpop.permute.xlu1 %1566  ;;  %v1536_v46 = vpop.permute.xlu0 %1535  ;;  %1473 = vrot.lane.b32.xlu0 %v6843_v53, %s5621_s12  ;;  %v830_v53 = vor.u32 %v9536_v38, %v827_v56 }
  0xfa   : > { %9763 = vst [vmem:[#allocation63_spill] sm:$0xff] %v6858_v14  ;;  %3192 = vmatmul.mubr.bf16.gmra.mxu0 %v1876_v59  ;;  %v2124_v18 = vsel %vm1838_vm4, %v9764_v29, %v6858_v14  ;;  %v2072_v45 = vsel %vm1838_vm4, %v6088_v48, %v1536_v46  ;;  %v6875_v59 = vld [vmem:[%s5716_s23 + $0xf0] sm:$0xff]   ;;  %v9767_v14 = vld [vmem:[#allocation33_spill] sm:$0xff] }
  0xfb   : > { %3199 = vmatprep.mubr.bf16.mxu0 %v2124_v18  ;;  %v6895_v46 = vsel %vm5744_vm2, 0, %v830_v53  ;;  %v9539_v38 = vshrl.u32 %v6875_v59, 16 }
  0xfc   : > { %1732 = vrot.lane.b32.xlu1 %v6853_v43, %s5621_s12  ;;  %v837_v43 = vor.u32 %v9538_v30, %v834_v35  ;;  %9769 = vst [vmem:[#allocation34_spill] sm:$0xff] %v6895_v46  ;;  %v9771_v35 = vld [vmem:[#allocation39_spill] sm:$0xff] }
  0xfd   : > { %v1440_v11 = vpop.permute.xlu1 %1439  ;;  %v6877_v28 = vpop.permute.xlu0 %1664  ;;  %1734 = vrot.lane.b32.xlu0 %v9767_v14, %s5621_s12 }
  0xfe   : > { %9766 = vst [vmem:[#allocation32_spill] sm:$0xff] %v6877_v28  ;;  %v2271_v18 = vsel %vm1838_vm4, %v9768_v39, %v6877_v28  ;;  %v1880_v48 = vsel %vm1838_vm4, %v6113_v40, %v1440_v11  ;;  %v6906_v11 = vsel %vm613_vm0, %v827_v56, %v837_v43  ;;  %v9545_v43 = vshll.u32 %v6875_v59, 16 }
  0xff   : > { %3584 = vmatmul.mubr.bf16.gmra.mxu1 %v2072_v45  ;;  %9770 = vst [vmem:[#allocation64_spill] sm:$0xff] %v6906_v11  ;;  %v9544_v45 = vshrl.u32 %v6887_v51, 16 }
 0x100   : > { %1602 = vrot.lane.b32.xlu1 %v6738_v22, %s5621_s12  ;;  %3591 = vmatprep.mubr.bf16.mxu1 %v2271_v18  ;;  %v6916_v18 = vsel %vm6455_vm7, %v9771_v35, 0 }
 0x101   : > { %v6898_v28 = vpop.permute.xlu1 %1568  ;;  %v1538_v14 = vpop.permute.xlu0 %1537  ;;  %1604 = vrot.lane.b32.xlu0 %v6754_v47, %s5621_s12  ;;  %9772 = vst [vmem:[#allocation39_spill] sm:$0xff] %v6916_v18 }
 0x102   : > { %3200 = vmatmul.mubr.bf16.gmra.mxu0 %v1880_v48  ;;  %v2127_v40 = vsel %vm1838_vm4, %v6305_v49, %v6898_v28  ;;  %v2076_v53 = vsel %vm1838_vm4, %v6135_v61, %v1538_v14  ;;  %v842_v48 = vrot.slane %v9539_v38, 7  ;;  %v849_v14 = vrot.slane %v9544_v45, 7 }
 0x103   : > { %3207 = vmatprep.mubr.bf16.mxu0 %v2127_v40  ;;  %v9550_v40 = vshll.u32 %v6887_v51, 16 }
 0x104   : > { %1475 = vrot.lane.b32.xlu1 %v6895_v46, %s5621_s12  ;;  %v845_v38 = vor.u32 %v9545_v43, %v842_v48 }
 0x105   : > { %v1442_v56 = vpop.permute.xlu1 %1441  ;;  %v6921_v30 = vpop.permute.xlu0 %1666  ;;  %1477 = vrot.lane.b32.xlu0 %v6906_v11, %s5621_s12  ;;  %v6938_v11 = vld [vmem:[%s5716_s23 + $0x100] sm:$0xff]  }
 0x106   : > { %9773 = vst [vmem:[#allocation65_spill] sm:$0xff] %v6921_v30  ;;  %v2275_v61 = vsel %vm1838_vm4, %v6344_v60, %v6921_v30  ;;  %v1884_v35 = vsel %vm1838_vm4, %v6153_v6, %v1442_v56  ;;  %v852_v56 = vor.u32 %v9550_v40, %v849_v14  ;;  %v6958_v43 = vsel %vm5744_vm2, 0, %v845_v38 }
 0x107   : > { %3592 = vmatmul.mubr.bf16.gmra.mxu1 %v2076_v53  ;;  %v9774_v53 = vld [vmem:[#allocation38_spill] sm:$0xff] }
 0x108   : > { %1736 = vrot.lane.b32.xlu1 %v6916_v18, %s5621_s12  ;;  %3599 = vmatprep.mubr.bf16.mxu1 %v2275_v61  ;;  %v6950_v61 = vld [vmem:[%s5716_s23 + $0x108] sm:$0xff]   ;;  %9775 = vst [vmem:[#allocation38_spill] sm:$0xff] %v6958_v43 }
 0x109   : > { %v6940_v46 = vpop.permute.xlu1 %1570  ;;  %v1540_v60 = vpop.permute.xlu0 %1539  ;;  %1738 = vrot.lane.b32.xlu0 %v6360_v8, %s5621_s12 }
 0x10a   : > { %3208 = vmatmul.mubr.bf16.gmra.mxu0 %v1884_v35  ;;  %v2130_v6 = vsel %vm1838_vm4, %v9774_v53, %v6940_v46  ;;  %v2080_v45 = vsel %vm1838_vm4, %v6172_v54, %v1540_v60  ;;  %v9549_v35 = vshrl.u32 %v6938_v11, 16  ;;  %v9552_v54 = vshrl.u32 %v6950_v61, 16 }
 0x10b   : > { %3215 = vmatprep.mubr.bf16.mxu0 %v2130_v6  ;;  %v6969_v6 = vsel %vm613_vm0, %v842_v48, %v852_v56  ;;  %v6979_v60 = vsel %vm6455_vm7, %v6400_v27, 0  ;;  %v9557_v48 = vshll.u32 %v6938_v11, 16 }
 0x10c   : > { %1606 = vrot.lane.b32.xlu1 %v6809_v7, %s5621_s12  ;;  %9777 = vst [vmem:[#allocation67_spill] sm:$0xff] %v6969_v6  ;;  %9778 = vst [vmem:[#allocation68_spill] sm:$0xff] %v6979_v60  ;;  %v864_v27 = vrot.slane %v9552_v54, 7  ;;  %v7006_v54 = vld [vmem:[%s5716_s23 + $0x118] sm:$0xff]  }
 0x10d   : > { %v1444_v30 = vpop.permute.xlu1 %1443  ;;  %v6961_v8 = vpop.permute.xlu0 %1668  ;;  %1608 = vrot.lane.b32.xlu0 %v6824_v1, %s5621_s12 }
 0x10e   : > { %9776 = vst [vmem:[#allocation66_spill] sm:$0xff] %v6961_v8  ;;  %v2279_v14 = vsel %vm1838_vm4, %v6405_v13, %v6961_v8  ;;  %v1888_v38 = vsel %vm1838_vm4, %v6197_v31, %v1444_v30  ;;  %v857_v13 = vrot.slane %v9549_v35, 7  ;;  %v7003_v8 = vld [vmem:[%s5716_s23 + $0x110] sm:$0xff]  }
 0x10f   : > { %3600 = vmatmul.mubr.bf16.gmra.mxu1 %v2080_v45 }
 0x110   : > { %1479 = vrot.lane.b32.xlu1 %v6958_v43, %s5621_s12  ;;  %3607 = vmatprep.mubr.bf16.mxu1 %v2279_v14  ;;  %v860_v35 = vor.u32 %v9557_v48, %v857_v13  ;;  %v9782_v48 = vshrl.u32 %v6381_v16, 16 }
 0x111   : > { %v6984_v45 = vpop.permute.xlu1 %1572  ;;  %v1542_v56 = vpop.permute.xlu0 %1541  ;;  %1481 = vrot.lane.b32.xlu0 %v6969_v6, %s5621_s12 }
 0x112   : > { %3216 = vmatmul.mubr.bf16.gmra.mxu0 %v1888_v38  ;;  %v2133_v31 = vsel %vm1838_vm4, %v6350_v9, %v6984_v45  ;;  %v2084_v14 = vsel %vm1838_vm4, %v9753_v33, %v1542_v56  ;;  %v7018_v56 = vsel %vm5744_vm2, 0, %v860_v35 }
 0x113   : > { %3223 = vmatprep.mubr.bf16.mxu0 %v2133_v31  ;;  %v9779_v31 = vshll.u32 %v6437_v20, 16  ;;  %9781 = vst [vmem:[#allocation69_spill] sm:$0xff] %v7018_v56 }
 0x114   : > { %1740 = vrot.lane.b32.xlu1 %v6979_v60, %s5621_s12  ;;  %v9780_v60 = vshll.u32 %v6950_v61, 16 }
 0x115   : > { %v1446_v38 = vpop.permute.xlu1 %1445  ;;  %v1448_v40 = vpop.permute.xlu0 %1447  ;;  %1742 = vrot.lane.b32.xlu0 %v6472_v0, %s5621_s12  ;;  %v1206_v30 = vrot.slane %v9779_v31, 1  ;;  %v1205_v0 = vor.u32 %v6461_v42, %v9782_v48  ;;  %v9785_v42 = vshrl.u32 %v6437_v20, 16 }
 0x116   : > { %v867_v18 = vor.u32 %v9780_v60, %v864_v27  ;;  %v1892_v33 = vsel %vm1838_vm4, %v9756_v3, %v1446_v38  ;;  %v9562_v3 = vshrl.u32 %v7003_v8, 16  ;;  %v9786_v27 = vshll.u32 %v6450_v32, 16 }
 0x117   : > { %3608 = vmatmul.mubr.bf16.gmra.mxu1 %v2084_v14  ;;  %v1207_v48 = vor.u32 %v1206_v30, %v9785_v42  ;;  %v7048_v38 = vsel %vm6455_vm7, %v1205_v0, 0 }
 0x118   : > { %1610 = vrot.lane.b32.xlu1 %v6875_v59, %s5621_s12  ;;  %v7038_v16 = vsel %vm613_vm0, %v857_v13, %v867_v18  ;;  %v1208_v14 = vrot.slane %v9786_v27, 1  ;;  %9787 = vst [vmem:[#allocation72_spill] sm:$0xff] %v7048_v38  ;;  %v872_v20 = vrot.slane %v9562_v3, 7  ;;  %v9564_v18 = vshll.u32 %v7003_v8, 16 }
 0x119   : > { %v7023_v6 = vpop.permute.xlu1 %1574  ;;  %1612 = vrot.lane.b32.xlu0 %v6887_v51, %s5621_s12  ;;  %9784 = vst [vmem:[#allocation71_spill] sm:$0xff] %v7038_v16  ;;  %v9788_v13 = vshrl.u32 %v7006_v54, 16  ;;  %v1896_v3 = vsel %vm1838_vm4, %v9764_v29, %v1448_v40  ;;  %v7086_v40 = vld [vmem:[%s5716_s23 + $0x128] sm:$0xff]  }
 0x11a   : > { %v7025_v31 = vpop.permute.xlu0 %1670  ;;  %3224 = vmatmul.mubr.bf16.gmra.mxu0 %v1892_v33  ;;  %v2136_v35 = vsel %vm1838_vm4, %v6416_v50, %v7023_v6  ;;  %v7061_v42 = vsel %vm1160_vm3, %v1207_v48, %v1208_v14  ;;  %v7076_v48 = vld [vmem:[%s5716_s23 + $0x120] sm:$0xff]  }
 0x11b   : > { %9783 = vst [vmem:[#allocation70_spill] sm:$0xff] %v7025_v31  ;;  %5033 = vmatprep.mubr.msk.bf16.mxu1 %vm6392_vm5, %v7025_v31  ;;  %3231 = vmatprep.mubr.bf16.mxu0 %v2136_v35  ;;  %v879_v30 = vrot.slane %v9788_v13, 7  ;;  %v9565_v35 = vshll.u32 %v7006_v54, 16  ;;  %9789 = vst [vmem:[#allocation73_spill] sm:$0xff] %v7061_v42  ;;  %v875_v13 = vor.u32 %v9564_v18, %v872_v20 }
 0x11c   : > { %1483 = vrot.lane.b32.xlu1 %v7018_v56, %s5621_s12  ;;  %v9578_v56 = vshrl.u32 %v7086_v40, 16 }
 0x11d   : > { %1485 = vrot.lane.b32.xlu0 %v7038_v16, %s5621_s12 }
 0x11e   : > { %v1544_v33 = vpop.permute.xlu1 %1543  ;;  %v1450_v60 = vpop.permute.xlu0 %1449 }
 0x11f   : > { %v2088_v0 = vsel %vm1838_vm4, %v9759_v63, %v1544_v33  ;;  %v882_v63 = vor.u32 %v9565_v35, %v879_v30  ;;  %v9790_v33 = vshll.u32 %v6519_v4, 16  ;;  %v9577_v35 = vshrl.u32 %v7076_v48, 16 }
 0x120   : > { %3616 = vmatmul.mubr.bf16.gmra.mxu1 %v2088_v0  ;;  %1744 = vrot.lane.b32.xlu1 %v7048_v38, %s5621_s12 }
 0x121   : > { %1746 = vrot.lane.b32.xlu0 %v7061_v42, %s5621_s12  ;;  %v1211_v0 = vrot.slane %v9790_v33, 1  ;;  %v9792_v33 = vshrl.u32 %v6450_v32, 16  ;;  %v9793_v42 = vshrl.u32 %v6519_v4, 16 }
 0x122   : > { %v7065_v27 = vpop.permute.xlu1 %1576  ;;  %3232 = vmatmul.mubr.bf16.gmra.mxu0 %v1896_v3  ;;  %v7095_v3 = vsel %vm5744_vm2, 0, %v875_v13  ;;  %v9794_v13 = vshll.u32 %v6529_v57, 16 }
 0x123   : > { %v7080_v31 = vpop.permute.xlu0 %1672  ;;  %v2139_v29 = vsel %vm1838_vm4, %v6490_v19, %v7065_v27  ;;  %v1210_v18 = vor.u32 %v1208_v14, %v9792_v33  ;;  %v1212_v38 = vor.u32 %v1211_v0, %v9793_v42  ;;  %v1900_v14 = vsel %vm1838_vm4, %v6305_v49, %v1450_v60  ;;  %v5487_v33 = vld [vmem:[%s5716_s23] sm:$0xff]  }
 0x124   : > { %9791 = vst [vmem:[#allocation74_spill] sm:$0xff] %v7080_v31  ;;  %3239 = vmatprep.mubr.bf16.mxu0 %v2139_v29  ;;  %5035 = vmatprep.mubr.msk.bf16.mxu1 %vm6392_vm5, %v7080_v31  ;;  %v7102_v29 = vsel %vm613_vm0, %v872_v20, %v882_v63  ;;  %v1213_v16 = vrot.slane %v9794_v13, 1  ;;  %v894_v60 = vrot.slane %v9578_v56, 7  ;;  %v7141_v63 = vld [vmem:[%s5716_s23 + $0x130] sm:$0xff]   ;;  %v2287_v13 = vsel %vm1838_vm4, %v5487_v33, %v6570_v44 }
 0x125   : > { %1614 = vrot.lane.b32.xlu1 %v6938_v11, %s5621_s12  ;;  %1616 = vrot.lane.b32.xlu0 %v6950_v61, %s5621_s12  ;;  %v7120_v4 = vsel %vm6455_vm7, %v1210_v18, 0  ;;  %v9584_v18 = vshll.u32 %v7086_v40, 16  ;;  %v9798_v44 = vshrl.u32 %v6529_v57, 16  ;;  %v9799_v57 = vshrl.u32 %v6588_v26, 16 }
 0x126   : > { %v1546_v30 = vpop.permute.xlu1 %1545  ;;  %9795 = vst [vmem:[#allocation75_spill] sm:$0xff] %v7120_v4  ;;  %v7131_v49 = vsel %vm1160_vm3, %v1212_v38, %v1213_v16 }
 0x127   : > { %v2092_v31 = vsel %vm1838_vm4, %v9768_v39, %v1546_v30  ;;  %v1452_v43 = vpop.permute.xlu0 %1451  ;;  %v887_v39 = vrot.slane %v9577_v35, 7  ;;  %9796 = vst [vmem:[#allocation76_spill] sm:$0xff] %v7131_v49  ;;  %v7148_v30 = vld [vmem:[%s5716_s23 + $0x138] sm:$0xff]   ;;  %v897_v35 = vor.u32 %v9584_v18, %v894_v60  ;;  %v9582_v60 = vshrl.u32 %v7141_v63, 16 }
 0x128   : > { %3624 = vmatmul.mubr.bf16.gmra.mxu1 %v2092_v31  ;;  %v9579_v31 = vshll.u32 %v7076_v48, 16  ;;  %v1904_v56 = vsel %vm1838_vm4, %v9774_v53, %v1452_v43  ;;  %v9583_v53 = vshrl.u32 %v7148_v30, 16 }
 0x129   : > { %1487 = vrot.lane.b32.xlu1 %v7095_v3, %s5621_s12  ;;  %1489 = vrot.lane.b32.xlu0 %v7102_v29, %s5621_s12  ;;  %v7179_v52 = vsel %vm613_vm0, %v887_v39, %v897_v35 }
 0x12a   : > { %v7114_v32 = vpop.permute.xlu1 %1578  ;;  %3240 = vmatmul.mubr.bf16.gmra.mxu0 %v1900_v14  ;;  %v890_v38 = vor.u32 %v9579_v31, %v887_v39  ;;  %v9797_v14 = vshll.u32 %v6588_v26, 16  ;;  %v9585_v39 = vshll.u32 %v7141_v63, 16 }
 0x12b   : > { %v2142_v20 = vsel %vm1838_vm4, %v6537_v15, %v7114_v32  ;;  %v7136_v42 = vpop.permute.xlu0 %1580 }
 0x12c   : > { %3247 = vmatprep.mubr.bf16.mxu0 %v2142_v20  ;;  %v1216_v20 = vrot.slane %v9797_v14, 1  ;;  %v7173_v43 = vsel %vm5744_vm2, 0, %v890_v38 }
 0x12d   : > { %1748 = vrot.lane.b32.xlu1 %v7120_v4, %s5621_s12  ;;  %1750 = vrot.lane.b32.xlu0 %v7131_v49, %s5621_s12  ;;  %v2145_v49 = vsel %vm1838_vm4, %v6552_v5, %v7136_v42 }
 0x12e   : > { %v1711_v0 = vpop.permute.xlu1 %1710 }
 0x12f   : > { %5037 = vmatprep.mubr.msk.bf16.mxu1 %vm6392_vm5, %v1711_v0  ;;  %v1713_v31 = vpop.permute.xlu0 %1712  ;;  %v1215_v0 = vor.u32 %v1213_v16, %v9798_v44  ;;  %v1217_v16 = vor.u32 %v1216_v20, %v9799_v57  ;;  %v9586_v20 = vshll.u32 %v7148_v30, 16  ;;  %v5488_v44 = vld [vmem:[%s5716_s23 + $0x8] sm:$0xff]  }
 0x130   : > { %3665 = vmatmul.mubr.bf16.vlgmr.msra.gmra.mxu1 %v2287_v13 }
 0x131   : > { %5039 = vmatprep.mubr.msk.bf16.mxu1 %vm6392_vm5, %v1713_v31  ;;  %1618 = vrot.lane.b32.xlu1 %v7003_v8, %s5621_s12  ;;  %v9800_v31 = vshll.u32 %v6604_v55, 16  ;;  %v7189_v38 = vsel %vm6455_vm7, %v1215_v0, 0  ;;  %v2289_v0 = vsel %vm1838_vm4, %v5488_v44, %v6618_v12 }
 0x132   : > { %v1454_v33 = vpop.permute.xlu1 %1453  ;;  %1620 = vrot.lane.b32.xlu0 %v7006_v54, %s5621_s12  ;;  %3248 = vmatmul.mubr.bf16.gmra.mxu0 %v1904_v56  ;;  %9801 = vst [vmem:[#allocation77_spill] sm:$0xff] %v7189_v38  ;;  %v902_v56 = vrot.slane %v9582_v60, 7 }
 0x133   : > { %v1218_v13 = vrot.slane %v9800_v31, 1  ;;  %3255 = vmatprep.mubr.bf16.mxu0 %v2145_v49  ;;  %v1715_v14 = vpop.permute.xlu0 %1714  ;;  %v909_v49 = vrot.slane %v9583_v53, 7 }
 0x134   : > { %v2425_v26 = vsel %vm1838_vm4, %v5979_v37, %v1715_v14  ;;  %v1908_v37 = vsel %vm1838_vm4, %v6350_v9, %v1454_v33  ;;  %v905_v12 = vor.u32 %v9585_v39, %v902_v56  ;;  %v7225_v33 = vld [vmem:[%s5716_s23 + $0x140] sm:$0xff]  }
 0x135   : > { %1491 = vrot.lane.b32.xlu1 %v7173_v43, %s5621_s12  ;;  %v7207_v57 = vsel %vm1160_vm3, %v1217_v16, %v1218_v13  ;;  %v912_v9 = vor.u32 %v9586_v20, %v909_v49  ;;  %v9803_v16 = vshll.u32 %v6663_v21, 16  ;;  %v9805_v20 = vshrl.u32 %v6663_v21, 16 }
 0x136   : > { %v7193_v35 = vpop.permute.xlu1 %1582  ;;  %1493 = vrot.lane.b32.xlu0 %v7179_v52, %s5621_s12  ;;  %9802 = vst [vmem:[#allocation78_spill] sm:$0xff] %v7207_v57  ;;  %v7239_v49 = vsel %vm5744_vm2, 0, %v905_v12  ;;  %v9806_v12 = vshll.u32 %v6679_v58, 16 }
 0x137   : > { %v7211_v31 = vpop.permute.xlu0 %1584  ;;  %v2148_v14 = vsel %vm1838_vm4, %v6612_v25, %v7193_v35  ;;  %v1221_v44 = vrot.slane %v9803_v16, 1 }
 0x138   : > { %3673 = vmatmul.mubr.bf16.gmra.mxu1 %v2289_v0  ;;  %v5489_v0 = vld [vmem:[%s5716_s23 + $0x10] sm:$0xff]  }
 0x139   : > { %3680 = vmatprep.mubr.bf16.mxu1 %v2425_v26  ;;  %1752 = vrot.lane.b32.xlu1 %v7189_v38, %s5621_s12  ;;  %v7230_v26 = vld [vmem:[%s5716_s23 + $0x148] sm:$0xff]   ;;  %v2291_v53 = vsel %vm1838_vm4, %v5489_v0, %v6668_v24  ;;  %v9593_v24 = vshrl.u32 %v7225_v33, 16  ;;  %v1223_v38 = vrot.slane %v9806_v12, 1  ;;  %v5490_v12 = vld [vmem:[%s5716_s23 + $0x18] sm:$0xff]  }
 0x13a   : > { %v1456_v60 = vpop.permute.xlu1 %1455  ;;  %1754 = vrot.lane.b32.xlu0 %v7207_v57, %s5621_s12  ;;  %3256 = vmatmul.mubr.bf16.gmra.mxu0 %v1908_v37  ;;  %v9804_v37 = vshrl.u32 %v6604_v55, 16  ;;  %v1222_v57 = vor.u32 %v1221_v44, %v9805_v20  ;;  %v9594_v4 = vshrl.u32 %v7230_v26, 16  ;;  %v9596_v20 = vshll.u32 %v7230_v26, 16 }
 0x13b   : > { %3263 = vmatprep.mubr.bf16.mxu0 %v2148_v14  ;;  %v1458_v18 = vpop.permute.xlu0 %1457  ;;  %v7246_v14 = vsel %vm613_vm0, %v902_v56, %v912_v9  ;;  %v1912_v55 = vsel %vm1838_vm4, %v6416_v50, %v1456_v60  ;;  %v917_v50 = vrot.slane %v9593_v24, 7  ;;  %v9595_v60 = vshll.u32 %v7225_v33, 16  ;;  %v7301_v24 = vld [vmem:[%s5716_s23 + $0x158] sm:$0xff]  }
 0x13c   : > { %v1220_v16 = vor.u32 %v1218_v13, %v9804_v37  ;;  %v2151_v13 = vsel %vm1838_vm4, %v6627_v17, %v7211_v31  ;;  %v7275_v56 = vsel %vm1160_vm3, %v1222_v57, %v1223_v38  ;;  %v7289_v37 = vld [vmem:[%s5716_s23 + $0x150] sm:$0xff]  }
 0x13d   : > { %1622 = vrot.lane.b32.xlu1 %v7076_v48, %s5621_s12  ;;  %9808 = vst [vmem:[#allocation80_spill] sm:$0xff] %v7275_v56  ;;  %v920_v57 = vor.u32 %v9595_v60, %v917_v50 }
 0x13e   : > { %v1717_v39 = vpop.permute.xlu1 %1716  ;;  %1624 = vrot.lane.b32.xlu0 %v7086_v40, %s5621_s12  ;;  %v7267_v21 = vsel %vm6455_vm7, %v1220_v16, 0  ;;  %v9809_v16 = vshll.u32 %v6738_v22, 16 }
 0x13f   : > { %v2429_v0 = vsel %vm1838_vm4, %v6481_v41, %v1717_v39  ;;  %9807 = vst [vmem:[#allocation79_spill] sm:$0xff] %v7267_v21  ;;  %v924_v39 = vrot.slane %v9594_v4, 7  ;;  %v1916_v4 = vsel %vm1838_vm4, %v6490_v19, %v1458_v18  ;;  %v9601_v19 = vshrl.u32 %v7289_v37, 16 }
 0x140   : > { %3681 = vmatmul.mubr.bf16.gmra.mxu1 %v2291_v53  ;;  %v1719_v53 = vpop.permute.xlu0 %1718 }
 0x141   : > { %3688 = vmatprep.mubr.bf16.mxu1 %v2429_v0  ;;  %1495 = vrot.lane.b32.xlu1 %v7239_v49, %s5621_s12  ;;  %v2433_v9 = vsel %vm1838_vm4, %v5983_v36, %v1719_v53  ;;  %v1226_v0 = vrot.slane %v9809_v16, 1  ;;  %v927_v53 = vor.u32 %v9596_v20, %v924_v39  ;;  %v9810_v39 = vshrl.u32 %v6679_v58, 16 }
 0x142   : > { %v7263_v41 = vpop.permute.xlu1 %1586  ;;  %1497 = vrot.lane.b32.xlu0 %v7246_v14, %s5621_s12  ;;  %3264 = vmatmul.mubr.bf16.gmra.mxu0 %v1912_v55  ;;  %v2293_v55 = vsel %vm1838_vm4, %v5490_v12, %v6720_v2  ;;  %v7312_v2 = vsel %vm5744_vm2, 0, %v920_v57  ;;  %v9812_v12 = vshrl.u32 %v6738_v22, 16  ;;  %v9813_v57 = vshll.u32 %v6754_v47, 16 }
 0x143   : > { %3271 = vmatprep.mubr.bf16.mxu0 %v2151_v13  ;;  %v2154_v60 = vsel %vm1838_vm4, %v6687_v23, %v7263_v41  ;;  %v1225_v16 = vor.u32 %v1223_v38, %v9810_v39  ;;  %v9600_v36 = vshrl.u32 %v7301_v24, 16  ;;  %v932_v22 = vrot.slane %v9601_v19, 7  ;;  %v5492_v19 = vld [vmem:[%s5716_s23 + $0x28] sm:$0xff]  }
 0x144   : > { %v7296_v13 = vpop.permute.xlu0 %1588  ;;  %v1228_v20 = vrot.slane %v9813_v57, 1  ;;  %v9603_v38 = vshll.u32 %v7289_v37, 16  ;;  %v9817_v57 = vld [vmem:[#allocation55_spill] sm:$0xff] }
 0x145   : > { %1756 = vrot.lane.b32.xlu1 %v7267_v21, %s5621_s12 }
 0x146   : > { %v1460_v44 = vpop.permute.xlu1 %1459  ;;  %1758 = vrot.lane.b32.xlu0 %v7275_v56, %s5621_s12 }
 0x148   : > { %3689 = vmatmul.mubr.bf16.gmra.mxu1 %v2293_v55  ;;  %v1227_v55 = vor.u32 %v1226_v0, %v9812_v12  ;;  %v1462_v56 = vpop.permute.xlu0 %1461  ;;  %v1920_v12 = vsel %vm1838_vm4, %v6537_v15, %v1460_v44  ;;  %v9818_v15 = vshll.u32 %v6809_v7, 16 }
 0x149   : > { %3696 = vmatprep.mubr.bf16.mxu1 %v2433_v9  ;;  %1626 = vrot.lane.b32.xlu1 %v7141_v63, %s5621_s12  ;;  %v7320_v9 = vsel %vm613_vm0, %v917_v50, %v927_v53  ;;  %v5491_v50 = vld [vmem:[%s5716_s23 + $0x20] sm:$0xff]  }
 0x14a   : > { %1628 = vrot.lane.b32.xlu0 %v7148_v30, %s5621_s12  ;;  %3272 = vmatmul.mubr.bf16.gmra.mxu0 %v1916_v4  ;;  %v1721_v18 = vpop.permute.xlu1 %1720  ;;  %9811 = vst [vmem:[#allocation81_spill] sm:$0xff] %v7320_v9  ;;  %v7333_v4 = vsel %vm6455_vm7, %v1225_v16, 0  ;;  %v7346_v39 = vsel %vm1160_vm3, %v1227_v55, %v1228_v20  ;;  %v939_v16 = vrot.slane %v9600_v36, 7  ;;  %v935_v55 = vor.u32 %v9603_v38, %v932_v22  ;;  %v7370_v36 = vld [vmem:[%s5716_s23 + $0x160] sm:$0xff]  }
 0x14b   : > { %3279 = vmatprep.mubr.bf16.mxu0 %v2154_v60  ;;  %v2437_v58 = vsel %vm1838_vm4, %v6562_v34, %v1721_v18  ;;  %9814 = vst [vmem:[#allocation82_spill] sm:$0xff] %v7333_v4  ;;  %v9815_v60 = vld [vmem:[#allocation59_spill] sm:$0xff]  ;;  %v9608_v18 = vshll.u32 %v7301_v24, 16  ;;  %v1231_v44 = vrot.slane %v9818_v15, 1  ;;  %v9819_v34 = vld [vmem:[#allocation26_spill] sm:$0xff] }
 0x14c   : > { %v2295_v0 = vsel %vm1838_vm4, %v5491_v50, %v9815_v60  ;;  %9816 = vst [vmem:[#allocation59_spill] sm:$0xff] %v7346_v39  ;;  %v2157_v50 = vsel %vm1838_vm4, %v9817_v57, %v7296_v13  ;;  %v5484_v60 = vld [vmem:[%s9385_s1 + $0x100] sm:$0xff]   ;;  %v2297_v38 = vsel %vm1838_vm4, %v5492_v19, %v9819_v34  ;;  %v9614_v19 = vshrl.u32 %v7370_v36, 16 }
 0x14d   : > { %1499 = vrot.lane.b32.xlu1 %v7312_v2, %s5621_s12  ;;  %5180 = vmatprep.subr.bf16.mxu0 %v5484_v60 }
 0x14e   : > { %1501 = vrot.lane.b32.xlu0 %v7320_v9, %s5621_s12  ;;  %v7343_v53 = vpop.permute.xlu1 %1590  ;;  %5181 = vmatpush3.bf16.msra.mxu0 %v5484_v60  ;;  %v9823_v60 = vshrl.u32 %v6809_v7, 16 }
 0x150   : > { %3697 = vmatmul.mubr.bf16.gmra.mxu1 %v2295_v0  ;;  %v1723_v0 = vpop.permute.xlu0 %1722 }
 0x151   : > { %3704 = vmatprep.mubr.bf16.mxu1 %v2437_v58  ;;  %1760 = vrot.lane.b32.xlu1 %v7333_v4, %s5621_s12  ;;  %v942_v58 = vor.u32 %v9608_v18, %v939_v16  ;;  %v7378_v4 = vld [vmem:[%s5716_s23 + $0x168] sm:$0xff]   ;;  %v7384_v16 = vsel %vm5744_vm2, 0, %v935_v55 }
 0x152   : > { %1762 = vrot.lane.b32.xlu0 %v7346_v39, %s5621_s12  ;;  %3280 = vmatmul.mubr.bf16.gmra.mxu0 %v1920_v12  ;;  %v1464_v39 = vpop.permute.xlu1 %1463  ;;  %v9820_v12 = vld [vmem:[#allocation16_spill] sm:$0xff]  ;;  %v9613_v9 = vshrl.u32 %v7378_v4, 16 }
 0x153   : > { %3287 = vmatprep.mubr.bf16.mxu0 %v2157_v50  ;;  %v2441_v15 = vsel %vm1838_vm4, %v9820_v12, %v1723_v0  ;;  %v9821_v50 = vshrl.u32 %v6754_v47, 16  ;;  %v7394_v21 = vsel %vm613_vm0, %v932_v22, %v942_v58  ;;  %v1232_v0 = vor.u32 %v1231_v44, %v9823_v60 }
 0x154   : > { %v7391_v18 = vpop.permute.xlu0 %1592  ;;  %9822 = vst [vmem:[#allocation55_spill] sm:$0xff] %v7394_v21  ;;  %v9824_v12 = vshll.u32 %v6824_v1, 16  ;;  %v1924_v47 = vsel %vm1838_vm4, %v6552_v5, %v1462_v56  ;;  %v947_v22 = vrot.slane %v9614_v19, 7  ;;  %v9619_v5 = vshll.u32 %v7370_v36, 16  ;;  %v9830_v19 = vld [vmem:[#allocation63_spill] sm:$0xff] }
 0x155   : > { %1630 = vrot.lane.b32.xlu1 %v7225_v33, %s5621_s12  ;;  %v1230_v34 = vor.u32 %v1228_v20, %v9821_v50  ;;  %v9825_v20 = vld [vmem:[#allocation58_spill] sm:$0xff]  ;;  %v954_v44 = vrot.slane %v9613_v9, 7  ;;  %v5493_v9 = vld [vmem:[%s5716_s23 + $0x30] sm:$0xff]  }
 0x156   : > { %1632 = vrot.lane.b32.xlu0 %v7230_v26, %s5621_s12  ;;  %v1233_v55 = vrot.slane %v9824_v12, 1  ;;  %v2160_v50 = vsel %vm1838_vm4, %v9825_v20, %v7343_v53  ;;  %v1725_v56 = vpop.permute.xlu1 %1724  ;;  %v950_v60 = vor.u32 %v9619_v5, %v947_v22 }
 0x157   : > { %v7410_v7 = vsel %vm6455_vm7, %v1230_v34, 0 }
 0x158   : > { %3705 = vmatmul.mubr.bf16.gmra.mxu1 %v2297_v38  ;;  %9826 = vst [vmem:[#allocation26_spill] sm:$0xff] %v7410_v7  ;;  %v7418_v38 = vsel %vm1160_vm3, %v1232_v0, %v1233_v55  ;;  %v1466_v12 = vpop.permute.xlu0 %1465  ;;  %v9829_v0 = vshll.u32 %v6875_v59, 16 }
 0x159   : > { %3712 = vmatprep.mubr.bf16.mxu1 %v2441_v15  ;;  %1503 = vrot.lane.b32.xlu1 %v7384_v16, %s5621_s12  ;;  %9827 = vst [vmem:[#allocation58_spill] sm:$0xff] %v7418_v38  ;;  %v9828_v15 = vld [vmem:[#allocation52_spill] sm:$0xff] }
 0x15a   : > { %1505 = vrot.lane.b32.xlu0 %v7394_v21, %s5621_s12  ;;  %3288 = vmatmul.mubr.bf16.gmra.mxu0 %v1924_v47  ;;  %v2445_v34 = vsel %vm1838_vm4, %v9828_v15, %v1725_v56  ;;  %v1236_v47 = vrot.slane %v9829_v0, 1  ;;  %v7436_v58 = vpop.permute.xlu1 %1594  ;;  %v1928_v56 = vsel %vm1838_vm4, %v6612_v25, %v1464_v39  ;;  %v9832_v15 = vld [vmem:[#allocation60_spill] sm:$0xff]  ;;  %v9835_v0 = vshll.u32 %v6887_v51, 16 }
 0x15b   : > { %3295 = vmatprep.mubr.bf16.mxu0 %v2160_v50  ;;  %v2299_v50 = vsel %vm1838_vm4, %v5493_v9, %v9830_v19  ;;  %v2163_v5 = vsel %vm1838_vm4, %v9832_v15, %v7391_v18  ;;  %v7449_v9 = vsel %vm5744_vm2, 0, %v950_v60  ;;  %v9833_v19 = vshrl.u32 %v6824_v1, 16  ;;  %v9836_v60 = vld [vmem:[#allocation19_spill] sm:$0xff] }
 0x15c   : > { %v1727_v25 = vpop.permute.xlu0 %1726 }
 0x15d   : > { %1764 = vrot.lane.b32.xlu1 %v7410_v7, %s5621_s12  ;;  %v9831_v7 = vshll.u32 %v7378_v4, 16  ;;  %v2449_v1 = vsel %vm1838_vm4, %v9836_v60, %v1727_v25  ;;  %v9841_v25 = vshll.u32 %v6938_v11, 16 }
 0x15e   : > { %1766 = vrot.lane.b32.xlu0 %v7418_v38, %s5621_s12  ;;  %v1468_v10 = vpop.permute.xlu1 %1467 }
 0x15f   : > { %v957_v21 = vor.u32 %v9831_v7, %v954_v44  ;;  %v1235_v7 = vor.u32 %v1233_v55, %v9833_v19  ;;  %v9834_v44 = vshrl.u32 %v6875_v59, 16  ;;  %v5494_v59 = vld [vmem:[%s5716_s23 + $0x38] sm:$0xff]  }
 0x160   : > { %3713 = vmatmul.mubr.bf16.gmra.mxu1 %v2299_v50  ;;  %v1238_v50 = vrot.slane %v9835_v0, 1 }
 0x161   : > { %3720 = vmatprep.mubr.bf16.mxu1 %v2445_v34  ;;  %1634 = vrot.lane.b32.xlu1 %v7289_v37, %s5621_s12  ;;  %v7456_v39 = vsel %vm613_vm0, %v947_v22, %v957_v21  ;;  %v1237_v34 = vor.u32 %v1236_v47, %v9834_v44  ;;  %v7468_v55 = vsel %vm6455_vm7, %v1235_v7, 0  ;;  %v2301_v21 = vsel %vm1838_vm4, %v5494_v59, %v6898_v28  ;;  %v7475_v22 = vpop.permute.xlu0 %1596 }
 0x162   : > { %1636 = vrot.lane.b32.xlu0 %v7301_v24, %s5621_s12  ;;  %3296 = vmatmul.mubr.bf16.gmra.mxu0 %v1928_v56  ;;  %9837 = vst [vmem:[#allocation63_spill] sm:$0xff] %v7468_v55  ;;  %v1932_v47 = vsel %vm1838_vm4, %v6627_v17, %v1466_v12  ;;  %v9839_v56 = vld [vmem:[#allocation27_spill] sm:$0xff]  ;;  %v1729_v28 = vpop.permute.xlu1 %1728  ;;  %v9840_v17 = vshll.u32 %v6950_v61, 16  ;;  %v1241_v44 = vrot.slane %v9841_v25, 1  ;;  %v9846_v25 = vld [vmem:[#allocation30_spill] sm:$0xff] }
 0x163   : > { %3303 = vmatprep.mubr.bf16.mxu0 %v2163_v5  ;;  %v7478_v5 = vsel %vm1160_vm3, %v1237_v34, %v1238_v50  ;;  %v2166_v19 = vsel %vm1838_vm4, %v9839_v56, %v7436_v58  ;;  %v9842_v34 = vld [vmem:[#allocation56_spill] sm:$0xff] }
 0x164   : > { %9838 = vst [vmem:[#allocation60_spill] sm:$0xff] %v7478_v5  ;;  %v1243_v12 = vrot.slane %v9840_v17, 1  ;;  %v2453_v0 = vsel %vm1838_vm4, %v9842_v34, %v1729_v28  ;;  %v9844_v17 = vshrl.u32 %v6950_v61, 16  ;;  %v1936_v28 = vsel %vm1838_vm4, %v6687_v23, %v1468_v10  ;;  %v9850_v23 = vld [vmem:[#allocation45_spill] sm:$0xff] }
 0x165   : > { %1507 = vrot.lane.b32.xlu1 %v7449_v9, %s5621_s12  ;;  %v1470_v7 = vpop.permute.xlu0 %1469  ;;  %v9849_v61 = vshll.u32 %v7003_v8, 16  ;;  %v9851_v10 = vshrl.u32 %v6938_v11, 16  ;;  %v9855_v11 = vshll.u32 %v7086_v40, 16 }
 0x166   : > { %1509 = vrot.lane.b32.xlu0 %v7456_v39, %s5621_s12  ;;  %v1245_v60 = vor.u32 %v1243_v12, %v9844_v17 }
 0x168   : > { %3721 = vmatmul.mubr.bf16.gmra.mxu1 %v2301_v21  ;;  %v5495_v21 = vld [vmem:[%s5716_s23 + $0x40] sm:$0xff]  }
 0x169   : > { %3728 = vmatprep.mubr.bf16.mxu1 %v2449_v1  ;;  %1768 = vrot.lane.b32.xlu1 %v7468_v55, %s5621_s12  ;;  %v9843_v1 = vshrl.u32 %v6887_v51, 16  ;;  %v2169_v51 = vsel %vm1838_vm4, %v9846_v25, %v7475_v22  ;;  %v1731_v34 = vpop.permute.xlu0 %1730 }
 0x16a   : > { %1770 = vrot.lane.b32.xlu0 %v7478_v5, %s5621_s12  ;;  %3304 = vmatmul.mubr.bf16.gmra.mxu0 %v1932_v47  ;;  %v2303_v47 = vsel %vm1838_vm4, %v5495_v21, %v6940_v46  ;;  %v9848_v46 = vshll.u32 %v7006_v54, 16  ;;  %v1246_v21 = vrot.slane %v9849_v61, 1  ;;  %v9853_v61 = vshrl.u32 %v7006_v54, 16 }
 0x16b   : > { %3311 = vmatprep.mubr.bf16.mxu0 %v2166_v19  ;;  %v1240_v59 = vor.u32 %v1238_v50, %v9843_v1  ;;  %v7504_v19 = vpop.permute.xlu1 %1598  ;;  %v9847_v50 = vld [vmem:[#allocation43_spill] sm:$0xff] }
 0x16c   : > { %v1248_v1 = vrot.slane %v9848_v46, 1  ;;  %v7533_v46 = vsel %vm6455_vm7, %v1245_v60, 0  ;;  %v9857_v60 = vld [vmem:[#allocation21_spill] sm:$0xff] }
 0x16d   : > { %1638 = vrot.lane.b32.xlu1 %v7370_v36, %s5621_s12 }
 0x16e   : > { %1640 = vrot.lane.b32.xlu0 %v7378_v4, %s5621_s12 }
 0x16f   : > { %v7508_v5 = vpop.f32.mrf.mxu1  ;;  %v1472_v38 = vpop.permute.xlu1 %1471 }
 0x170   : > { %9845 = vst [vmem:[#allocation27_spill] sm:$0xff] %v7508_v5  ;;  %3729 = vmatmul.mubr.bf16.gmra.mxu1 %v2303_v47  ;;  %v7523_v47 = vsel %vm6455_vm7, %v1240_v59, 0 }
 0x171   : > { %3736 = vmatprep.mubr.bf16.mxu1 %v2453_v0  ;;  %1511 = vrot.lane.b32.xlu1 %v9847_v50, %s5621_s12  ;;  %v3507_v17 = vpop.f32.mrf.mxu1  ;;  %v1242_v0 = vor.u32 %v1241_v44, %v9851_v10  ;;  %v1253_v44 = vrot.slane %v9855_v11, 1 }
 0x172   : > { %1513 = vrot.lane.b32.xlu0 %v9850_v23, %s5621_s12  ;;  %v7529_v5 = vpop.f32.mrf.mxu0  ;;  %3312 = vmatmul.mubr.bf16.gmra.mxu0 %v1936_v28  ;;  %v1250_v17 = vor.u32 %v1248_v1, %v9853_v61  ;;  %v9856_v28 = vshll.u32 %v7076_v48, 16  ;;  %v2457_v23 = vsel %vm1838_vm4, %v9857_v60, %v1731_v34 }
 0x173   : > { %9852 = vst [vmem:[#allocation30_spill] sm:$0xff] %v7529_v5  ;;  %v7537_v59 = vpop.f32.mrf.mxu1  ;;  %3319 = vmatprep.mubr.bf16.mxu0 %v2169_v51  ;;  %v7548_v54 = vsel %vm1160_vm3, %v1242_v0, %v1243_v12  ;;  %v9860_v12 = vshrl.u32 %v7086_v40, 16  ;;  %v9864_v40 = vshll.u32 %v7141_v63, 16 }
 0x174   : > { %9854 = vst [vmem:[#allocation43_spill] sm:$0xff] %v7537_v59  ;;  %v3123_v55 = vpop.f32.mrf.mxu0  ;;  %v1251_v10 = vrot.slane %v9856_v28, 1  ;;  %v5496_v59 = vld [vmem:[%s5716_s23 + $0x48] sm:$0xff]   ;;  %v7559_v28 = vpop.permute.xlu0 %1600 }
 0x175   : > { %1772 = vrot.lane.b32.xlu1 %v7523_v47, %s5621_s12  ;;  %v3510_v5 = vpop.f32.mrf.mxu1  ;;  %v9858_v55 = vshrl.u32 %v7003_v8, 16  ;;  %v2305_v11 = vsel %vm1838_vm4, %v5496_v59, %v6984_v45  ;;  %v1255_v34 = vor.u32 %v1253_v44, %v9860_v12  ;;  %v1940_v8 = vsel %vm1838_vm4, %v9817_v57, %v1470_v7 }
 0x176   : > { %1776 = vrot.lane.b32.xlu0 %v7533_v46, %s5621_s12  ;;  %v7554_v61 = vpop.f32.mrf.mxu0  ;;  %v7563_v5 = vsel %vm6455_vm7, %v1250_v17, 0  ;;  %v9863_v17 = vshll.u32 %v7148_v30, 16  ;;  %v1256_v12 = vrot.slane %v9864_v40, 1  ;;  %v9865_v57 = vshrl.u32 %v7076_v48, 16 }
 0x177   : > { %v1247_v51 = vor.u32 %v1246_v21, %v9858_v55  ;;  %9859 = vst [vmem:[#allocation21_spill] sm:$0xff] %v7554_v61  ;;  %v7567_v0 = vpop.f32.mrf.mxu1  ;;  %v9862_v55 = vld [vmem:[#allocation34_spill] sm:$0xff] }
 0x178   : > { %9861 = vst [vmem:[#allocation83_spill] sm:$0xff] %v7567_v0  ;;  %3737 = vmatmul.mubr.bf16.gmra.mxu1 %v2305_v11  ;;  %v3126_v21 = vpop.f32.mrf.mxu0  ;;  %v2172_v45 = vsel %vm1838_vm4, %v9862_v55, %v7504_v19  ;;  %v1258_v59 = vrot.slane %v9863_v17, 1  ;;  %v1252_v7 = vor.u32 %v1251_v10, %v9865_v57  ;;  %v7591_v17 = vsel %vm6455_vm7, %v1255_v34, 0  ;;  %v1474_v61 = vpop.permute.xlu0 %1473  ;;  %v9870_v57 = vld [vmem:[#allocation23_spill] sm:$0xff] }
 0x179   : > { %3744 = vmatprep.mubr.bf16.mxu1 %v2457_v23  ;;  %1774 = vrot.lane.b32.xlu1 %v7548_v54, %s5621_s12  ;;  %v3515_v0 = vpop.f32.mrf.mxu1  ;;  %v7581_v11 = vsel %vm1160_vm3, %v1247_v51, %v1248_v1  ;;  %v1733_v21 = vpop.permute.xlu1 %1732  ;;  %v9869_v10 = vshll.u32 %v7225_v33, 16 }
 0x17a   : > { %1780 = vrot.lane.b32.xlu0 %v7563_v5, %s5621_s12  ;;  %v7587_v23 = vpop.f32.mrf.mxu0  ;;  %3320 = vmatmul.mubr.bf16.gmra.mxu0 %v1940_v8  ;;  %v9867_v0 = vshrl.u32 %v7148_v30, 16  ;;  %v7604_v34 = vsel %vm1160_vm3, %v1252_v7, %v1253_v44  ;;  %v9871_v30 = vshrl.u32 %v7141_v63, 16  ;;  %v9873_v44 = vshll.u32 %v7230_v26, 16 }
 0x17b   : > { %9866 = vst [vmem:[#allocation34_spill] sm:$0xff] %v7587_v23  ;;  %v7595_v1 = vpop.f32.mrf.mxu1  ;;  %3327 = vmatprep.mubr.bf16.mxu0 %v2172_v45  ;;  %v1261_v8 = vrot.slane %v9869_v10, 1  ;;  %v2461_v23 = vsel %vm1838_vm4, %v9870_v57, %v1733_v21  ;;  %v1944_v63 = vsel %vm1838_vm4, %v9825_v20, %v1472_v38  ;;  %v9877_v20 = vshrl.u32 %v7225_v33, 16 }
 0x17c   : > { %v1260_v40 = vor.u32 %v1258_v59, %v9867_v0  ;;  %9868 = vst [vmem:[#allocation84_spill] sm:$0xff] %v7595_v1  ;;  %v3131_v51 = vpop.f32.mrf.mxu0  ;;  %v1257_v45 = vor.u32 %v1256_v12, %v9871_v30  ;;  %v1263_v7 = vrot.slane %v9873_v44, 1  ;;  %v9875_v30 = vld [vmem:[#allocation64_spill] sm:$0xff] }
 0x17d   : > { %1778 = vrot.lane.b32.xlu1 %v7581_v11, %s5621_s12  ;;  %v3518_v48 = vpop.f32.mrf.mxu1  ;;  %v5497_v51 = vld [vmem:[%s5716_s23 + $0x50] sm:$0xff]   ;;  %v7615_v1 = vpop.permute.xlu1 %1602  ;;  %v1262_v38 = vor.u32 %v1261_v8, %v9877_v20  ;;  %v9882_v8 = vld [vmem:[#allocation28_spill] sm:$0xff] }
 0x17e   : > { %1784 = vrot.lane.b32.xlu0 %v7591_v17, %s5621_s12  ;;  %v7610_v0 = vpop.f32.mrf.mxu0  ;;  %v2307_v48 = vsel %vm1838_vm4, %v5497_v51, %v7023_v6  ;;  %v7619_v21 = vsel %vm6455_vm7, %v1260_v40, 0  ;;  %v2175_v6 = vsel %vm1838_vm4, %v9875_v30, %v7559_v28  ;;  %v9876_v40 = vshrl.u32 %v7230_v26, 16 }
 0x17f   : > { %9872 = vst [vmem:[#allocation23_spill] sm:$0xff] %v7610_v0  ;;  %v7623_v10 = vpop.f32.mrf.mxu1  ;;  %v7635_v44 = vsel %vm1160_vm3, %v1257_v45, %v1258_v59  ;;  %v9881_v45 = vshll.u32 %v7289_v37, 16  ;;  %v7656_v20 = vsel %vm1160_vm3, %v1262_v38, %v1263_v7 }
 0x180   : > { %9874 = vst [vmem:[#allocation85_spill] sm:$0xff] %v7623_v10  ;;  %3745 = vmatmul.mubr.bf16.gmra.mxu1 %v2307_v48  ;;  %v3134_v12 = vpop.f32.mrf.mxu0  ;;  %v1265_v51 = vor.u32 %v1263_v7, %v9876_v40  ;;  %9883 = vst [vmem:[#allocation28_spill] sm:$0xff] %v7656_v20  ;;  %v9886_v7 = vld [vmem:[#allocation38_spill] sm:$0xff]  ;;  %v9887_v10 = vshrl.u32 %v7289_v37, 16 }
 0x181   : > { %3752 = vmatprep.mubr.bf16.mxu1 %v2461_v23  ;;  %1782 = vrot.lane.b32.xlu1 %v7604_v34, %s5621_s12  ;;  %v3523_v0 = vpop.f32.mrf.mxu1  ;;  %v1735_v23 = vpop.permute.xlu0 %1734  ;;  %v2178_v38 = vsel %vm1838_vm4, %v9886_v7, %v7615_v1 }
 0x182   : > { %1788 = vrot.lane.b32.xlu0 %v7619_v21, %s5621_s12  ;;  %v7641_v48 = vpop.f32.mrf.mxu0  ;;  %3328 = vmatmul.mubr.bf16.gmra.mxu0 %v1944_v63  ;;  %v7645_v12 = vsel %vm6455_vm7, %v1265_v51, 0  ;;  %v1266_v0 = vrot.slane %v9881_v45, 1  ;;  %v1476_v40 = vpop.permute.xlu1 %1475  ;;  %v2465_v63 = vsel %vm1838_vm4, %v9882_v8, %v1735_v23  ;;  %v1948_v23 = vsel %vm1838_vm4, %v9832_v15, %v1474_v61 }
 0x183   : > { %9878 = vst [vmem:[#allocation64_spill] sm:$0xff] %v7641_v48  ;;  %9879 = vst [vmem:[#allocation86_spill] sm:$0xff] %v7645_v12  ;;  %v7647_v26 = vpop.f32.mrf.mxu1  ;;  %3335 = vmatprep.mubr.bf16.mxu0 %v2175_v6  ;;  %v5498_v6 = vld [vmem:[%s5716_s23 + $0x58] sm:$0xff]  }
 0x184   : > { %9880 = vst [vmem:[#allocation87_spill] sm:$0xff] %v7647_v26  ;;  %v3139_v59 = vpop.f32.mrf.mxu0 }
 0x185   : > { %1786 = vrot.lane.b32.xlu1 %v7635_v44, %s5621_s12  ;;  %v3526_v33 = vpop.f32.mrf.mxu1  ;;  %v2309_v59 = vsel %vm1838_vm4, %v5498_v6, %v7065_v27  ;;  %v7665_v45 = vpop.permute.xlu0 %1604  ;;  %v1267_v27 = vor.u32 %v1266_v0, %v9887_v10  ;;  %v9888_v6 = vshll.u32 %v7301_v24, 16  ;;  %v9892_v10 = vld [vmem:[#allocation29_spill] sm:$0xff] }
 0x186   : > { %1792 = vrot.lane.b32.xlu0 %v7645_v12, %s5621_s12  ;;  %v7660_v51 = vpop.f32.mrf.mxu0  ;;  %v1737_v15 = vpop.permute.xlu1 %1736 }
 0x187   : > { %9884 = vst [vmem:[#allocation88_spill] sm:$0xff] %v7660_v51  ;;  %v7667_v26 = vpop.f32.mrf.mxu1  ;;  %v2469_v0 = vsel %vm1838_vm4, %v9892_v10, %v1737_v15  ;;  %v9896_v15 = vshrl.u32 %v7301_v24, 16  ;;  %v9900_v24 = vshll.u32 %v7370_v36, 16 }
 0x188   : > { %9885 = vst [vmem:[#allocation89_spill] sm:$0xff] %v7667_v26  ;;  %3753 = vmatmul.mubr.bf16.gmra.mxu1 %v2309_v59  ;;  %v3142_v33 = vpop.f32.mrf.mxu0  ;;  %v1268_v26 = vrot.slane %v9888_v6, 1 }
 0x189   : > { %3760 = vmatprep.mubr.bf16.mxu1 %v2465_v63  ;;  %1790 = vrot.lane.b32.xlu1 %v7656_v20, %s5621_s12  ;;  %v3531_v59 = vpop.f32.mrf.mxu1  ;;  %v1478_v48 = vpop.permute.xlu0 %1477 }
 0x18a   : > { %v7680_v51 = vpop.f32.mrf.mxu0  ;;  %3336 = vmatmul.mubr.bf16.gmra.mxu0 %v1948_v23  ;;  %v7683_v61 = vsel %vm1160_vm3, %v1267_v27, %v1268_v26  ;;  %v5499_v59 = vld [vmem:[%s5716_s23 + $0x60] sm:$0xff]   ;;  %v7696_v27 = vpop.permute.xlu1 %1606 }
 0x18b   : > { %9889 = vst [vmem:[#allocation38_spill] sm:$0xff] %v7680_v51  ;;  %9890 = vst [vmem:[#allocation90_spill] sm:$0xff] %v7683_v61  ;;  %v7685_v33 = vpop.f32.mrf.mxu1  ;;  %3343 = vmatprep.mubr.bf16.mxu0 %v2178_v38  ;;  %v2311_v23 = vsel %vm1838_vm4, %v5499_v59, %v7114_v32  ;;  %v1952_v38 = vsel %vm1838_vm4, %v9839_v56, %v1476_v40 }
 0x18c   : > { %9891 = vst [vmem:[#allocation91_spill] sm:$0xff] %v7685_v33  ;;  %v3147_v63 = vpop.f32.mrf.mxu0 }
 0x18d   : > { %1794 = vrot.lane.b32.xlu1 %v7683_v61, %s5621_s12  ;;  %v3534_v37 = vpop.f32.mrf.mxu1  ;;  %v1739_v59 = vpop.permute.xlu0 %1738 }
 0x18e   : > { %v7691_v6 = vpop.f32.mrf.mxu0  ;;  %v9895_v37 = vld [vmem:[#allocation67_spill] sm:$0xff] }
 0x18f   : > { %9893 = vst [vmem:[#allocation29_spill] sm:$0xff] %v7691_v6  ;;  %v7698_v51 = vpop.f32.mrf.mxu1  ;;  %v2181_v33 = vsel %vm1838_vm4, %v9895_v37, %v7665_v45  ;;  %v1270_v6 = vor.u32 %v1268_v26, %v9896_v15  ;;  %v1480_v26 = vpop.permute.xlu1 %1479 }
 0x190   : > { %9894 = vst [vmem:[#allocation92_spill] sm:$0xff] %v7698_v51  ;;  %3761 = vmatmul.mubr.bf16.gmra.mxu1 %v2311_v23  ;;  %v3150_v63 = vpop.f32.mrf.mxu0  ;;  %v5500_v51 = vld [vmem:[%s5716_s23 + $0x68] sm:$0xff]  }
 0x191   : > { %3768 = vmatprep.mubr.bf16.mxu1 %v2469_v0  ;;  %v3539_v61 = vpop.f32.mrf.mxu1  ;;  %v7711_v23 = vsel %vm6455_vm7, %v1270_v6, 0  ;;  %v1271_v0 = vrot.slane %v9900_v24, 1  ;;  %v9901_v63 = vld [vmem:[#allocation33_spill] sm:$0xff]  ;;  %v2313_v6 = vsel %vm1838_vm4, %v5500_v51, %v7136_v42  ;;  %v9906_v42 = vshll.u32 %v7378_v4, 16 }
 0x192   : > { %v7707_v32 = vpop.f32.mrf.mxu0  ;;  %3344 = vmatmul.mubr.bf16.gmra.mxu0 %v1952_v38  ;;  %9898 = vst [vmem:[#allocation93_spill] sm:$0xff] %v7711_v23  ;;  %1796 = vrot.lane.b32.xlu0 %v7711_v23, %s5621_s12  ;;  %v2473_v38 = vsel %vm1838_vm4, %v9901_v63, %v1739_v59  ;;  %v9905_v59 = vshrl.u32 %v7370_v36, 16 }
 0x193   : > { %9897 = vst [vmem:[#allocation67_spill] sm:$0xff] %v7707_v32  ;;  %v7713_v56 = vpop.f32.mrf.mxu1  ;;  %3351 = vmatprep.mubr.bf16.mxu0 %v2181_v33  ;;  %v1273_v51 = vrot.slane %v9906_v42, 1  ;;  %v5501_v42 = vld [vmem:[%s5716_s23 + $0x70] sm:$0xff]  }
 0x194   : > { %9899 = vst [vmem:[#allocation94_spill] sm:$0xff] %v7713_v56  ;;  %v3155_v40 = vpop.f32.mrf.mxu0  ;;  %v7726_v56 = vpop.permute.xlu0 %1608 }
 0x195   : > { %v3542_v61 = vpop.f32.mrf.mxu1  ;;  %v1956_v40 = vsel %vm1838_vm4, %v9846_v25, %v1478_v48 }
 0x196   : > { %v7721_v15 = vpop.f32.mrf.mxu0  ;;  %v9904_v61 = vld [vmem:[#allocation69_spill] sm:$0xff] }
 0x197   : > { %9902 = vst [vmem:[#allocation33_spill] sm:$0xff] %v7721_v15  ;;  %v7728_v33 = vpop.f32.mrf.mxu1  ;;  %v2184_v32 = vsel %vm1838_vm4, %v9904_v61, %v7696_v27  ;;  %v1272_v15 = vor.u32 %v1271_v0, %v9905_v59 }
 0x198   : > { %9903 = vst [vmem:[#allocation95_spill] sm:$0xff] %v7728_v33  ;;  %3769 = vmatmul.mubr.bf16.gmra.mxu1 %v2313_v6  ;;  %v3158_v24 = vpop.f32.mrf.mxu0  ;;  %v1741_v6 = vpop.permute.xlu1 %1740 }
 0x199   : > { %3776 = vmatprep.mubr.bf16.mxu1 %v2473_v38  ;;  %v3547_v23 = vpop.f32.mrf.mxu1  ;;  %v7742_v25 = vsel %vm1160_vm3, %v1272_v15, %v1273_v51  ;;  %v1482_v38 = vpop.permute.xlu0 %1481  ;;  %v9910_v24 = vld [vmem:[#allocation39_spill] sm:$0xff] }
 0x19a   : > { %v7739_v12 = vpop.f32.mrf.mxu0  ;;  %3352 = vmatmul.mubr.bf16.gmra.mxu0 %v1956_v40  ;;  %9908 = vst [vmem:[#allocation96_spill] sm:$0xff] %v7742_v25  ;;  %1798 = vrot.lane.b32.xlu1 %v7742_v25, %s5621_s12  ;;  %v2477_v59 = vsel %vm1838_vm4, %v9910_v24, %v1741_v6  ;;  %v2315_v40 = vsel %vm1838_vm4, %v5501_v42, %v7193_v35  ;;  %v9914_v6 = vshrl.u32 %v7378_v4, 16  ;;  %v9918_v4 = vld [vmem:[#allocation42_spill] sm:$0xff] }
 0x19b   : > { %9907 = vst [vmem:[#allocation69_spill] sm:$0xff] %v7739_v12  ;;  %v7744_v48 = vpop.f32.mrf.mxu1  ;;  %3359 = vmatprep.mubr.bf16.mxu0 %v2184_v32  ;;  %v1960_v32 = vsel %vm1838_vm4, %v9862_v55, %v1480_v26 }
 0x19c   : > { %9909 = vst [vmem:[#allocation97_spill] sm:$0xff] %v7744_v48  ;;  %v3163_v36 = vpop.f32.mrf.mxu0  ;;  %v7755_v15 = vpop.permute.xlu1 %1610 }
 0x19d   : > { %v3550_v0 = vpop.f32.mrf.mxu1  ;;  %v1743_v42 = vpop.permute.xlu0 %1742 }
 0x19e   : > { %v7750_v23 = vpop.f32.mrf.mxu0  ;;  %v9913_v0 = vld [vmem:[#allocation71_spill] sm:$0xff] }
 0x19f   : > { %9911 = vst [vmem:[#allocation39_spill] sm:$0xff] %v7750_v23  ;;  %v7757_v33 = vpop.f32.mrf.mxu1  ;;  %v2187_v48 = vsel %vm1838_vm4, %v9913_v0, %v7726_v56  ;;  %v1275_v23 = vor.u32 %v1273_v51, %v9914_v6 }
 0x1a0   : > { %9912 = vst [vmem:[#allocation98_spill] sm:$0xff] %v7757_v33  ;;  %3777 = vmatmul.mubr.bf16.gmra.mxu1 %v2315_v40  ;;  %v3166_v36 = vpop.f32.mrf.mxu0  ;;  %v9920_v33 = vld [vmem:[#allocation36_spill] sm:$0xff] }
 0x1a1   : > { %3784 = vmatprep.mubr.bf16.mxu1 %v2477_v59  ;;  %v3555_v12 = vpop.f32.mrf.mxu1  ;;  %v7770_v40 = vsel %vm6455_vm7, %v1275_v23, 0  ;;  %v1484_v59 = vpop.permute.xlu1 %1483 }
 0x1a2   : > { %v7766_v35 = vpop.f32.mrf.mxu0  ;;  %3360 = vmatmul.mubr.bf16.gmra.mxu0 %v1960_v32  ;;  %9916 = vst [vmem:[#allocation99_spill] sm:$0xff] %v7770_v40  ;;  %1800 = vrot.lane.b32.xlu0 %v7770_v40, %s5621_s12  ;;  %v2481_v12 = vsel %vm1838_vm4, %v9918_v4, %v1743_v42  ;;  %v5502_v32 = vld [vmem:[%s5716_s23 + $0x78] sm:$0xff]   ;;  %v7783_v23 = vpop.permute.xlu0 %1612  ;;  %v2190_v42 = vsel %vm1838_vm4, %v7095_v3, %v7755_v15 }
 0x1a3   : > { %9915 = vst [vmem:[#allocation71_spill] sm:$0xff] %v7766_v35  ;;  %v7772_v55 = vpop.f32.mrf.mxu1  ;;  %3367 = vmatprep.mubr.bf16.mxu0 %v2187_v48  ;;  %v2317_v6 = vsel %vm1838_vm4, %v5502_v32, %v7211_v31  ;;  %v9924_v32 = vld [vmem:[#allocation41_spill] sm:$0xff] }
 0x1a4   : > { %9917 = vst [vmem:[#allocation100_spill] sm:$0xff] %v7772_v55  ;;  %v3171_v26 = vpop.f32.mrf.mxu0  ;;  %v9921_v55 = vshll.u32 %v9920_v33, 16  ;;  %v9925_v40 = vshll.u32 %v9924_v32, 16 }
 0x1a5   : > { %v3558_v36 = vpop.f32.mrf.mxu1  ;;  %v1964_v26 = vsel %vm1838_vm4, %v9875_v30, %v1482_v38 }
 0x1a6   : > { %v7778_v51 = vpop.f32.mrf.mxu0  ;;  %v1276_v48 = vrot.slane %v9921_v55, 1  ;;  %v1278_v25 = vrot.slane %v9925_v40, 1 }
 0x1a7   : > { %9919 = vst [vmem:[#allocation42_spill] sm:$0xff] %v7778_v51  ;;  %v7787_v35 = vpop.f32.mrf.mxu1  ;;  %v9923_v51 = vshrl.u32 %v9920_v33, 16 }
 0x1a8   : > { %9922 = vst [vmem:[#allocation36_spill] sm:$0xff] %v7787_v35  ;;  %3785 = vmatmul.mubr.bf16.gmra.mxu1 %v2317_v6  ;;  %v3174_v36 = vpop.f32.mrf.mxu0  ;;  %v1745_v6 = vpop.permute.xlu1 %1744 }
 0x1a9   : > { %3792 = vmatprep.mubr.bf16.mxu1 %v2481_v12  ;;  %v1277_v31 = vor.u32 %v1276_v48, %v9923_v51  ;;  %v3563_v55 = vpop.f32.mrf.mxu1  ;;  %v1486_v12 = vpop.permute.xlu0 %1485  ;;  %v9929_v48 = vld [vmem:[#allocation68_spill] sm:$0xff] }
 0x1aa   : > { %v7798_v20 = vpop.f32.mrf.mxu0  ;;  %3368 = vmatmul.mubr.bf16.gmra.mxu0 %v1964_v26  ;;  %v2485_v40 = vsel %vm1838_vm4, %v9929_v48, %v1745_v6  ;;  %v5503_v55 = vld [vmem:[%s5716_s23 + $0x80] sm:$0xff]   ;;  %v9932_v6 = vshrl.u32 %v9924_v32, 16 }
 0x1ab   : > { %9926 = vst [vmem:[#allocation41_spill] sm:$0xff] %v7798_v20  ;;  %v7801_v30 = vsel %vm1160_vm3, %v1277_v31, %v1278_v25  ;;  %v7803_v38 = vpop.f32.mrf.mxu1  ;;  %3375 = vmatprep.mubr.bf16.mxu0 %v2190_v42  ;;  %v2319_v26 = vsel %vm1838_vm4, %v5503_v55, %v7263_v41  ;;  %v1968_v42 = vsel %vm1838_vm4, %v9886_v7, %v1484_v59  ;;  %v9936_v59 = vld [vmem:[#allocation5_spill] sm:$0xff]  ;;  %v9942_v20 = vld [vmem:[#allocation6_spill] sm:$0xff] }
 0x1ac   : > { %9927 = vst [vmem:[#allocation101_spill] sm:$0xff] %v7801_v30  ;;  %9928 = vst [vmem:[#allocation102_spill] sm:$0xff] %v7803_v38  ;;  %1802 = vrot.lane.b32.xlu1 %v7801_v30, %s5621_s12  ;;  %v3179_v33 = vpop.f32.mrf.mxu0  ;;  %v7814_v31 = vpop.permute.xlu1 %1614  ;;  %v1280_v38 = vor.u32 %v1278_v25, %v9932_v6  ;;  %v9938_v6 = vld [vmem:[#allocation47_spill] sm:$0xff] }
 0x1ad   : > { %v3566_v51 = vpop.f32.mrf.mxu1  ;;  %v1747_v55 = vpop.permute.xlu0 %1746 }
 0x1ae   : > { %v7809_v36 = vpop.f32.mrf.mxu0  ;;  %v2193_v51 = vsel %vm1838_vm4, %v7102_v29, %v7783_v23 }
 0x1af   : > { %9930 = vst [vmem:[#allocation68_spill] sm:$0xff] %v7809_v36  ;;  %v7816_v35 = vpop.f32.mrf.mxu1 }
 0x1b0   : > { %9931 = vst [vmem:[#allocation103_spill] sm:$0xff] %v7816_v35  ;;  %3793 = vmatmul.mubr.bf16.gmra.mxu1 %v2319_v26  ;;  %v3182_v33 = vpop.f32.mrf.mxu0  ;;  %v7829_v26 = vsel %vm6455_vm7, %v1280_v38, 0  ;;  %v1488_v25 = vpop.permute.xlu1 %1487 }
 0x1b1   : > { %3800 = vmatprep.mubr.bf16.mxu1 %v2485_v40  ;;  %v3571_v36 = vpop.f32.mrf.mxu1  ;;  %9934 = vst [vmem:[#allocation105_spill] sm:$0xff] %v7829_v26  ;;  %1804 = vrot.lane.b32.xlu0 %v7829_v26, %s5621_s12  ;;  %v9937_v40 = vshll.u32 %v9936_v59, 16 }
 0x1b2   : > { %v7825_v41 = vpop.f32.mrf.mxu0  ;;  %3376 = vmatmul.mubr.bf16.gmra.mxu0 %v1968_v42  ;;  %v2489_v42 = vsel %vm1838_vm4, %v9938_v6, %v1747_v55  ;;  %v9941_v55 = vshrl.u32 %v9936_v59, 16 }
 0x1b3   : > { %9933 = vst [vmem:[#allocation104_spill] sm:$0xff] %v7825_v41  ;;  %v7831_v7 = vpop.f32.mrf.mxu1  ;;  %3383 = vmatprep.mubr.bf16.mxu0 %v2193_v51  ;;  %v1281_v32 = vrot.slane %v9937_v40, 1  ;;  %v5504_v41 = vld [vmem:[%s5716_s23 + $0x88] sm:$0xff]   ;;  %v1972_v40 = vsel %vm1838_vm4, %v9895_v37, %v1486_v12 }
 0x1b4   : > { %9935 = vst [vmem:[#allocation106_spill] sm:$0xff] %v7831_v7  ;;  %v3187_v33 = vpop.f32.mrf.mxu0  ;;  %v2321_v38 = vsel %vm1838_vm4, %v5504_v41, %v7296_v13  ;;  %v7844_v7 = vpop.permute.xlu0 %1616  ;;  %v9943_v13 = vshll.u32 %v9942_v20, 16 }
 0x1b5   : > { %v3574_v36 = vpop.f32.mrf.mxu1 }
 0x1b6   : > { %v7839_v35 = vpop.f32.mrf.mxu0  ;;  %v2196_v36 = vsel %vm1838_vm4, %v7173_v43, %v7814_v31  ;;  %v1283_v41 = vrot.slane %v9943_v13, 1  ;;  %v5505_v13 = vld [vmem:[%s5716_s23 + $0x90] sm:$0xff]  }
 0x1b7   : > { %9939 = vst [vmem:[#allocation5_spill] sm:$0xff] %v7839_v35  ;;  %v7846_v51 = vpop.f32.mrf.mxu1  ;;  %v1282_v35 = vor.u32 %v1281_v32, %v9941_v55 }
 0x1b8   : > { %9940 = vst [vmem:[#allocation47_spill] sm:$0xff] %v7846_v51  ;;  %3801 = vmatmul.mubr.bf16.gmra.mxu1 %v2321_v38  ;;  %v3190_v33 = vpop.f32.mrf.mxu0  ;;  %v1749_v38 = vpop.permute.xlu1 %1748 }
 0x1b9   : > { %3808 = vmatprep.mubr.bf16.mxu1 %v2489_v42  ;;  %v3579_v26 = vpop.f32.mrf.mxu1  ;;  %v7860_v37 = vsel %vm1160_vm3, %v1282_v35, %v1283_v41  ;;  %v1490_v42 = vpop.permute.xlu0 %1489  ;;  %v9947_v33 = vld [vmem:[#allocation72_spill] sm:$0xff] }
 0x1ba   : > { %v7857_v30 = vpop.f32.mrf.mxu0  ;;  %3384 = vmatmul.mubr.bf16.gmra.mxu0 %v1972_v40  ;;  %9945 = vst [vmem:[#allocation107_spill] sm:$0xff] %v7860_v37  ;;  %1806 = vrot.lane.b32.xlu1 %v7860_v37, %s5621_s12  ;;  %v2493_v55 = vsel %vm1838_vm4, %v9947_v33, %v1749_v38  ;;  %v2323_v40 = vsel %vm1838_vm4, %v5505_v13, %v7343_v53  ;;  %v9950_v38 = vshrl.u32 %v9942_v20, 16 }
 0x1bb   : > { %9944 = vst [vmem:[#allocation6_spill] sm:$0xff] %v7857_v30  ;;  %v7862_v12 = vpop.f32.mrf.mxu1  ;;  %3391 = vmatprep.mubr.bf16.mxu0 %v2196_v36  ;;  %v1976_v36 = vsel %vm1838_vm4, %v9904_v61, %v1488_v25  ;;  %v9954_v25 = vld [vmem:[#allocation7_spill] sm:$0xff]  ;;  %v9960_v30 = vld [vmem:[#allocation9_spill] sm:$0xff] }
 0x1bc   : > { %9946 = vst [vmem:[#allocation108_spill] sm:$0xff] %v7862_v12  ;;  %v3195_v59 = vpop.f32.mrf.mxu0  ;;  %v7873_v35 = vpop.permute.xlu1 %1618  ;;  %v1285_v12 = vor.u32 %v1283_v41, %v9950_v38  ;;  %v9956_v38 = vld [vmem:[#allocation73_spill] sm:$0xff] }
 0x1bd   : > { %v3582_v32 = vpop.f32.mrf.mxu1  ;;  %v1751_v13 = vpop.permute.xlu0 %1750 }
 0x1be   : > { %v7868_v26 = vpop.f32.mrf.mxu0  ;;  %v2199_v32 = vsel %vm1838_vm4, %v7179_v52, %v7844_v7 }
 0x1bf   : > { %9948 = vst [vmem:[#allocation72_spill] sm:$0xff] %v7868_v26  ;;  %v7875_v51 = vpop.f32.mrf.mxu1 }
 0x1c0   : > { %9949 = vst [vmem:[#allocation109_spill] sm:$0xff] %v7875_v51  ;;  %3809 = vmatmul.mubr.bf16.gmra.mxu1 %v2323_v40  ;;  %v3198_v59 = vpop.f32.mrf.mxu0  ;;  %v7888_v40 = vsel %vm6455_vm7, %v1285_v12, 0  ;;  %v1492_v41 = vpop.permute.xlu1 %1491 }
 0x1c1   : > { %3816 = vmatprep.mubr.bf16.mxu1 %v2493_v55  ;;  %v3587_v26 = vpop.f32.mrf.mxu1  ;;  %9952 = vst [vmem:[#allocation111_spill] sm:$0xff] %v7888_v40  ;;  %1808 = vrot.lane.b32.xlu0 %v7888_v40, %s5621_s12  ;;  %v9955_v55 = vshll.u32 %v9954_v25, 16 }
 0x1c2   : > { %v7884_v53 = vpop.f32.mrf.mxu0  ;;  %3392 = vmatmul.mubr.bf16.gmra.mxu0 %v1976_v36  ;;  %v2497_v36 = vsel %vm1838_vm4, %v9956_v38, %v1751_v13  ;;  %v9959_v13 = vshrl.u32 %v9954_v25, 16 }
 0x1c3   : > { %9951 = vst [vmem:[#allocation110_spill] sm:$0xff] %v7884_v53  ;;  %v7890_v61 = vpop.f32.mrf.mxu1  ;;  %3399 = vmatprep.mubr.bf16.mxu0 %v2199_v32  ;;  %v1286_v20 = vrot.slane %v9955_v55, 1  ;;  %v5506_v53 = vld [vmem:[%s5716_s23 + $0x98] sm:$0xff]   ;;  %v1980_v55 = vsel %vm1838_vm4, %v9913_v0, %v1490_v42 }
 0x1c4   : > { %9953 = vst [vmem:[#allocation112_spill] sm:$0xff] %v7890_v61  ;;  %v3203_v59 = vpop.f32.mrf.mxu0  ;;  %v2325_v12 = vsel %vm1838_vm4, %v5506_v53, %v7391_v18  ;;  %v7903_v61 = vpop.permute.xlu0 %1620  ;;  %v9961_v18 = vshll.u32 %v9960_v30, 16 }
 0x1c5   : > { %v3590_v26 = vpop.f32.mrf.mxu1 }
 0x1c6   : > { %v7898_v51 = vpop.f32.mrf.mxu0  ;;  %v2202_v26 = vsel %vm1838_vm4, %v7239_v49, %v7873_v35  ;;  %v1288_v53 = vrot.slane %v9961_v18, 1  ;;  %v5507_v18 = vld [vmem:[%s5716_s23 + $0xa0] sm:$0xff]  }
 0x1c7   : > { %9957 = vst [vmem:[#allocation7_spill] sm:$0xff] %v7898_v51  ;;  %v7905_v32 = vpop.f32.mrf.mxu1  ;;  %v1287_v51 = vor.u32 %v1286_v20, %v9959_v13 }
 0x1c8   : > { %9958 = vst [vmem:[#allocation73_spill] sm:$0xff] %v7905_v32  ;;  %3817 = vmatmul.mubr.bf16.gmra.mxu1 %v2325_v12  ;;  %v3206_v59 = vpop.f32.mrf.mxu0  ;;  %v1753_v12 = vpop.permute.xlu1 %1752 }
 0x1c9   : > { %3824 = vmatprep.mubr.bf16.mxu1 %v2497_v36  ;;  %v3595_v40 = vpop.f32.mrf.mxu1  ;;  %v7919_v0 = vsel %vm1160_vm3, %v1287_v51, %v1288_v53  ;;  %v1494_v36 = vpop.permute.xlu0 %1493  ;;  %v9965_v59 = vld [vmem:[#allocation75_spill] sm:$0xff] }
 0x1ca   : > { %v7916_v37 = vpop.f32.mrf.mxu0  ;;  %3400 = vmatmul.mubr.bf16.gmra.mxu0 %v1980_v55  ;;  %9963 = vst [vmem:[#allocation113_spill] sm:$0xff] %v7919_v0  ;;  %1810 = vrot.lane.b32.xlu1 %v7919_v0, %s5621_s12  ;;  %v2501_v13 = vsel %vm1838_vm4, %v9965_v59, %v1753_v12  ;;  %v2327_v55 = vsel %vm1838_vm4, %v5507_v18, %v7436_v58  ;;  %v9968_v12 = vshrl.u32 %v9960_v30, 16 }
 0x1cb   : > { %9962 = vst [vmem:[#allocation9_spill] sm:$0xff] %v7916_v37  ;;  %v7921_v42 = vpop.f32.mrf.mxu1  ;;  %3407 = vmatprep.mubr.bf16.mxu0 %v2202_v26  ;;  %v1984_v26 = vsel %vm1838_vm4, %v7095_v3, %v1492_v41  ;;  %v9972_v41 = vld [vmem:[#allocation11_spill] sm:$0xff]  ;;  %v9978_v37 = vld [vmem:[#allocation12_spill] sm:$0xff] }
 0x1cc   : > { %9964 = vst [vmem:[#allocation114_spill] sm:$0xff] %v7921_v42  ;;  %v3211_v25 = vpop.f32.mrf.mxu0  ;;  %v7932_v51 = vpop.permute.xlu1 %1622  ;;  %v1290_v42 = vor.u32 %v1288_v53, %v9968_v12  ;;  %v9974_v12 = vld [vmem:[#allocation76_spill] sm:$0xff] }
 0x1cd   : > { %v3598_v20 = vpop.f32.mrf.mxu1  ;;  %v1755_v18 = vpop.permute.xlu0 %1754 }
 0x1ce   : > { %v7927_v40 = vpop.f32.mrf.mxu0  ;;  %v2205_v20 = vsel %vm1838_vm4, %v7246_v14, %v7903_v61 }
 0x1cf   : > { %9966 = vst [vmem:[#allocation75_spill] sm:$0xff] %v7927_v40  ;;  %v7934_v32 = vpop.f32.mrf.mxu1 }
 0x1d0   : > { %9967 = vst [vmem:[#allocation115_spill] sm:$0xff] %v7934_v32  ;;  %3825 = vmatmul.mubr.bf16.gmra.mxu1 %v2327_v55  ;;  %v3214_v25 = vpop.f32.mrf.mxu0  ;;  %v7947_v55 = vsel %vm6455_vm7, %v1290_v42, 0  ;;  %v1496_v53 = vpop.permute.xlu1 %1495 }
 0x1d1   : > { %3832 = vmatprep.mubr.bf16.mxu1 %v2501_v13  ;;  %v3603_v40 = vpop.f32.mrf.mxu1  ;;  %9970 = vst [vmem:[#allocation117_spill] sm:$0xff] %v7947_v55  ;;  %1812 = vrot.lane.b32.xlu0 %v7947_v55, %s5621_s12  ;;  %v9973_v13 = vshll.u32 %v9972_v41, 16 }
 0x1d2   : > { %v7943_v58 = vpop.f32.mrf.mxu0  ;;  %3408 = vmatmul.mubr.bf16.gmra.mxu0 %v1984_v26  ;;  %v2505_v26 = vsel %vm1838_vm4, %v9974_v12, %v1755_v18  ;;  %v9977_v18 = vshrl.u32 %v9972_v41, 16 }
 0x1d3   : > { %9969 = vst [vmem:[#allocation116_spill] sm:$0xff] %v7943_v58  ;;  %v7949_v3 = vpop.f32.mrf.mxu1  ;;  %3415 = vmatprep.mubr.bf16.mxu0 %v2205_v20  ;;  %v1291_v30 = vrot.slane %v9973_v13, 1  ;;  %v5508_v58 = vld [vmem:[%s5716_s23 + $0xa8] sm:$0xff]   ;;  %v1988_v13 = vsel %vm1838_vm4, %v7102_v29, %v1494_v36 }
 0x1d4   : > { %9971 = vst [vmem:[#allocation118_spill] sm:$0xff] %v7949_v3  ;;  %v3219_v25 = vpop.f32.mrf.mxu0  ;;  %v2329_v42 = vsel %vm1838_vm4, %v5508_v58, %v7475_v22  ;;  %v7962_v3 = vpop.permute.xlu0 %1624  ;;  %v9979_v22 = vshll.u32 %v9978_v37, 16 }
 0x1d5   : > { %v3606_v40 = vpop.f32.mrf.mxu1 }
 0x1d6   : > { %v7957_v32 = vpop.f32.mrf.mxu0  ;;  %v2208_v40 = vsel %vm1838_vm4, %v7312_v2, %v7932_v51  ;;  %v1293_v58 = vrot.slane %v9979_v22, 1  ;;  %v5509_v22 = vld [vmem:[%s5716_s23 + $0xb0] sm:$0xff]  }
 0x1d7   : > { %9975 = vst [vmem:[#allocation11_spill] sm:$0xff] %v7957_v32  ;;  %v7964_v20 = vpop.f32.mrf.mxu1  ;;  %v1292_v32 = vor.u32 %v1291_v30, %v9977_v18 }
 0x1d8   : > { %9976 = vst [vmem:[#allocation76_spill] sm:$0xff] %v7964_v20  ;;  %3833 = vmatmul.mubr.bf16.gmra.mxu1 %v2329_v42  ;;  %v3222_v25 = vpop.f32.mrf.mxu0  ;;  %v1757_v42 = vpop.permute.xlu1 %1756 }
 0x1d9   : > { %3840 = vmatprep.mubr.bf16.mxu1 %v2505_v26  ;;  %v3611_v55 = vpop.f32.mrf.mxu1  ;;  %v7978_v29 = vsel %vm1160_vm3, %v1292_v32, %v1293_v58  ;;  %v1498_v26 = vpop.permute.xlu0 %1497  ;;  %v9983_v25 = vld [vmem:[#allocation77_spill] sm:$0xff] }
 0x1da   : > { %v7975_v0 = vpop.f32.mrf.mxu0  ;;  %3416 = vmatmul.mubr.bf16.gmra.mxu0 %v1988_v13  ;;  %9981 = vst [vmem:[#allocation119_spill] sm:$0xff] %v7978_v29  ;;  %1814 = vrot.lane.b32.xlu1 %v7978_v29, %s5621_s12  ;;  %v2509_v18 = vsel %vm1838_vm4, %v9983_v25, %v1757_v42  ;;  %v2331_v13 = vsel %vm1838_vm4, %v5509_v22, %v7504_v19  ;;  %v9987_v42 = vshrl.u32 %v9978_v37, 16 }
 0x1db   : > { %9980 = vst [vmem:[#allocation12_spill] sm:$0xff] %v7975_v0  ;;  %v7980_v36 = vpop.f32.mrf.mxu1  ;;  %3423 = vmatprep.mubr.bf16.mxu0 %v2208_v40  ;;  %v1992_v40 = vsel %vm1838_vm4, %v7173_v43, %v1496_v53  ;;  %v9991_v53 = vld [vmem:[#allocation13_spill] sm:$0xff] }
 0x1dc   : > { %9982 = vst [vmem:[#allocation120_spill] sm:$0xff] %v7980_v36  ;;  %v3227_v41 = vpop.f32.mrf.mxu0  ;;  %v7991_v32 = vpop.permute.xlu1 %1626 }
 0x1dd   : > { %v3614_v30 = vpop.f32.mrf.mxu1  ;;  %v1759_v22 = vpop.permute.xlu0 %1758 }
 0x1de   : > { %v7986_v55 = vpop.f32.mrf.mxu0  ;;  %v9986_v30 = vld [vmem:[#allocation81_spill] sm:$0xff] }
 0x1df   : > { %9984 = vst [vmem:[#allocation77_spill] sm:$0xff] %v7986_v55  ;;  %v2211_v36 = vsel %vm1838_vm4, %v9986_v30, %v7962_v3  ;;  %v1295_v55 = vor.u32 %v1293_v58, %v9987_v42  ;;  %v9993_v42 = vld [vmem:[#allocation78_spill] sm:$0xff] }
 0x1e0   : > { %v7993_v20 = vpop.f32.mrf.mxu1  ;;  %3841 = vmatmul.mubr.bf16.gmra.mxu1 %v2331_v13  ;;  %v3230_v41 = vpop.f32.mrf.mxu0 }
 0x1e1   : > { %9985 = vst [vmem:[#allocation121_spill] sm:$0xff] %v7993_v20  ;;  %3848 = vmatprep.mubr.bf16.mxu1 %v2509_v18  ;;  %v8006_v13 = vsel %vm6455_vm7, %v1295_v55, 0  ;;  %v9992_v18 = vshll.u32 %v9991_v53, 16  ;;  %v1500_v58 = vpop.permute.xlu1 %1499  ;;  %v5510_v20 = vld [vmem:[%s5716_s23 + $0xb8] sm:$0xff]  }
 0x1e2   : > { %v3619_v0 = vpop.f32.mrf.mxu1  ;;  %v8002_v19 = vpop.f32.mrf.mxu0  ;;  %3424 = vmatmul.mubr.bf16.gmra.mxu0 %v1992_v40  ;;  %9989 = vst [vmem:[#allocation122_spill] sm:$0xff] %v8006_v13  ;;  %1816 = vrot.lane.b32.xlu0 %v8006_v13, %s5621_s12  ;;  %v2513_v40 = vsel %vm1838_vm4, %v9993_v42, %v1759_v22  ;;  %v2333_v55 = vsel %vm1838_vm4, %v5510_v20, %v7559_v28  ;;  %v9996_v22 = vshrl.u32 %v9991_v53, 16  ;;  %v9997_v20 = vld [vmem:[#allocation14_spill] sm:$0xff] }
 0x1e3   : > { %9988 = vst [vmem:[#allocation81_spill] sm:$0xff] %v8002_v19  ;;  %3431 = vmatprep.mubr.bf16.mxu0 %v2211_v36  ;;  %v1296_v41 = vrot.slane %v9992_v18, 1  ;;  %v1996_v18 = vsel %vm1838_vm4, %v7179_v52, %v1498_v26 }
 0x1e4   : > { %v8008_v43 = vpop.f32.mrf.mxu1  ;;  %v3235_v37 = vpop.f32.mrf.mxu0 }
 0x1e5   : > { %9990 = vst [vmem:[#allocation123_spill] sm:$0xff] %v8008_v43  ;;  %v8021_v43 = vpop.permute.xlu0 %1628  ;;  %v1297_v28 = vor.u32 %v1296_v41, %v9996_v22 }
 0x1e6   : > { %v3622_v0 = vpop.f32.mrf.mxu1  ;;  %v8019_v19 = vpop.f32.mrf.mxu0 }
 0x1e7   : > { %9994 = vst [vmem:[#allocation13_spill] sm:$0xff] %v8019_v19  ;;  %v2214_v0 = vsel %vm1838_vm4, %v7384_v16, %v7991_v32  ;;  %v9998_v19 = vshll.u32 %v9997_v20, 16 }
 0x1e8   : > { %v8023_v36 = vpop.f32.mrf.mxu1  ;;  %3849 = vmatmul.mubr.bf16.gmra.mxu1 %v2333_v55  ;;  %v3238_v37 = vpop.f32.mrf.mxu0 }
 0x1e9   : > { %9995 = vst [vmem:[#allocation124_spill] sm:$0xff] %v8023_v36  ;;  %3856 = vmatprep.mubr.bf16.mxu1 %v2513_v40  ;;  %v1298_v13 = vrot.slane %v9998_v19, 1  ;;  %v1761_v55 = vpop.permute.xlu1 %1760  ;;  %v1502_v53 = vpop.permute.xlu0 %1501  ;;  %v10002_v37 = vld [vmem:[#allocation79_spill] sm:$0xff] }
 0x1ea   : > { %v3627_v29 = vpop.f32.mrf.mxu1  ;;  %v8034_v42 = vpop.f32.mrf.mxu0  ;;  %3432 = vmatmul.mubr.bf16.gmra.mxu0 %v1996_v18  ;;  %v2517_v19 = vsel %vm1838_vm4, %v10002_v37, %v1761_v55  ;;  %v10006_v55 = vshrl.u32 %v9997_v20, 16 }
 0x1eb   : > { %9999 = vst [vmem:[#allocation14_spill] sm:$0xff] %v8034_v42  ;;  %v8037_v52 = vsel %vm1160_vm3, %v1297_v28, %v1298_v13  ;;  %3439 = vmatprep.mubr.bf16.mxu0 %v2214_v0  ;;  %v5511_v29 = vld [vmem:[%s5716_s23 + $0xc0] sm:$0xff]   ;;  %v2000_v0 = vsel %vm1838_vm4, %v7239_v49, %v1500_v58 }
 0x1ec   : > { %10000 = vst [vmem:[#allocation125_spill] sm:$0xff] %v8037_v52  ;;  %v8039_v26 = vpop.f32.mrf.mxu1  ;;  %1818 = vrot.lane.b32.xlu1 %v8037_v52, %s5621_s12  ;;  %v3243_v40 = vpop.f32.mrf.mxu0  ;;  %v2335_v18 = vsel %vm1838_vm4, %v5511_v29, %v7615_v1  ;;  %v1300_v1 = vor.u32 %v1298_v13, %v10006_v55  ;;  %v10010_v58 = vld [vmem:[#allocation17_spill] sm:$0xff] }
 0x1ed   : > { %10001 = vst [vmem:[#allocation126_spill] sm:$0xff] %v8039_v26  ;;  %v8050_v28 = vpop.permute.xlu1 %1630  ;;  %v1763_v42 = vpop.permute.xlu0 %1762 }
 0x1ee   : > { %v3630_v41 = vpop.f32.mrf.mxu1  ;;  %v8048_v22 = vpop.f32.mrf.mxu0 }
 0x1ef   : > { %10003 = vst [vmem:[#allocation79_spill] sm:$0xff] %v8048_v22  ;;  %v10005_v41 = vld [vmem:[#allocation55_spill] sm:$0xff] }
 0x1f0   : > { %v8052_v36 = vpop.f32.mrf.mxu1  ;;  %3857 = vmatmul.mubr.bf16.gmra.mxu1 %v2335_v18  ;;  %v3246_v40 = vpop.f32.mrf.mxu0  ;;  %v2217_v26 = vsel %vm1838_vm4, %v10005_v41, %v8021_v43  ;;  %v8065_v18 = vsel %vm6455_vm7, %v1300_v1, 0 }
 0x1f1   : > { %10004 = vst [vmem:[#allocation127_spill] sm:$0xff] %v8052_v36  ;;  %3864 = vmatprep.mubr.bf16.mxu1 %v2517_v19  ;;  %10008 = vst [vmem:[#allocation128_spill] sm:$0xff] %v8065_v18  ;;  %1820 = vrot.lane.b32.xlu0 %v8065_v18, %s5621_s12  ;;  %v10011_v19 = vshll.u32 %v10010_v58, 16  ;;  %v1504_v13 = vpop.permute.xlu1 %1503 }
 0x1f2   : > { %v3668_v29 = vpop.f32.mrf.mxu1  ;;  %v8061_v22 = vpop.f32.mrf.mxu0  ;;  %3440 = vmatmul.mubr.bf16.gmra.mxu0 %v2000_v0 }
 0x1f3   : > { %10007 = vst [vmem:[#allocation55_spill] sm:$0xff] %v8061_v22  ;;  %3447 = vmatprep.mubr.bf16.mxu0 %v2217_v26  ;;  %v1301_v40 = vrot.slane %v10011_v19, 1  ;;  %v10012_v29 = vld [vmem:[#allocation80_spill] sm:$0xff]  ;;  %v5512_v22 = vld [vmem:[%s5716_s23 + $0xc8] sm:$0xff]   ;;  %v2004_v19 = vsel %vm1838_vm4, %v7246_v14, %v1502_v53 }
 0x1f4   : > { %v8067_v49 = vpop.f32.mrf.mxu1  ;;  %v3251_v20 = vpop.f32.mrf.mxu0  ;;  %v2521_v0 = vsel %vm1838_vm4, %v10012_v29, %v1763_v42  ;;  %v2337_v1 = vsel %vm1838_vm4, %v5512_v22, %v7665_v45  ;;  %v10015_v42 = vshrl.u32 %v10010_v58, 16  ;;  %v10016_v22 = vld [vmem:[#allocation18_spill] sm:$0xff] }
 0x1f5   : > { %10009 = vst [vmem:[#allocation129_spill] sm:$0xff] %v8067_v49  ;;  %v8080_v49 = vpop.permute.xlu0 %1632 }
 0x1f6   : > { %v3671_v55 = vpop.f32.mrf.mxu1  ;;  %v8078_v36 = vpop.f32.mrf.mxu0  ;;  %v1302_v45 = vor.u32 %v1301_v40, %v10015_v42 }
 0x1f7   : > { %10013 = vst [vmem:[#allocation17_spill] sm:$0xff] %v8078_v36  ;;  %v2220_v55 = vsel %vm1838_vm4, %v7449_v9, %v8050_v28  ;;  %v10017_v36 = vshll.u32 %v10016_v22, 16 }
 0x1f8   : > { %v8082_v26 = vpop.f32.mrf.mxu1  ;;  %3865 = vmatmul.mubr.bf16.gmra.mxu1 %v2337_v1  ;;  %v3254_v20 = vpop.f32.mrf.mxu0 }
 0x1f9   : > { %10014 = vst [vmem:[#allocation130_spill] sm:$0xff] %v8082_v26  ;;  %3872 = vmatprep.mubr.bf16.mxu1 %v2521_v0  ;;  %v1303_v18 = vrot.slane %v10017_v36, 1  ;;  %v1765_v1 = vpop.permute.xlu1 %1764  ;;  %v1506_v58 = vpop.permute.xlu0 %1505  ;;  %v10021_v20 = vld [vmem:[#allocation82_spill] sm:$0xff] }
 0x1fa   : > { %v3676_v52 = vpop.f32.mrf.mxu1  ;;  %v8093_v29 = vpop.f32.mrf.mxu0  ;;  %3448 = vmatmul.mubr.bf16.gmra.mxu0 %v2004_v19  ;;  %v2525_v36 = vsel %vm1838_vm4, %v10021_v20, %v1765_v1  ;;  %v10024_v1 = vshrl.u32 %v10016_v22, 16 }
 0x1fb   : > { %10018 = vst [vmem:[#allocation18_spill] sm:$0xff] %v8093_v29  ;;  %v8096_v14 = vsel %vm1160_vm3, %v1302_v45, %v1303_v18  ;;  %3455 = vmatprep.mubr.bf16.mxu0 %v2220_v55  ;;  %v5513_v52 = vld [vmem:[%s5716_s23 + $0xd0] sm:$0xff]   ;;  %v2008_v55 = vsel %vm1838_vm4, %v7312_v2, %v1504_v13  ;;  %v10028_v13 = vld [vmem:[#allocation20_spill] sm:$0xff] }
 0x1fc   : > { %10019 = vst [vmem:[#allocation131_spill] sm:$0xff] %v8096_v14  ;;  %v8098_v53 = vpop.f32.mrf.mxu1  ;;  %1822 = vrot.lane.b32.xlu1 %v8096_v14, %s5621_s12  ;;  %v3259_v0 = vpop.f32.mrf.mxu0  ;;  %v2339_v19 = vsel %vm1838_vm4, %v5513_v52, %v7696_v27  ;;  %v1305_v27 = vor.u32 %v1303_v18, %v10024_v1 }
 0x1fd   : > { %10020 = vst [vmem:[#allocation132_spill] sm:$0xff] %v8098_v53  ;;  %v8109_v45 = vpop.permute.xlu1 %1634  ;;  %v1767_v14 = vpop.permute.xlu0 %1766 }
 0x1fe   : > { %v3679_v40 = vpop.f32.mrf.mxu1  ;;  %v8107_v42 = vpop.f32.mrf.mxu0 }
 0x1ff   : > { %10022 = vst [vmem:[#allocation82_spill] sm:$0xff] %v8107_v42  ;;  %v2223_v40 = vsel %vm1838_vm4, %v7456_v39, %v8080_v49 }
 0x200   : > { %v8111_v29 = vpop.f32.mrf.mxu1  ;;  %3873 = vmatmul.mubr.bf16.gmra.mxu1 %v2339_v19  ;;  %v3262_v0 = vpop.f32.mrf.mxu0  ;;  %v8124_v19 = vsel %vm6455_vm7, %v1305_v27, 0 }
 0x201   : > { %10023 = vst [vmem:[#allocation133_spill] sm:$0xff] %v8111_v29  ;;  %3880 = vmatprep.mubr.bf16.mxu1 %v2525_v36  ;;  %10026 = vst [vmem:[#allocation135_spill] sm:$0xff] %v8124_v19  ;;  %1824 = vrot.lane.b32.xlu0 %v8124_v19, %s5621_s12  ;;  %v10029_v36 = vshll.u32 %v10028_v13, 16  ;;  %v1508_v18 = vpop.permute.xlu1 %1507 }
 0x202   : > { %v3684_v52 = vpop.f32.mrf.mxu1  ;;  %v8120_v42 = vpop.f32.mrf.mxu0  ;;  %3456 = vmatmul.mubr.bf16.gmra.mxu0 %v2008_v55 }
 0x203   : > { %10025 = vst [vmem:[#allocation134_spill] sm:$0xff] %v8120_v42  ;;  %3463 = vmatprep.mubr.bf16.mxu0 %v2223_v40  ;;  %v1306_v0 = vrot.slane %v10029_v36, 1  ;;  %v10030_v52 = vld [vmem:[#allocation59_spill] sm:$0xff]  ;;  %v5514_v42 = vld [vmem:[%s5716_s23 + $0xd8] sm:$0xff]   ;;  %v2012_v36 = vsel %vm1838_vm4, %v9986_v30, %v1506_v58 }
 0x204   : > { %v8126_v2 = vpop.f32.mrf.mxu1  ;;  %v3267_v22 = vpop.f32.mrf.mxu0  ;;  %v2529_v55 = vsel %vm1838_vm4, %v10030_v52, %v1767_v14  ;;  %v2341_v27 = vsel %vm1838_vm4, %v5514_v42, %v7726_v56  ;;  %v10032_v14 = vshrl.u32 %v10028_v13, 16  ;;  %v10033_v42 = vld [vmem:[#allocation22_spill] sm:$0xff] }
 0x205   : > { %10027 = vst [vmem:[#allocation136_spill] sm:$0xff] %v8126_v2  ;;  %v8139_v2 = vpop.permute.xlu0 %1636 }
 0x206   : > { %v3687_v1 = vpop.f32.mrf.mxu1  ;;  %v8137_v29 = vpop.f32.mrf.mxu0  ;;  %v1307_v56 = vor.u32 %v1306_v0, %v10032_v14 }
 0x207   : > { %10031 = vst [vmem:[#allocation20_spill] sm:$0xff] %v8137_v29  ;;  %v2226_v1 = vsel %vm1838_vm4, %v9847_v50, %v8109_v45  ;;  %v10034_v29 = vshll.u32 %v10033_v42, 16 }
 0x208   : > { %v8141_v40 = vpop.f32.mrf.mxu1  ;;  %3881 = vmatmul.mubr.bf16.gmra.mxu1 %v2341_v27  ;;  %v3270_v22 = vpop.f32.mrf.mxu0 }
 0x209   : > { %3888 = vmatprep.mubr.bf16.mxu1 %v2529_v55  ;;  %v1308_v19 = vrot.slane %v10034_v29, 1  ;;  %v1769_v27 = vpop.permute.xlu1 %1768  ;;  %v1510_v13 = vpop.permute.xlu0 %1509  ;;  %v10037_v55 = vld [vmem:[#allocation26_spill] sm:$0xff] }
 0x20a   : > { %v3692_v53 = vpop.f32.mrf.mxu1  ;;  %v8152_v26 = vpop.f32.mrf.mxu0  ;;  %3464 = vmatmul.mubr.bf16.gmra.mxu0 %v2012_v36  ;;  %v2533_v29 = vsel %vm1838_vm4, %v10037_v55, %v1769_v27  ;;  %v10041_v27 = vshrl.u32 %v10033_v42, 16 }
 0x20b   : > { %10035 = vst [vmem:[#allocation59_spill] sm:$0xff] %v8152_v26  ;;  %v8155_v30 = vsel %vm1160_vm3, %v1307_v56, %v1308_v19  ;;  %3471 = vmatprep.mubr.bf16.mxu0 %v2226_v1  ;;  %v5515_v53 = vld [vmem:[%s5716_s23 + $0xe0] sm:$0xff]   ;;  %v2016_v1 = vsel %vm1838_vm4, %v7384_v16, %v1508_v18  ;;  %v10045_v18 = vld [vmem:[#allocation24_spill] sm:$0xff] }
 0x20c   : > { %10036 = vst [vmem:[#allocation22_spill] sm:$0xff] %v8155_v30  ;;  %v8157_v58 = vpop.f32.mrf.mxu1  ;;  %1826 = vrot.lane.b32.xlu1 %v8155_v30, %s5621_s12  ;;  %v3275_v50 = vpop.f32.mrf.mxu0  ;;  %v2343_v36 = vsel %vm1838_vm4, %v5515_v53, %v7755_v15  ;;  %v1310_v15 = vor.u32 %v1308_v19, %v10041_v27  ;;  %v10047_v27 = vld [vmem:[#allocation58_spill] sm:$0xff] }
 0x20d   : > { %v8168_v14 = vpop.permute.xlu1 %1638  ;;  %v1771_v30 = vpop.permute.xlu0 %1770 }
 0x20e   : > { %v3695_v0 = vpop.f32.mrf.mxu1  ;;  %v8166_v22 = vpop.f32.mrf.mxu0 }
 0x20f   : > { %10038 = vst [vmem:[#allocation26_spill] sm:$0xff] %v8166_v22  ;;  %v10040_v0 = vld [vmem:[#allocation45_spill] sm:$0xff] }
 0x210   : > { %v8170_v56 = vpop.f32.mrf.mxu1  ;;  %3889 = vmatmul.mubr.bf16.gmra.mxu1 %v2343_v36  ;;  %v3278_v50 = vpop.f32.mrf.mxu0  ;;  %v2229_v26 = vsel %vm1838_vm4, %v10040_v0, %v8139_v2  ;;  %v8183_v36 = vsel %vm6455_vm7, %v1310_v15, 0 }
 0x211   : > { %10039 = vst [vmem:[#allocation137_spill] sm:$0xff] %v8170_v56  ;;  %3896 = vmatprep.mubr.bf16.mxu1 %v2533_v29  ;;  %10043 = vst [vmem:[#allocation138_spill] sm:$0xff] %v8183_v36  ;;  %1828 = vrot.lane.b32.xlu0 %v8183_v36, %s5621_s12  ;;  %v10046_v29 = vshll.u32 %v10045_v18, 16  ;;  %v1512_v50 = vpop.permute.xlu1 %1511  ;;  %v5517_v36 = vld [vmem:[%s5716_s23 + $0x1f0] sm:$0xff]  }
 0x212   : > { %v3700_v53 = vpop.f32.mrf.mxu1  ;;  %v8179_v22 = vpop.f32.mrf.mxu0  ;;  %3472 = vmatmul.mubr.bf16.gmra.mxu0 %v2016_v1  ;;  %v2537_v1 = vsel %vm1838_vm4, %v10047_v27, %v1771_v30 }
 0x213   : > { %10042 = vst [vmem:[#allocation45_spill] sm:$0xff] %v8179_v22  ;;  %3479 = vmatprep.mubr.bf16.mxu0 %v2229_v26  ;;  %v1311_v42 = vrot.slane %v10046_v29, 1  ;;  %v5516_v53 = vld [vmem:[%s5716_s23 + $0xe8] sm:$0xff]   ;;  %v2020_v26 = vsel %vm1838_vm4, %v10005_v41, %v1510_v13 }
 0x214   : > { %v8185_v16 = vpop.f32.mrf.mxu1  ;;  %v3283_v19 = vpop.f32.mrf.mxu0  ;;  %v2345_v15 = vsel %vm1838_vm4, %v5516_v53, %v7783_v23  ;;  %v10051_v23 = vshrl.u32 %v10045_v18, 16  ;;  %v10052_v53 = vld [vmem:[#allocation25_spill] sm:$0xff] }
 0x215   : > { %10044 = vst [vmem:[#allocation139_spill] sm:$0xff] %v8185_v16  ;;  %1674 = vrot.lane.b32.xlu0 %v5517_v36, %s5621_s12  ;;  %v10050_v19 = vld [vmem:[#allocation8_spill] sm:$0xff]  ;;  %v1773_v41 = vpop.permute.xlu1 %1772 }
 0x216   : > { %v3703_v0 = vpop.f32.mrf.mxu1  ;;  %v8196_v22 = vpop.f32.mrf.mxu0  ;;  %v2232_v30 = vsel %vm1838_vm4, %v10050_v19, %v8168_v14 }
 0x217   : > { %10048 = vst [vmem:[#allocation24_spill] sm:$0xff] %v8196_v22  ;;  %v1312_v0 = vor.u32 %v1311_v42, %v10051_v23  ;;  %v10053_v22 = vshll.u32 %v10052_v53, 16  ;;  %v5518_v42 = vld [vmem:[%s5716_s23 + $0x1f8] sm:$0xff]  }
 0x218   : > { %v8198_v16 = vpop.f32.mrf.mxu1  ;;  %3897 = vmatmul.mubr.bf16.gmra.mxu1 %v2345_v15  ;;  %v3286_v29 = vpop.f32.mrf.mxu0 }
 0x219   : > { %10049 = vst [vmem:[#allocation58_spill] sm:$0xff] %v8198_v16  ;;  %3904 = vmatprep.mubr.bf16.mxu1 %v2537_v1  ;;  %v1313_v15 = vrot.slane %v10053_v22, 1  ;;  %1676 = vrot.lane.b32.xlu0 %v5518_v42, %s5621_s12  ;;  %v8222_v22 = vpop.permute.xlu0 %1640  ;;  %v5519_v29 = vld [vmem:[%s5716_s23 + $0xf0] sm:$0xff]   ;;  %v10060_v42 = vld [vmem:[#allocation10_spill] sm:$0xff] }
 0x21a   : > { %v3708_v56 = vpop.f32.mrf.mxu1  ;;  %v8211_v16 = vpop.f32.mrf.mxu0  ;;  %3480 = vmatmul.mubr.bf16.gmra.mxu0 %v2020_v26  ;;  %v2347_v19 = vsel %vm1838_vm4, %v5519_v29, %v7814_v31 }
 0x21b   : > { %10054 = vst [vmem:[#allocation8_spill] sm:$0xff] %v8211_v16  ;;  %v8214_v13 = vsel %vm1160_vm3, %v1312_v0, %v1313_v15  ;;  %3487 = vmatprep.mubr.bf16.mxu0 %v2232_v30  ;;  %v10057_v56 = vld [vmem:[#allocation63_spill] sm:$0xff]  ;;  %v2024_v0 = vsel %vm1838_vm4, %v7449_v9, %v1512_v50  ;;  %v1775_v29 = vpop.permute.xlu1 %1774 }
 0x21c   : > { %10055 = vst [vmem:[#allocation25_spill] sm:$0xff] %v8214_v13  ;;  %v8216_v36 = vpop.f32.mrf.mxu1  ;;  %1830 = vrot.lane.b32.xlu1 %v8214_v13, %s5621_s12  ;;  %v3291_v18 = vpop.f32.mrf.mxu0  ;;  %v2541_v26 = vsel %vm1838_vm4, %v10057_v56, %v1773_v41  ;;  %v10061_v41 = vshrl.u32 %v10052_v53, 16  ;;  %v10065_v50 = vld [vmem:[#allocation31_spill] sm:$0xff] }
 0x21d   : > { %10056 = vst [vmem:[#allocation140_spill] sm:$0xff] %v8216_v36 }
 0x21e   : > { %v3711_v1 = vpop.f32.mrf.mxu1  ;;  %v8229_v23 = vpop.f32.mrf.mxu0  ;;  %v1315_v16 = vor.u32 %v1313_v15, %v10061_v41  ;;  %v5520_v41 = vld [vmem:[%s5716_s23 + $0xf8] sm:$0xff]  }
 0x21f   : > { %10058 = vst [vmem:[#allocation63_spill] sm:$0xff] %v8229_v23  ;;  %v2235_v1 = vsel %vm1838_vm4, %v10060_v42, %v8222_v22  ;;  %v1514_v15 = vpop.permute.xlu0 %1513  ;;  %v10067_v42 = vld [vmem:[#allocation60_spill] sm:$0xff] }
 0x220   : > { %v8231_v30 = vpop.f32.mrf.mxu1  ;;  %3905 = vmatmul.mubr.bf16.gmra.mxu1 %v2347_v19  ;;  %v3294_v18 = vpop.f32.mrf.mxu0  ;;  %v8244_v19 = vsel %vm6455_vm7, %v1315_v16, 0  ;;  %v2349_v16 = vsel %vm1838_vm4, %v5520_v41, %v7844_v7 }
 0x221   : > { %10059 = vst [vmem:[#allocation141_spill] sm:$0xff] %v8231_v30  ;;  %3912 = vmatprep.mubr.bf16.mxu1 %v2541_v26  ;;  %10063 = vst [vmem:[#allocation142_spill] sm:$0xff] %v8244_v19  ;;  %1832 = vrot.lane.b32.xlu1 %v8244_v19, %s5621_s12  ;;  %v10066_v26 = vshll.u32 %v10065_v50, 16  ;;  %v10070_v19 = vld [vmem:[#allocation37_spill] sm:$0xff] }
 0x222   : > { %v3716_v13 = vpop.f32.mrf.mxu1  ;;  %v8240_v31 = vpop.f32.mrf.mxu0  ;;  %3488 = vmatmul.mubr.bf16.gmra.mxu0 %v2024_v0  ;;  %v2545_v0 = vsel %vm1838_vm4, %v10067_v42, %v1775_v29  ;;  %v10071_v29 = vshll.u32 %v10070_v19, 16 }
 0x223   : > { %10062 = vst [vmem:[#allocation10_spill] sm:$0xff] %v8240_v31  ;;  %3495 = vmatprep.mubr.bf16.mxu0 %v2235_v1  ;;  %v1316_v18 = vrot.slane %v10066_v26, 1  ;;  %v2028_v1 = vsel %vm1838_vm4, %v7456_v39, %v1514_v15  ;;  %v1777_v7 = vpop.permute.xlu0 %1776  ;;  %v10072_v39 = vld [vmem:[#allocation15_spill] sm:$0xff]  ;;  %v5521_v15 = vld [vmem:[%s5716_s23 + $0x100] sm:$0xff]  }
 0x224   : > { %v8246_v9 = vpop.f32.mrf.mxu1  ;;  %v3299_v53 = vpop.f32.mrf.mxu0 }
 0x225   : > { %10064 = vst [vmem:[#allocation143_spill] sm:$0xff] %v8246_v9  ;;  %v10069_v53 = vshrl.u32 %v10065_v50, 16  ;;  %v1318_v9 = vrot.slane %v10071_v29, 1 }
 0x226   : > { %v3719_v13 = vpop.f32.mrf.mxu1  ;;  %v8257_v31 = vpop.f32.mrf.mxu0 }
 0x227   : > { %10068 = vst [vmem:[#allocation31_spill] sm:$0xff] %v8257_v31  ;;  %v1317_v13 = vor.u32 %v1316_v18, %v10069_v53  ;;  %v10076_v31 = vld [vmem:[#allocation16_spill] sm:$0xff] }
 0x228   : > { %v8259_v23 = vpop.f32.mrf.mxu1  ;;  %3913 = vmatmul.mubr.bf16.gmra.mxu1 %v2349_v16  ;;  %v3302_v26 = vpop.f32.mrf.mxu0 }
 0x229   : > { %3920 = vmatprep.mubr.bf16.mxu1 %v2545_v0  ;;  %v8270_v41 = vsel %vm1160_vm3, %v1317_v13, %v1318_v9  ;;  %v2351_v0 = vsel %vm1838_vm4, %v5521_v15, %v7873_v35  ;;  %v10073_v13 = vshrl.u32 %v10070_v19, 16 }
 0x22a   : > { %v3724_v30 = vpop.f32.mrf.mxu1  ;;  %v8267_v36 = vpop.f32.mrf.mxu0  ;;  %3496 = vmatmul.mubr.bf16.gmra.mxu0 %v2028_v1  ;;  %1834 = vrot.lane.b32.xlu1 %v8270_v41, %s5621_s12 }
 0x22b   : > { %5182 = vmatprep.mubr.msk.bf16.mxu0 %vm1838_vm4, %v10072_v39  ;;  %v2549_v30 = vsel %vm1838_vm4, %v7523_v47, %v1777_v7  ;;  %v1320_v29 = vor.u32 %v1318_v9, %v10073_v13  ;;  %v1779_v7 = vpop.permute.xlu1 %1778 }
 0x22c   : > { %v8272_v16 = vpop.f32.mrf.mxu1  ;;  %v3307_v50 = vpop.f32.mrf.mxu0 }
 0x22d   : > { %v8295_v35 = vsel %vm6455_vm7, %v1320_v29, 0 }
 0x22e   : > { %v3727_v18 = vpop.f32.mrf.mxu1  ;;  %v8283_v1 = vpop.f32.mrf.mxu0  ;;  %1836 = vrot.lane.b32.xlu0 %v8295_v35, %s5621_s12  ;;  %s5105_s12 = sshll.u32 %s10344_s13, 10 }
 0x22f   : > { %v10075_v18 = vld [vmem:[#allocation50_spill] sm:$0xff]  ;;  %s8710_s6 = scalar_lea.vmem %s9386_s2, %s5105_s12 }
 0x230   : > { %v8285_v26 = vpop.f32.mrf.mxu1  ;;  %3921 = vmatmul.mubr.bf16.gmra.mxu1 %v2351_v0  ;;  %v3310_v53 = vpop.f32.mrf.mxu0  ;;  %v5522_v0 = vld [vmem:[%s5716_s23 + $0x108] sm:$0xff]  }
 0x231   : > { %3928 = vmatprep.mubr.bf16.mxu1 %v2549_v30  ;;  %v2553_v30 = vsel %vm1838_vm4, %v7548_v54, %v1779_v7  ;;  %v2353_v62 = vsel %vm1838_vm4, %v5522_v0, %v7903_v61 }
 0x232   : > { %v3732_v39 = vpop.f32.mrf.mxu1  ;;  %v8289_v50 = vpop.f32.mrf.mxu0  ;;  %5183 = vmatmul.mubr.msk.bf16.vlgmr.msra.gmra.mxu0 %vm1838_vm4, %v10075_v18  ;;  %v10079_v18 = vld [vmem:[#allocation52_spill] sm:$0xff] }
 0x233   : > { %10074 = vst [vmem:[#allocation60_spill] sm:$0xff] %v8289_v50  ;;  %5186 = vmatprep.mubr.msk.bf16.mxu0 %vm1838_vm4, %v10076_v31 }
 0x234   : > { %v8297_v15 = vpop.f32.mrf.mxu1  ;;  %v3315_v19 = vpop.f32.mrf.mxu0 }
 0x235   : > { %v1781_v19 = vpop.permute.xlu0 %1780 }
 0x236   : > { %v3735_v9 = vpop.f32.mrf.mxu1  ;;  %v8308_v53 = vpop.f32.mrf.mxu0 }
 0x237   : > { %10077 = vst [vmem:[#allocation37_spill] sm:$0xff] %v8308_v53  ;;  %v10080_v9 = vld [vmem:[#allocation19_spill] sm:$0xff]  ;;  %v2557_v53 = vsel %vm1838_vm4, %v7533_v46, %v1781_v19 }
 0x238   : > { %v8310_v13 = vpop.f32.mrf.mxu1  ;;  %3929 = vmatmul.mubr.bf16.gmra.mxu1 %v2353_v62  ;;  %v3318_v29 = vpop.f32.mrf.mxu0  ;;  %v5523_v62 = vld [vmem:[%s5716_s23 + $0x110] sm:$0xff]  }
 0x239   : > { %3936 = vmatprep.mubr.bf16.mxu1 %v2553_v30  ;;  %v2355_v30 = vsel %vm1838_vm4, %v5523_v62, %v7932_v51 }
 0x23a   : > { %v3740_v31 = vpop.f32.mrf.mxu1  ;;  %v8312_v39 = vpop.f32.mrf.mxu0  ;;  %5187 = vmatmul.mubr.msk.bf16.gmra.mxu0 %vm1838_vm4, %v10079_v18 }
 0x23b   : > { %10078 = vst [vmem:[#allocation15_spill] sm:$0xff] %v8312_v39  ;;  %5190 = vmatprep.mubr.msk.bf16.mxu0 %vm1838_vm4, %v10080_v9  ;;  %v10083_v9 = vld [vmem:[#allocation56_spill] sm:$0xff] }
 0x23c   : > { %v8316_v7 = vpop.f32.mrf.mxu1  ;;  %v3323_v61 = vpop.f32.mrf.mxu0 }
 0x23d   : > { %v1783_v61 = vpop.permute.xlu1 %1782 }
 0x23e   : > { %v3743_v0 = vpop.f32.mrf.mxu1  ;;  %v8325_v29 = vpop.f32.mrf.mxu0  ;;  %v2561_v62 = vsel %vm1838_vm4, %v7581_v11, %v1783_v61 }
 0x23f   : > { %10081 = vst [vmem:[#allocation50_spill] sm:$0xff] %v8325_v29 }
 0x240   : > { %v8327_v31 = vpop.f32.mrf.mxu1  ;;  %3937 = vmatmul.mubr.bf16.gmra.mxu1 %v2355_v30  ;;  %v3326_v18 = vpop.f32.mrf.mxu0  ;;  %v5524_v30 = vld [vmem:[%s5716_s23 + $0x118] sm:$0xff]  }
 0x241   : > { %3944 = vmatprep.mubr.bf16.mxu1 %v2557_v53 }
 0x242   : > { %v3748_v50 = vpop.f32.mrf.mxu1  ;;  %v8329_v39 = vpop.f32.mrf.mxu0  ;;  %5191 = vmatmul.mubr.msk.bf16.gmra.mxu0 %vm1838_vm4, %v10083_v9 }
 0x243   : > { %10082 = vst [vmem:[#allocation16_spill] sm:$0xff] %v8329_v39  ;;  %5194 = vmatprep.mubr.msk.bf16.mxu0 %vm1838_vm4, %v9857_v60  ;;  %v2357_v50 = vsel %vm1838_vm4, %v5524_v30, %v7962_v3  ;;  %v1785_v60 = vpop.permute.xlu0 %1784  ;;  %v5525_v30 = vld [vmem:[%s5716_s23 + $0x120] sm:$0xff]  }
 0x244   : > { %v8333_v19 = vpop.f32.mrf.mxu1  ;;  %v3331_v51 = vpop.f32.mrf.mxu0 }
 0x246   : > { %v3751_v0 = vpop.f32.mrf.mxu1  ;;  %v8342_v53 = vpop.f32.mrf.mxu0 }
 0x247   : > { %10084 = vst [vmem:[#allocation52_spill] sm:$0xff] %v8342_v53  ;;  %v2565_v0 = vsel %vm1838_vm4, %v7563_v5, %v1785_v60 }
 0x248   : > { %v8344_v18 = vpop.f32.mrf.mxu1  ;;  %3945 = vmatmul.mubr.bf16.gmra.mxu1 %v2357_v50  ;;  %v3334_v9 = vpop.f32.mrf.mxu0 }
 0x249   : > { %3952 = vmatprep.mubr.bf16.mxu1 %v2561_v62 }
 0x24a   : > { %v3756_v39 = vpop.f32.mrf.mxu1  ;;  %v8346_v29 = vpop.f32.mrf.mxu0  ;;  %5195 = vmatmul.mubr.msk.bf16.gmra.mxu0 %vm1838_vm4, %v9870_v57 }
 0x24b   : > { %10085 = vst [vmem:[#allocation19_spill] sm:$0xff] %v8346_v29  ;;  %5198 = vmatprep.mubr.msk.bf16.mxu0 %vm1838_vm4, %v9882_v8  ;;  %v2359_v39 = vsel %vm1838_vm4, %v5525_v30, %v7991_v32  ;;  %v1787_v8 = vpop.permute.xlu1 %1786  ;;  %v5526_v30 = vld [vmem:[%s5716_s23 + $0x128] sm:$0xff]  }
 0x24c   : > { %v8350_v61 = vpop.f32.mrf.mxu1  ;;  %v3339_v3 = vpop.f32.mrf.mxu0 }
 0x24e   : > { %v3759_v51 = vpop.f32.mrf.mxu1  ;;  %v8359_v62 = vpop.f32.mrf.mxu0 }
 0x24f   : > { %10086 = vst [vmem:[#allocation56_spill] sm:$0xff] %v8359_v62  ;;  %v2569_v51 = vsel %vm1838_vm4, %v7604_v34, %v1787_v8 }
 0x250   : > { %v8361_v50 = vpop.f32.mrf.mxu1  ;;  %3953 = vmatmul.mubr.bf16.gmra.mxu1 %v2359_v39  ;;  %v3342_v57 = vpop.f32.mrf.mxu0 }
 0x251   : > { %3960 = vmatprep.mubr.bf16.mxu1 %v2565_v0  ;;  %v2361_v0 = vsel %vm1838_vm4, %v5526_v30, %v8021_v43  ;;  %v5527_v30 = vld [vmem:[%s5716_s23 + $0x130] sm:$0xff]  }
 0x252   : > { %v3764_v9 = vpop.f32.mrf.mxu1  ;;  %v8363_v53 = vpop.f32.mrf.mxu0  ;;  %5199 = vmatmul.mubr.msk.bf16.gmra.mxu0 %vm1838_vm4, %v9892_v10 }
 0x253   : > { %10087 = vst [vmem:[#allocation144_spill] sm:$0xff] %v8363_v53  ;;  %5202 = vmatprep.mubr.msk.bf16.mxu0 %vm1838_vm4, %v9901_v63  ;;  %v1789_v63 = vpop.permute.xlu0 %1788 }
 0x254   : > { %v8367_v60 = vpop.f32.mrf.mxu1  ;;  %v3347_v32 = vpop.f32.mrf.mxu0 }
 0x256   : > { %v3767_v3 = vpop.f32.mrf.mxu1  ;;  %v8376_v39 = vpop.f32.mrf.mxu0 }
 0x257   : > { %10088 = vst [vmem:[#allocation145_spill] sm:$0xff] %v8376_v39  ;;  %v2573_v3 = vsel %vm1838_vm4, %v7591_v17, %v1789_v63 }
 0x258   : > { %v8378_v57 = vpop.f32.mrf.mxu1  ;;  %3961 = vmatmul.mubr.bf16.gmra.mxu1 %v2361_v0  ;;  %v3350_v10 = vpop.f32.mrf.mxu0 }
 0x259   : > { %3968 = vmatprep.mubr.bf16.mxu1 %v2569_v51  ;;  %v2363_v51 = vsel %vm1838_vm4, %v5527_v30, %v8050_v28  ;;  %v5528_v30 = vld [vmem:[%s5716_s23 + $0x138] sm:$0xff]  }
 0x25a   : > { %v3772_v9 = vpop.f32.mrf.mxu1  ;;  %v8380_v53 = vpop.f32.mrf.mxu0  ;;  %5203 = vmatmul.mubr.msk.bf16.gmra.mxu0 %vm1838_vm4, %v9910_v24 }
 0x25b   : > { %10089 = vst [vmem:[#allocation146_spill] sm:$0xff] %v8380_v53  ;;  %5206 = vmatprep.mubr.msk.bf16.mxu0 %vm1838_vm4, %v9918_v4  ;;  %v1791_v4 = vpop.permute.xlu1 %1790 }
 0x25c   : > { %v8384_v8 = vpop.f32.mrf.mxu1  ;;  %v3355_v43 = vpop.f32.mrf.mxu0 }
 0x25e   : > { %v3775_v32 = vpop.f32.mrf.mxu1  ;;  %v8393_v0 = vpop.f32.mrf.mxu0 }
 0x25f   : > { %10090 = vst [vmem:[#allocation147_spill] sm:$0xff] %v8393_v0  ;;  %v2577_v32 = vsel %vm1838_vm4, %v7635_v44, %v1791_v4 }
 0x260   : > { %v8395_v10 = vpop.f32.mrf.mxu1  ;;  %3969 = vmatmul.mubr.bf16.gmra.mxu1 %v2363_v51  ;;  %v3358_v24 = vpop.f32.mrf.mxu0 }
 0x261   : > { %3976 = vmatprep.mubr.bf16.mxu1 %v2573_v3  ;;  %v2365_v3 = vsel %vm1838_vm4, %v5528_v30, %v8080_v49  ;;  %v5529_v30 = vld [vmem:[%s5716_s23 + $0x140] sm:$0xff]  }
 0x262   : > { %v3780_v9 = vpop.f32.mrf.mxu1  ;;  %v8397_v39 = vpop.f32.mrf.mxu0  ;;  %5207 = vmatmul.mubr.msk.bf16.gmra.mxu0 %vm1838_vm4, %v9929_v48 }
 0x263   : > { %10091 = vst [vmem:[#allocation148_spill] sm:$0xff] %v8397_v39  ;;  %5210 = vmatprep.mubr.msk.bf16.mxu0 %vm1838_vm4, %v9938_v6  ;;  %v1793_v6 = vpop.permute.xlu0 %1792 }
 0x264   : > { %v8401_v63 = vpop.f32.mrf.mxu1  ;;  %v3363_v28 = vpop.f32.mrf.mxu0 }
 0x266   : > { %v3783_v43 = vpop.f32.mrf.mxu1  ;;  %v8410_v51 = vpop.f32.mrf.mxu0 }
 0x267   : > { %10092 = vst [vmem:[#allocation149_spill] sm:$0xff] %v8410_v51  ;;  %v2581_v43 = vsel %vm1838_vm4, %v7619_v21, %v1793_v6 }
 0x268   : > { %v8412_v24 = vpop.f32.mrf.mxu1  ;;  %3977 = vmatmul.mubr.bf16.gmra.mxu1 %v2365_v3  ;;  %v3366_v48 = vpop.f32.mrf.mxu0 }
 0x269   : > { %3984 = vmatprep.mubr.bf16.mxu1 %v2577_v32  ;;  %v2367_v32 = vsel %vm1838_vm4, %v5529_v30, %v8109_v45 }
 0x26a   : > { %v3788_v9 = vpop.f32.mrf.mxu1  ;;  %v8414_v39 = vpop.f32.mrf.mxu0  ;;  %5211 = vmatmul.mubr.msk.bf16.gmra.mxu0 %vm1838_vm4, %v9947_v33 }
 0x26b   : > { %10093 = vst [vmem:[#allocation150_spill] sm:$0xff] %v8414_v39  ;;  %5214 = vmatprep.mubr.msk.bf16.mxu0 %vm1838_vm4, %v9956_v38  ;;  %v1795_v38 = vpop.permute.xlu1 %1794 }
 0x26c   : > { %v8418_v4 = vpop.f32.mrf.mxu1  ;;  %v3371_v49 = vpop.f32.mrf.mxu0 }
 0x26e   : > { %v3791_v28 = vpop.f32.mrf.mxu1  ;;  %v8427_v3 = vpop.f32.mrf.mxu0 }
 0x26f   : > { %10094 = vst [vmem:[#allocation151_spill] sm:$0xff] %v8427_v3  ;;  %v10096_v28 = vld [vmem:[#allocation28_spill] sm:$0xff] }
 0x270   : > { %v8429_v48 = vpop.f32.mrf.mxu1  ;;  %3985 = vmatmul.mubr.bf16.gmra.mxu1 %v2367_v32  ;;  %v3374_v33 = vpop.f32.mrf.mxu0  ;;  %v2585_v30 = vsel %vm1838_vm4, %v10096_v28, %v1795_v38  ;;  %v5530_v32 = vld [vmem:[%s5716_s23 + $0x148] sm:$0xff]  }
 0x271   : > { %3992 = vmatprep.mubr.bf16.mxu1 %v2581_v43  ;;  %v2369_v43 = vsel %vm1838_vm4, %v5530_v32, %v8139_v2  ;;  %v10100_v32 = vld [vmem:[#allocation86_spill] sm:$0xff] }
 0x272   : > { %v3796_v9 = vpop.f32.mrf.mxu1  ;;  %v8431_v51 = vpop.f32.mrf.mxu0  ;;  %5215 = vmatmul.mubr.msk.bf16.gmra.mxu0 %vm1838_vm4, %v9965_v59 }
 0x273   : > { %10095 = vst [vmem:[#allocation152_spill] sm:$0xff] %v8431_v51  ;;  %5218 = vmatprep.mubr.msk.bf16.mxu0 %vm1838_vm4, %v9974_v12  ;;  %v1797_v12 = vpop.permute.xlu0 %1796 }
 0x274   : > { %v8435_v6 = vpop.f32.mrf.mxu1  ;;  %v3379_v45 = vpop.f32.mrf.mxu0 }
 0x275   : > { %v10099_v45 = vld [vmem:[#allocation78_spill] sm:$0xff] }
 0x276   : > { %v3799_v49 = vpop.f32.mrf.mxu1  ;;  %v8444_v33 = vpop.f32.mrf.mxu0 }
 0x277   : > { %10097 = vst [vmem:[#allocation28_spill] sm:$0xff] %v8444_v33  ;;  %v2589_v33 = vsel %vm1838_vm4, %v10100_v32, %v1797_v12 }
 0x278   : > { %v8446_v9 = vpop.f32.mrf.mxu1  ;;  %3993 = vmatmul.mubr.bf16.gmra.mxu1 %v2369_v43  ;;  %v3382_v59 = vpop.f32.mrf.mxu0  ;;  %v5531_v43 = vld [vmem:[%s5716_s23 + $0x150] sm:$0xff]  }
 0x279   : > { %4000 = vmatprep.mubr.bf16.mxu1 %v2585_v30 }
 0x27a   : > { %v3804_v51 = vpop.f32.mrf.mxu1  ;;  %v8448_v3 = vpop.f32.mrf.mxu0  ;;  %5219 = vmatmul.mubr.msk.bf16.gmra.mxu0 %vm1838_vm4, %v9983_v25 }
 0x27b   : > { %10098 = vst [vmem:[#allocation153_spill] sm:$0xff] %v8448_v3  ;;  %5222 = vmatprep.mubr.msk.bf16.mxu0 %vm1838_vm4, %v10099_v45  ;;  %v2371_v51 = vsel %vm1838_vm4, %v5531_v43, %v8168_v14  ;;  %v1799_v45 = vpop.permute.xlu1 %1798  ;;  %v10104_v43 = vld [vmem:[#allocation90_spill] sm:$0xff] }
 0x27c   : > { %v8452_v38 = vpop.f32.mrf.mxu1  ;;  %v3387_v2 = vpop.f32.mrf.mxu0 }
 0x27d   : > { %v10103_v2 = vld [vmem:[#allocation80_spill] sm:$0xff] }
 0x27e   : > { %v3807_v49 = vpop.f32.mrf.mxu1  ;;  %v8461_v30 = vpop.f32.mrf.mxu0 }
 0x27f   : > { %10101 = vst [vmem:[#allocation78_spill] sm:$0xff] %v8461_v30  ;;  %v2593_v30 = vsel %vm1838_vm4, %v10104_v43, %v1799_v45 }
 0x280   : > { %v8463_v59 = vpop.f32.mrf.mxu1  ;;  %4001 = vmatmul.mubr.bf16.gmra.mxu1 %v2371_v51  ;;  %v3390_v25 = vpop.f32.mrf.mxu0  ;;  %v5532_v51 = vld [vmem:[%s5716_s23 + $0x158] sm:$0xff]  }
 0x281   : > { %4008 = vmatprep.mubr.bf16.mxu1 %v2589_v33 }
 0x282   : > { %v3812_v3 = vpop.f32.mrf.mxu1  ;;  %v8465_v39 = vpop.f32.mrf.mxu0  ;;  %5223 = vmatmul.mubr.msk.bf16.gmra.mxu0 %vm1838_vm4, %v10002_v37 }
 0x283   : > { %10102 = vst [vmem:[#allocation86_spill] sm:$0xff] %v8465_v39  ;;  %5226 = vmatprep.mubr.msk.bf16.mxu0 %vm1838_vm4, %v10103_v2  ;;  %v2373_v3 = vsel %vm1838_vm4, %v5532_v51, %v8222_v22  ;;  %v1801_v2 = vpop.permute.xlu0 %1800 }
 0x284   : > { %v8469_v12 = vpop.f32.mrf.mxu1  ;;  %v3395_v14 = vpop.f32.mrf.mxu0 }
 0x286   : > { %v3815_v49 = vpop.f32.mrf.mxu1  ;;  %v8478_v33 = vpop.f32.mrf.mxu0 }
 0x287   : > { %10105 = vst [vmem:[#allocation80_spill] sm:$0xff] %v8478_v33  ;;  %v10107_v49 = vld [vmem:[#allocation93_spill] sm:$0xff] }
 0x288   : > { %v8480_v25 = vpop.f32.mrf.mxu1  ;;  %4009 = vmatmul.mubr.bf16.gmra.mxu1 %v2373_v3  ;;  %v3398_v37 = vpop.f32.mrf.mxu0  ;;  %v2597_v51 = vsel %vm1838_vm4, %v10107_v49, %v1801_v2 }
 0x289   : > { %4016 = vmatprep.mubr.bf16.mxu1 %v2593_v30  ;;  %v5533_v30 = vld [vmem:[%s5716_s23 + $0x160] sm:$0xff]  }
 0x28a   : > { %v3820_v39 = vpop.f32.mrf.mxu1  ;;  %v8482_v0 = vpop.f32.mrf.mxu0  ;;  %5227 = vmatmul.mubr.msk.bf16.gmra.mxu0 %vm1838_vm4, %v10021_v20 }
 0x28b   : > { %10106 = vst [vmem:[#allocation90_spill] sm:$0xff] %v8482_v0  ;;  %5230 = vmatprep.mubr.msk.bf16.mxu0 %vm1838_vm4, %v10030_v52  ;;  %v10109_v39 = vld [vmem:[#allocation40_spill] sm:$0xff]  ;;  %v1803_v52 = vpop.permute.xlu1 %1802 }
 0x28c   : > { %v8486_v45 = vpop.f32.mrf.mxu1  ;;  %v3403_v22 = vpop.f32.mrf.mxu0  ;;  %v2375_v37 = vsel %vm1838_vm4, %v5533_v30, %v10109_v39  ;;  %v10111_v30 = vld [vmem:[#allocation96_spill] sm:$0xff] }
 0x28d   : > { %v2601_v39 = vsel %vm1838_vm4, %v10111_v30, %v1803_v52 }
 0x28e   : > { %v3823_v14 = vpop.f32.mrf.mxu1  ;;  %v8492_v3 = vpop.f32.mrf.mxu0 }
 0x28f   : > { %10108 = vst [vmem:[#allocation93_spill] sm:$0xff] %v8492_v3 }
 0x290   : > { %v8497_v33 = vpop.f32.mrf.mxu1  ;;  %4017 = vmatmul.mubr.bf16.gmra.mxu1 %v2375_v37  ;;  %v3406_v20 = vpop.f32.mrf.mxu0 }
 0x291   : > { %4024 = vmatprep.mubr.bf16.mxu1 %v2597_v51  ;;  %v5534_v51 = vld [vmem:[%s5716_s23 + $0x168] sm:$0xff]  }
 0x292   : > { %v3828_v0 = vpop.f32.mrf.mxu1  ;;  %v8499_v53 = vpop.f32.mrf.mxu0  ;;  %5231 = vmatmul.mubr.msk.bf16.gmra.mxu0 %vm1838_vm4, %v10037_v55 }
 0x293   : > { %10110 = vst [vmem:[#allocation40_spill] sm:$0xff] %v8499_v53  ;;  %5234 = vmatprep.mubr.msk.bf16.mxu0 %vm1838_vm4, %v10047_v27  ;;  %v10113_v0 = vld [vmem:[#allocation44_spill] sm:$0xff]  ;;  %v1805_v27 = vpop.permute.xlu0 %1804 }
 0x294   : > { %v8503_v2 = vpop.f32.mrf.mxu1  ;;  %v3411_v22 = vpop.f32.mrf.mxu0  ;;  %v2377_v20 = vsel %vm1838_vm4, %v5534_v51, %v10113_v0  ;;  %v10115_v51 = vld [vmem:[#allocation99_spill] sm:$0xff] }
 0x295   : > { %v2605_v0 = vsel %vm1838_vm4, %v10115_v51, %v1805_v27 }
 0x296   : > { %v3831_v14 = vpop.f32.mrf.mxu1  ;;  %v8509_v37 = vpop.f32.mrf.mxu0 }
 0x297   : > { %10112 = vst [vmem:[#allocation96_spill] sm:$0xff] %v8509_v37 }
 0x298   : > { %v8514_v53 = vpop.f32.mrf.mxu1  ;;  %4025 = vmatmul.mubr.bf16.gmra.mxu1 %v2377_v20  ;;  %v3414_v55 = vpop.f32.mrf.mxu0 }
 0x299   : > { %4032 = vmatprep.mubr.bf16.mxu1 %v2601_v39  ;;  %v5535_v39 = vld [vmem:[%s5716_s23 + $0x170] sm:$0xff]  }
 0x29a   : > { %v3836_v3 = vpop.f32.mrf.mxu1  ;;  %v8516_v62 = vpop.f32.mrf.mxu0  ;;  %5235 = vmatmul.mubr.msk.bf16.gmra.mxu0 %vm1838_vm4, %v10057_v56 }
 0x29b   : > { %10114 = vst [vmem:[#allocation44_spill] sm:$0xff] %v8516_v62  ;;  %5238 = vmatprep.mubr.msk.bf16.mxu0 %vm1838_vm4, %v10067_v42  ;;  %v10117_v3 = vld [vmem:[#allocation46_spill] sm:$0xff]  ;;  %v1807_v42 = vpop.permute.xlu1 %1806 }
 0x29c   : > { %v8520_v52 = vpop.f32.mrf.mxu1  ;;  %v3419_v22 = vpop.f32.mrf.mxu0  ;;  %v2379_v55 = vsel %vm1838_vm4, %v5535_v39, %v10117_v3  ;;  %v10120_v39 = vld [vmem:[#allocation101_spill] sm:$0xff] }
 0x29d   : > { %v2609_v3 = vsel %vm1838_vm4, %v10120_v39, %v1807_v42 }
 0x29e   : > { %v3839_v14 = vpop.f32.mrf.mxu1  ;;  %v8526_v20 = vpop.f32.mrf.mxu0 }
 0x29f   : > { %10116 = vst [vmem:[#allocation99_spill] sm:$0xff] %v8526_v20 }
 0x2a0   : > { %v8531_v37 = vpop.f32.mrf.mxu1  ;;  %4033 = vmatmul.mubr.bf16.gmra.mxu1 %v2379_v55  ;;  %v3422_v56 = vpop.f32.mrf.mxu0 }
 0x2a1   : > { %4040 = vmatprep.mubr.bf16.mxu1 %v2605_v0  ;;  %v5536_v0 = vld [vmem:[%s5716_s23 + $0x178] sm:$0xff]  }
 0x2a2   : > { %v3844_v62 = vpop.f32.mrf.mxu1  ;;  %v8533_v29 = vpop.f32.mrf.mxu0  ;;  %5239 = vmatmul.mubr.msk.bf16.gmra.mxu0 %vm1838_vm4, %v7523_v47 }
 0x2a3   : > { %10118 = vst [vmem:[#allocation46_spill] sm:$0xff] %v8533_v29  ;;  %5242 = vmatprep.mubr.msk.bf16.mxu0 %vm1838_vm4, %v7548_v54  ;;  %v10122_v62 = vld [vmem:[#allocation48_spill] sm:$0xff]  ;;  %v1809_v54 = vpop.permute.xlu0 %1808 }
 0x2a4   : > { %v8537_v27 = vpop.f32.mrf.mxu1  ;;  %v3427_v22 = vpop.f32.mrf.mxu0  ;;  %v2381_v56 = vsel %vm1838_vm4, %v5536_v0, %v10122_v62  ;;  %v10125_v0 = vld [vmem:[#allocation105_spill] sm:$0xff] }
 0x2a5   : > { %10119 = vst [vmem:[#allocation154_spill] sm:$0xff] %v8537_v27  ;;  %v2613_v62 = vsel %vm1838_vm4, %v10125_v0, %v1809_v54 }
 0x2a6   : > { %v3847_v14 = vpop.f32.mrf.mxu1  ;;  %v8543_v55 = vpop.f32.mrf.mxu0 }
 0x2a7   : > { %10121 = vst [vmem:[#allocation101_spill] sm:$0xff] %v8543_v55 }
 0x2a8   : > { %v8548_v29 = vpop.f32.mrf.mxu1  ;;  %4041 = vmatmul.mubr.bf16.gmra.mxu1 %v2381_v56  ;;  %v3430_v47 = vpop.f32.mrf.mxu0 }
 0x2a9   : > { %4048 = vmatprep.mubr.bf16.mxu1 %v2609_v3  ;;  %v5537_v3 = vld [vmem:[%s5716_s23 + $0x180] sm:$0xff]  }
 0x2aa   : > { %v3852_v20 = vpop.f32.mrf.mxu1  ;;  %v8550_v27 = vpop.f32.mrf.mxu0  ;;  %5243 = vmatmul.mubr.msk.bf16.gmra.mxu0 %vm1838_vm4, %v7533_v46 }
 0x2ab   : > { %10123 = vst [vmem:[#allocation48_spill] sm:$0xff] %v8550_v27  ;;  %5246 = vmatprep.mubr.msk.bf16.mxu0 %vm1838_vm4, %v7581_v11  ;;  %v10127_v20 = vld [vmem:[#allocation49_spill] sm:$0xff]  ;;  %v1811_v11 = vpop.permute.xlu1 %1810 }
 0x2ac   : > { %v8554_v42 = vpop.f32.mrf.mxu1  ;;  %v3435_v22 = vpop.f32.mrf.mxu0  ;;  %v2383_v47 = vsel %vm1838_vm4, %v5537_v3, %v10127_v20  ;;  %v10130_v3 = vld [vmem:[#allocation107_spill] sm:$0xff] }
 0x2ad   : > { %10124 = vst [vmem:[#allocation155_spill] sm:$0xff] %v8554_v42  ;;  %v2617_v20 = vsel %vm1838_vm4, %v10130_v3, %v1811_v11 }
 0x2ae   : > { %v3855_v14 = vpop.f32.mrf.mxu1  ;;  %v8560_v56 = vpop.f32.mrf.mxu0 }
 0x2af   : > { %10126 = vst [vmem:[#allocation105_spill] sm:$0xff] %v8560_v56 }
 0x2b0   : > { %v8565_v55 = vpop.f32.mrf.mxu1  ;;  %4049 = vmatmul.mubr.bf16.gmra.mxu1 %v2383_v47  ;;  %v3438_v46 = vpop.f32.mrf.mxu0 }
 0x2b1   : > { %4056 = vmatprep.mubr.bf16.mxu1 %v2613_v62  ;;  %v5538_v62 = vld [vmem:[%s5716_s23 + $0x188] sm:$0xff]  }
 0x2b2   : > { %v3860_v27 = vpop.f32.mrf.mxu1  ;;  %v8567_v42 = vpop.f32.mrf.mxu0  ;;  %5247 = vmatmul.mubr.msk.bf16.gmra.mxu0 %vm1838_vm4, %v7563_v5 }
 0x2b3   : > { %10128 = vst [vmem:[#allocation49_spill] sm:$0xff] %v8567_v42  ;;  %5250 = vmatprep.mubr.msk.bf16.mxu0 %vm1838_vm4, %v7604_v34  ;;  %v10132_v27 = vld [vmem:[#allocation51_spill] sm:$0xff]  ;;  %v1813_v34 = vpop.permute.xlu0 %1812 }
 0x2b4   : > { %v8571_v54 = vpop.f32.mrf.mxu1  ;;  %v3443_v22 = vpop.f32.mrf.mxu0  ;;  %v2385_v46 = vsel %vm1838_vm4, %v5538_v62, %v10132_v27  ;;  %v10135_v62 = vld [vmem:[#allocation111_spill] sm:$0xff] }
 0x2b5   : > { %10129 = vst [vmem:[#allocation156_spill] sm:$0xff] %v8571_v54  ;;  %v2621_v27 = vsel %vm1838_vm4, %v10135_v62, %v1813_v34 }
 0x2b6   : > { %v3863_v14 = vpop.f32.mrf.mxu1  ;;  %v8577_v47 = vpop.f32.mrf.mxu0 }
 0x2b7   : > { %10131 = vst [vmem:[#allocation107_spill] sm:$0xff] %v8577_v47 }
 0x2b8   : > { %v8582_v42 = vpop.f32.mrf.mxu1  ;;  %4057 = vmatmul.mubr.bf16.gmra.mxu1 %v2385_v46  ;;  %v3446_v5 = vpop.f32.mrf.mxu0 }
 0x2b9   : > { %4064 = vmatprep.mubr.bf16.mxu1 %v2617_v20  ;;  %v5539_v20 = vld [vmem:[%s5716_s23 + $0x190] sm:$0xff]  }
 0x2ba   : > { %v3868_v56 = vpop.f32.mrf.mxu1  ;;  %v8584_v54 = vpop.f32.mrf.mxu0  ;;  %5251 = vmatmul.mubr.msk.bf16.gmra.mxu0 %vm1838_vm4, %v7591_v17 }
 0x2bb   : > { %10133 = vst [vmem:[#allocation51_spill] sm:$0xff] %v8584_v54  ;;  %5254 = vmatprep.mubr.msk.bf16.mxu0 %vm1838_vm4, %v7635_v44  ;;  %v10137_v56 = vld [vmem:[#allocation53_spill] sm:$0xff]  ;;  %v1815_v44 = vpop.permute.xlu1 %1814 }
 0x2bc   : > { %v8588_v11 = vpop.f32.mrf.mxu1  ;;  %v3451_v22 = vpop.f32.mrf.mxu0  ;;  %v2387_v5 = vsel %vm1838_vm4, %v5539_v20, %v10137_v56  ;;  %v10140_v20 = vld [vmem:[#allocation113_spill] sm:$0xff] }
 0x2bd   : > { %10134 = vst [vmem:[#allocation157_spill] sm:$0xff] %v8588_v11  ;;  %v2625_v56 = vsel %vm1838_vm4, %v10140_v20, %v1815_v44 }
 0x2be   : > { %v3871_v14 = vpop.f32.mrf.mxu1  ;;  %v8594_v46 = vpop.f32.mrf.mxu0 }
 0x2bf   : > { %10136 = vst [vmem:[#allocation111_spill] sm:$0xff] %v8594_v46 }
 0x2c0   : > { %v8599_v47 = vpop.f32.mrf.mxu1  ;;  %4065 = vmatmul.mubr.bf16.gmra.mxu1 %v2387_v5  ;;  %v3454_v17 = vpop.f32.mrf.mxu0 }
 0x2c1   : > { %4072 = vmatprep.mubr.bf16.mxu1 %v2621_v27  ;;  %v5540_v27 = vld [vmem:[%s5716_s23 + $0x198] sm:$0xff]  }
 0x2c2   : > { %v3876_v54 = vpop.f32.mrf.mxu1  ;;  %v8601_v11 = vpop.f32.mrf.mxu0  ;;  %5255 = vmatmul.mubr.msk.bf16.gmra.mxu0 %vm1838_vm4, %v7619_v21 }
 0x2c3   : > { %10138 = vst [vmem:[#allocation53_spill] sm:$0xff] %v8601_v11  ;;  %5258 = vmatprep.mubr.msk.bf16.mxu0 %vm1838_vm4, %v10096_v28  ;;  %v10142_v54 = vld [vmem:[#allocation54_spill] sm:$0xff]  ;;  %v1817_v28 = vpop.permute.xlu0 %1816 }
 0x2c4   : > { %v8605_v34 = vpop.f32.mrf.mxu1  ;;  %v3459_v22 = vpop.f32.mrf.mxu0  ;;  %v2389_v17 = vsel %vm1838_vm4, %v5540_v27, %v10142_v54  ;;  %v10145_v27 = vld [vmem:[#allocation117_spill] sm:$0xff] }
 0x2c5   : > { %10139 = vst [vmem:[#allocation158_spill] sm:$0xff] %v8605_v34  ;;  %v2629_v54 = vsel %vm1838_vm4, %v10145_v27, %v1817_v28 }
 0x2c6   : > { %v3879_v14 = vpop.f32.mrf.mxu1  ;;  %v8611_v5 = vpop.f32.mrf.mxu0 }
 0x2c7   : > { %10141 = vst [vmem:[#allocation113_spill] sm:$0xff] %v8611_v5 }
 0x2c8   : > { %v8616_v11 = vpop.f32.mrf.mxu1  ;;  %4073 = vmatmul.mubr.bf16.gmra.mxu1 %v2389_v17  ;;  %v3462_v21 = vpop.f32.mrf.mxu0 }
 0x2c9   : > { %4080 = vmatprep.mubr.bf16.mxu1 %v2625_v56  ;;  %v5541_v56 = vld [vmem:[%s5716_s23 + $0x1a0] sm:$0xff]  }
 0x2ca   : > { %v3884_v46 = vpop.f32.mrf.mxu1  ;;  %v8618_v34 = vpop.f32.mrf.mxu0  ;;  %5259 = vmatmul.mubr.msk.bf16.gmra.mxu0 %vm1838_vm4, %v10100_v32 }
 0x2cb   : > { %10143 = vst [vmem:[#allocation54_spill] sm:$0xff] %v8618_v34  ;;  %5262 = vmatprep.mubr.msk.bf16.mxu0 %vm1838_vm4, %v10104_v43  ;;  %v10147_v46 = vld [vmem:[#allocation57_spill] sm:$0xff]  ;;  %v1819_v43 = vpop.permute.xlu1 %1818 }
 0x2cc   : > { %v8622_v44 = vpop.f32.mrf.mxu1  ;;  %v3467_v22 = vpop.f32.mrf.mxu0  ;;  %v2391_v21 = vsel %vm1838_vm4, %v5541_v56, %v10147_v46  ;;  %v10151_v56 = vld [vmem:[#allocation119_spill] sm:$0xff] }
 0x2cd   : > { %10144 = vst [vmem:[#allocation159_spill] sm:$0xff] %v8622_v44  ;;  %v2633_v46 = vsel %vm1838_vm4, %v10151_v56, %v1819_v43 }
 0x2ce   : > { %v3887_v14 = vpop.f32.mrf.mxu1  ;;  %v8628_v17 = vpop.f32.mrf.mxu0 }
 0x2cf   : > { %10146 = vst [vmem:[#allocation117_spill] sm:$0xff] %v8628_v17 }
 0x2d0   : > { %v8633_v5 = vpop.f32.mrf.mxu1  ;;  %4081 = vmatmul.mubr.bf16.gmra.mxu1 %v2391_v21  ;;  %v3470_v32 = vpop.f32.mrf.mxu0 }
 0x2d1   : > { %10148 = vst [vmem:[#allocation57_spill] sm:$0xff] %v8633_v5  ;;  %4088 = vmatprep.mubr.bf16.mxu1 %v2629_v54  ;;  %v5542_v54 = vld [vmem:[%s5716_s23 + $0x1a8] sm:$0xff]  }
 0x2d2   : > { %v3892_v34 = vpop.f32.mrf.mxu1  ;;  %v8635_v44 = vpop.f32.mrf.mxu0  ;;  %5263 = vmatmul.mubr.msk.bf16.gmra.mxu0 %vm1838_vm4, %v10107_v49 }
 0x2d3   : > { %10149 = vst [vmem:[#allocation160_spill] sm:$0xff] %v8635_v44  ;;  %5266 = vmatprep.mubr.msk.bf16.mxu0 %vm1838_vm4, %v10111_v30  ;;  %v10153_v34 = vld [vmem:[#allocation61_spill] sm:$0xff]  ;;  %v1821_v30 = vpop.permute.xlu0 %1820 }
 0x2d4   : > { %v8639_v28 = vpop.f32.mrf.mxu1  ;;  %v3475_v22 = vpop.f32.mrf.mxu0  ;;  %v2393_v32 = vsel %vm1838_vm4, %v5542_v54, %v10153_v34  ;;  %v10156_v54 = vld [vmem:[#allocation122_spill] sm:$0xff] }
 0x2d5   : > { %10150 = vst [vmem:[#allocation161_spill] sm:$0xff] %v8639_v28  ;;  %v2637_v34 = vsel %vm1838_vm4, %v10156_v54, %v1821_v30  ;;  %v1823_v30 = vpop.permute.xlu1 %1822 }
 0x2d6   : > { %v3895_v14 = vpop.f32.mrf.mxu1  ;;  %v8645_v21 = vpop.f32.mrf.mxu0 }
 0x2d7   : > { %10152 = vst [vmem:[#allocation119_spill] sm:$0xff] %v8645_v21 }
 0x2d8   : > { %v8650_v44 = vpop.f32.mrf.mxu1  ;;  %4089 = vmatmul.mubr.bf16.gmra.mxu1 %v2393_v32  ;;  %v3478_v49 = vpop.f32.mrf.mxu0 }
 0x2d9   : > { %4096 = vmatprep.mubr.bf16.mxu1 %v2633_v46  ;;  %v5543_v46 = vld [vmem:[%s5716_s23 + $0x1b0] sm:$0xff]  }
 0x2da   : > { %v3900_v17 = vpop.f32.mrf.mxu1  ;;  %v8652_v28 = vpop.f32.mrf.mxu0  ;;  %5267 = vmatmul.mubr.msk.bf16.gmra.mxu0 %vm1838_vm4, %v10115_v51 }
 0x2db   : > { %10154 = vst [vmem:[#allocation61_spill] sm:$0xff] %v8652_v28  ;;  %5270 = vmatprep.mubr.msk.bf16.mxu0 %vm1838_vm4, %v10120_v39  ;;  %v10158_v17 = vld [vmem:[#allocation62_spill] sm:$0xff] }
 0x2dc   : > { %v8656_v43 = vpop.f32.mrf.mxu1  ;;  %v3483_v22 = vpop.f32.mrf.mxu0  ;;  %v2395_v49 = vsel %vm1838_vm4, %v5543_v46, %v10158_v17  ;;  %v10162_v17 = vld [vmem:[#allocation125_spill] sm:$0xff] }
 0x2dd   : > { %10155 = vst [vmem:[#allocation162_spill] sm:$0xff] %v8656_v43 }
 0x2de   : > { %v3903_v14 = vpop.f32.mrf.mxu1  ;;  %v8662_v32 = vpop.f32.mrf.mxu0 }
 0x2df   : > { %10157 = vst [vmem:[#allocation122_spill] sm:$0xff] %v8662_v32 }
 0x2e0   : > { %v8667_v21 = vpop.f32.mrf.mxu1  ;;  %4097 = vmatmul.mubr.bf16.gmra.mxu1 %v2395_v49  ;;  %v3486_v51 = vpop.f32.mrf.mxu0  ;;  %v2641_v49 = vsel %vm1838_vm4, %v10162_v17, %v1823_v30 }
 0x2e1   : > { %10159 = vst [vmem:[#allocation62_spill] sm:$0xff] %v8667_v21  ;;  %4104 = vmatprep.mubr.bf16.mxu1 %v2637_v34  ;;  %v10164_v34 = vld [vmem:[#allocation32_spill] sm:$0xff]  ;;  %v1825_v30 = vpop.permute.xlu0 %1824 }
 0x2e2   : > { %v3908_v28 = vpop.f32.mrf.mxu1  ;;  %v8669_v39 = vpop.f32.mrf.mxu0  ;;  %5271 = vmatmul.mubr.msk.bf16.gmra.mxu0 %vm1838_vm4, %v10125_v0 }
 0x2e3   : > { %10160 = vst [vmem:[#allocation163_spill] sm:$0xff] %v8669_v39  ;;  %5274 = vmatprep.mubr.msk.bf16.mxu0 %vm1838_vm4, %v10130_v3  ;;  %v5544_v28 = vld [vmem:[%s5716_s23 + $0x1b8] sm:$0xff]  }
 0x2e4   : > { %v8673_v22 = vpop.f32.mrf.mxu1  ;;  %v3491_v14 = vpop.f32.mrf.mxu0  ;;  %v2397_v39 = vsel %vm1838_vm4, %v5544_v28, %v10164_v34 }
 0x2e5   : > { %10161 = vst [vmem:[#allocation164_spill] sm:$0xff] %v8673_v22 }
 0x2e6   : > { %v3911_v46 = vpop.f32.mrf.mxu1  ;;  %v8679_v51 = vpop.f32.mrf.mxu0 }
 0x2e7   : > { %10163 = vst [vmem:[#allocation125_spill] sm:$0xff] %v8679_v51  ;;  %v10168_v51 = vld [vmem:[#allocation128_spill] sm:$0xff] }
 0x2e8   : > { %v8684_v32 = vpop.f32.mrf.mxu1  ;;  %4105 = vmatmul.mubr.bf16.gmra.mxu1 %v2397_v39  ;;  %v3494_v0 = vpop.f32.mrf.mxu0  ;;  %v2645_v39 = vsel %vm1838_vm4, %v10168_v51, %v1825_v30 }
 0x2e9   : > { %10165 = vst [vmem:[#allocation32_spill] sm:$0xff] %v8684_v32  ;;  %4112 = vmatprep.mubr.bf16.mxu1 %v2641_v49  ;;  %v5545_v49 = vld [vmem:[%s5716_s23 + $0x1c0] sm:$0xff]   ;;  %v10179_v32 = vld [vmem:[#allocation131_spill] sm:$0xff] }
 0x2ea   : > { %v3916_v3 = vpop.f32.mrf.mxu1  ;;  %v8687_v14 = vpop.f32.mrf.mxu0  ;;  %5275 = vmatmul.mubr.msk.bf16.gmra.mxu0 %vm1838_vm4, %v10135_v62 }
 0x2eb   : > { %10166 = vst [vmem:[#allocation165_spill] sm:$0xff] %v8687_v14  ;;  %5278 = vmatprep.mubr.msk.bf16.mxu0 %vm1838_vm4, %v10140_v20  ;;  %v10170_v3 = vld [vmem:[#allocation65_spill] sm:$0xff]  ;;  %v10173_v20 = vld [vmem:[#allocation130_spill] sm:$0xff] }
 0x2ec   : > { %v8691_v46 = vpop.f32.mrf.mxu1  ;;  %v3499_v28 = vpop.f32.mrf.mxu0  ;;  %v2399_v14 = vsel %vm1838_vm4, %v5545_v49, %v10170_v3 }
 0x2ed   : > { %10167 = vst [vmem:[#allocation166_spill] sm:$0xff] %v8691_v46  ;;  %v10172_v46 = vld [vmem:[#allocation34_spill] sm:$0xff] }
 0x2ee   : > { %v3919_v34 = vpop.f32.mrf.mxu1  ;;  %v8698_v0 = vpop.f32.mrf.mxu0  ;;  %v3675_v21 = vadd.f32 %v10173_v20, %v10172_v46  ;;  %v10177_v20 = vld [vmem:[#allocation23_spill] sm:$0xff] }
 0x2ef   : > { %10169 = vst [vmem:[#allocation128_spill] sm:$0xff] %v8698_v0  ;;  %v10174_v34 = vld [vmem:[#allocation30_spill] sm:$0xff] }
 0x2f0   : > { %v8703_v22 = vpop.f32.mrf.mxu1  ;;  %4113 = vmatmul.mubr.bf16.gmra.mxu1 %v2399_v14  ;;  %v3502_v62 = vpop.f32.mrf.mxu0 }
 0x2f1   : > { %10171 = vst [vmem:[#allocation65_spill] sm:$0xff] %v8703_v22  ;;  %4120 = vmatprep.mubr.bf16.mxu1 %v2645_v39  ;;  %v1827_v14 = vpop.permute.xlu1 %1826  ;;  %v10175_v39 = vld [vmem:[#allocation127_spill] sm:$0xff] }
 0x2f2   : > { %v3924_v28 = vpop.f32.mrf.mxu1  ;;  %v5184_v30 = vpop.f32.mrf.mxu0  ;;  %5279 = vmatmul.mubr.msk.bf16.gmra.mxu0 %vm1838_vm4, %v10145_v27  ;;  %v3667_v49 = vadd.f32 %v10175_v39, %v10174_v34  ;;  %v2649_v43 = vsel %vm1838_vm4, %v10179_v32, %v1827_v14  ;;  %v5546_v34 = vld [vmem:[%s5716_s23 + $0x1c8] sm:$0xff]   ;;  %v10181_v39 = vld [vmem:[#allocation21_spill] sm:$0xff] }
 0x2f3   : > { %v4220_v3 = vadd.f32 %v5184_v30, %v3675_v21  ;;  %5282 = vmatprep.mubr.msk.bf16.mxu0 %vm1838_vm4, %v10151_v56  ;;  %v10178_v28 = vld [vmem:[#allocation132_spill] sm:$0xff]  ;;  %v10180_v21 = vld [vmem:[#allocation66_spill] sm:$0xff] }
 0x2f4   : > { %v8716_v46 = vpop.f32.mrf.mxu1  ;;  %v4211_v62 = vpop.f32.mrf.mxu0  ;;  %v3678_v0 = vadd.f32 %v10178_v28, %v10177_v20  ;;  %v2401_v30 = vsel %vm1838_vm4, %v5546_v34, %v10180_v21 }
 0x2f5   : > { %10176 = vst [vmem:[#allocation34_spill] sm:$0xff] %v8716_v46  ;;  %4725 = vst.msk [vmem:[%s8710_s6 + $0x10] sm:$0xff] %vm4722_vm8, %v4220_v3  ;;  %v4212_v22 = vadd.f32 %v4211_v62, %v3667_v49  ;;  %v10182_v46 = vld [vmem:[#allocation129_spill] sm:$0xff]  ;;  %v10183_v3 = vld [vmem:[#allocation38_spill] sm:$0xff] }
 0x2f6   : > { %v3927_v27 = vpop.f32.mrf.mxu1  ;;  %v5185_v5 = vpop.f32.mrf.mxu0  ;;  %v3670_v56 = vadd.f32 %v10182_v46, %v10181_v39  ;;  %v3691_v14 = vadd.f32 %v8141_v40, %v10183_v3 }
 0x2f7   : > { %4723 = vst.msk [vmem:[%s8710_s6] sm:$0xff] %vm4722_vm8, %v4212_v22  ;;  %v4223_v20 = vadd.f32 %v5185_v5, %v3678_v0  ;;  %v1829_v22 = vpop.permute.xlu0 %1828  ;;  %v10184_v5 = vld [vmem:[#allocation64_spill] sm:$0xff]  ;;  %v10185_v0 = vld [vmem:[#allocation133_spill] sm:$0xff] }
 0x2f8   : > { %v8733_v28 = vpop.f32.mrf.mxu1  ;;  %4121 = vmatmul.mubr.bf16.gmra.mxu1 %v2401_v30  ;;  %v4214_v49 = vpop.f32.mrf.mxu0  ;;  %v3683_v46 = vadd.f32 %v10185_v0, %v10184_v5  ;;  %v10186_v30 = vld [vmem:[#allocation29_spill] sm:$0xff]  ;;  %v10190_v5 = vld [vmem:[#allocation136_spill] sm:$0xff] }
 0x2f9   : > { %4128 = vmatprep.mubr.bf16.mxu1 %v2649_v43  ;;  %4726 = vst.msk [vmem:[%s8710_s6 + $0x18] sm:$0xff] %vm4722_vm8, %v4223_v20  ;;  %v4215_v62 = vadd.f32 %v4214_v49, %v3670_v56  ;;  %v3694_v39 = vadd.f32 %v8157_v58, %v10186_v30  ;;  %v10187_v20 = vld [vmem:[#allocation135_spill] sm:$0xff] }
 0x2fa   : > { %v3932_v27 = vpop.f32.mrf.mxu1  ;;  %v5188_v34 = vpop.f32.mrf.mxu0  ;;  %5283 = vmatmul.mubr.msk.bf16.gmra.mxu0 %vm1838_vm4, %v10156_v54  ;;  %v2653_v49 = vsel %vm1838_vm4, %v10187_v20, %v1829_v22  ;;  %v10192_v22 = vld [vmem:[#allocation58_spill] sm:$0xff] }
 0x2fb   : > { %4724 = vst.msk [vmem:[%s8710_s6 + $0x8] sm:$0xff] %vm4722_vm8, %v4215_v62  ;;  %v4236_v43 = vadd.f32 %v5188_v34, %v3691_v14  ;;  %5286 = vmatprep.mubr.msk.bf16.mxu0 %vm1838_vm4, %v10162_v17  ;;  %v5547_v62 = vld [vmem:[%s5716_s23 + $0x1d0] sm:$0xff]   ;;  %v10188_v14 = vld [vmem:[#allocation70_spill] sm:$0xff]  ;;  %v10189_v34 = vld [vmem:[#allocation88_spill] sm:$0xff] }
 0x2fc   : > { %v8745_v21 = vpop.f32.mrf.mxu1  ;;  %v4227_v40 = vpop.f32.mrf.mxu0  ;;  %v2403_v27 = vsel %vm1838_vm4, %v5547_v62, %v10188_v14  ;;  %v3686_v17 = vadd.f32 %v10190_v5, %v10189_v34  ;;  %v10196_v5 = vld [vmem:[#allocation39_spill] sm:$0xff] }
 0x2fd   : > { %4729 = vst.msk [vmem:[%s8710_s6 + $0x30] sm:$0xff] %vm4722_vm8, %v4236_v43  ;;  %v4228_v54 = vadd.f32 %v4227_v40, %v3683_v46  ;;  %v10191_v43 = vld [vmem:[#allocation69_spill] sm:$0xff] }
 0x2fe   : > { %v3935_v56 = vpop.f32.mrf.mxu1  ;;  %v5189_v3 = vpop.f32.mrf.mxu0  ;;  %v3707_v40 = vadd.f32 %v10192_v22, %v10191_v43  ;;  %v10198_v43 = vld [vmem:[#allocation22_spill] sm:$0xff] }
 0x2ff   : > { %4727 = vst.msk [vmem:[%s8710_s6 + $0x20] sm:$0xff] %vm4722_vm8, %v4228_v54  ;;  %v4239_v58 = vadd.f32 %v5189_v3, %v3694_v39  ;;  %v1831_v54 = vpop.permute.xlu1 %1830  ;;  %v10193_v39 = vld [vmem:[#allocation67_spill] sm:$0xff]  ;;  %v10194_v3 = vld [vmem:[#allocation137_spill] sm:$0xff] }
 0x300   : > { %v8762_v0 = vpop.f32.mrf.mxu1  ;;  %4129 = vmatmul.mubr.bf16.gmra.mxu1 %v2403_v27  ;;  %v4230_v46 = vpop.f32.mrf.mxu0  ;;  %v3699_v14 = vadd.f32 %v10194_v3, %v10193_v39  ;;  %v2657_v22 = vsel %vm1838_vm4, %v10198_v43, %v1831_v54  ;;  %v10200_v39 = vld [vmem:[#allocation33_spill] sm:$0xff]  ;;  %v10201_v3 = vld [vmem:[#allocation139_spill] sm:$0xff] }
 0x301   : > { %4136 = vmatprep.mubr.bf16.mxu1 %v2653_v49  ;;  %4730 = vst.msk [vmem:[%s8710_s6 + $0x38] sm:$0xff] %vm4722_vm8, %v4239_v58  ;;  %v4231_v30 = vadd.f32 %v4230_v46, %v3686_v17  ;;  %v10197_v17 = vld [vmem:[#allocation140_spill] sm:$0xff] }
 0x302   : > { %v3940_v56 = vpop.f32.mrf.mxu1  ;;  %v5192_v62 = vpop.f32.mrf.mxu0  ;;  %5287 = vmatmul.mubr.msk.bf16.gmra.mxu0 %vm1838_vm4, %v10168_v51  ;;  %v3710_v58 = vadd.f32 %v10197_v17, %v10196_v5 }
 0x303   : > { %4728 = vst.msk [vmem:[%s8710_s6 + $0x28] sm:$0xff] %vm4722_vm8, %v4231_v30  ;;  %v4252_v49 = vadd.f32 %v5192_v62, %v3707_v40  ;;  %5290 = vmatprep.mubr.msk.bf16.mxu0 %vm1838_vm4, %v10179_v32  ;;  %v5548_v30 = vld [vmem:[%s5716_s23 + $0x1d8] sm:$0xff]   ;;  %v10199_v40 = vld [vmem:[#allocation74_spill] sm:$0xff]  ;;  %v3702_v32 = vadd.f32 %v10201_v3, %v10200_v39  ;;  %v5549_v3 = vld [vmem:[%s5716_s23 + $0x1e0] sm:$0xff]  }
 0x304   : > { %v8774_v27 = vpop.f32.mrf.mxu1  ;;  %v4243_v34 = vpop.f32.mrf.mxu0  ;;  %v2405_v62 = vsel %vm1838_vm4, %v5548_v30, %v10199_v40 }
 0x305   : > { %10195 = vst [vmem:[#allocation130_spill] sm:$0xff] %v8774_v27  ;;  %4733 = vst.msk [vmem:[%s8710_s6 + $0x50] sm:$0xff] %vm4722_vm8, %v4252_v49  ;;  %v4244_v51 = vadd.f32 %v4243_v34, %v3699_v14  ;;  %v10202_v49 = vld [vmem:[#allocation41_spill] sm:$0xff]  ;;  %v1675_v30 = vpop.permute.xlu0 %1674 }
 0x306   : > { %v3943_v46 = vpop.f32.mrf.mxu1  ;;  %v5193_v56 = vpop.f32.mrf.mxu0  ;;  %v3723_v54 = vadd.f32 %v8259_v23, %v10202_v49 }
 0x307   : > { %4731 = vst.msk [vmem:[%s8710_s6 + $0x40] sm:$0xff] %vm4722_vm8, %v4244_v51  ;;  %v4255_v5 = vadd.f32 %v5193_v56, %v3710_v58  ;;  %v1833_v58 = vpop.permute.xlu1 %1832  ;;  %v10203_v51 = vld [vmem:[#allocation71_spill] sm:$0xff]  ;;  %v10204_v56 = vld [vmem:[#allocation141_spill] sm:$0xff] }
 0x308   : > { %v8791_v17 = vpop.f32.mrf.mxu1  ;;  %4137 = vmatmul.mubr.bf16.gmra.mxu1 %v2405_v62  ;;  %v4246_v14 = vpop.f32.mrf.mxu0  ;;  %v3715_v62 = vadd.f32 %v10204_v56, %v10203_v51  ;;  %v10208_v51 = vld [vmem:[#allocation143_spill] sm:$0xff] }
 0x309   : > { %4144 = vmatprep.mubr.bf16.mxu1 %v2657_v22  ;;  %4734 = vst.msk [vmem:[%s8710_s6 + $0x58] sm:$0xff] %vm4722_vm8, %v4255_v5  ;;  %v4247_v34 = vadd.f32 %v4246_v14, %v3702_v32  ;;  %v2408_v32 = vsel %vm1838_vm4, %v5549_v3, %v1675_v30  ;;  %v10205_v5 = vld [vmem:[#allocation68_spill] sm:$0xff] }
 0x30a   : > { %v3948_v46 = vpop.f32.mrf.mxu1  ;;  %v5196_v40 = vpop.f32.mrf.mxu0  ;;  %5291 = vmatmul.mubr.msk.bf16.gmra.mxu0 %vm1838_vm4, %v10187_v20  ;;  %v3726_v20 = vadd.f32 %v8272_v16, %v10205_v5  ;;  %v10209_v16 = vld [vmem:[#allocation6_spill] sm:$0xff] }
 0x30b   : > { %4732 = vst.msk [vmem:[%s8710_s6 + $0x48] sm:$0xff] %vm4722_vm8, %v4247_v34  ;;  %v4268_v22 = vadd.f32 %v5196_v40, %v3723_v54  ;;  %5294 = vmatprep.mubr.msk.bf16.mxu0 %vm1838_vm4, %v10198_v43  ;;  %v10206_v46 = vld [vmem:[#allocation138_spill] sm:$0xff]  ;;  %v1835_v5 = vpop.permute.xlu1 %1834 }
 0x30c   : > { %v8803_v39 = vpop.f32.mrf.mxu1  ;;  %v4259_v23 = vpop.f32.mrf.mxu0  ;;  %v2661_v54 = vsel %vm1838_vm4, %v10206_v46, %v1833_v58  ;;  %v10207_v40 = vld [vmem:[#allocation42_spill] sm:$0xff] }
 0x30d   : > { %4737 = vst.msk [vmem:[%s8710_s6 + $0x70] sm:$0xff] %vm4722_vm8, %v4268_v22  ;;  %v4260_v14 = vadd.f32 %v4259_v23, %v3715_v62  ;;  %v3718_v56 = vadd.f32 %v10208_v51, %v10207_v40  ;;  %v3739_v62 = vadd.f32 %v8310_v13, %v10209_v16  ;;  %v1677_v23 = vpop.permute.xlu0 %1676  ;;  %v10211_v13 = vld [vmem:[#allocation25_spill] sm:$0xff]  ;;  %v10212_v51 = vld [vmem:[#allocation72_spill] sm:$0xff] }
 0x30e   : > { %v3951_v49 = vpop.f32.mrf.mxu1  ;;  %v5197_v34 = vpop.f32.mrf.mxu0  ;;  %v10213_v16 = vld [vmem:[#allocation5_spill] sm:$0xff] }
 0x30f   : > { %4735 = vst.msk [vmem:[%s8710_s6 + $0x60] sm:$0xff] %vm4722_vm8, %v4260_v14  ;;  %v4271_v43 = vadd.f32 %v5197_v34, %v3726_v20  ;;  %v10210_v20 = vld [vmem:[#allocation104_spill] sm:$0xff]  ;;  %v5550_v34 = vld [vmem:[%s5716_s23 + $0x1e8] sm:$0xff]  }
 0x310   : > { %v8819_v27 = vpop.f32.mrf.mxu1  ;;  %4145 = vmatmul.mubr.bf16.gmra.mxu1 %v2408_v32  ;;  %v4262_v30 = vpop.f32.mrf.mxu0  ;;  %v3731_v32 = vadd.f32 %v8285_v26, %v10210_v20  ;;  %v2411_v40 = vsel %vm1838_vm4, %v5550_v34, %v1677_v23 }
 0x311   : > { %4152 = vmatprep.mubr.bf16.mxu1 %v2661_v54  ;;  %4738 = vst.msk [vmem:[%s8710_s6 + $0x78] sm:$0xff] %vm4722_vm8, %v4271_v43  ;;  %v4263_v58 = vadd.f32 %v4262_v30, %v3718_v56  ;;  %v2665_v43 = vsel %vm1838_vm4, %v10211_v13, %v1835_v5 }
 0x312   : > { %v3956_v22 = vpop.f32.mrf.mxu1  ;;  %v5200_v3 = vpop.f32.mrf.mxu0  ;;  %5295 = vmatmul.mubr.msk.bf16.gmra.mxu0 %vm1838_vm4, %v10206_v46  ;;  %v3742_v46 = vadd.f32 %v8316_v7, %v10212_v51  ;;  %v10214_v7 = vld [vmem:[#allocation9_spill] sm:$0xff]  ;;  %v10217_v51 = vld [vmem:[#allocation75_spill] sm:$0xff] }
 0x313   : > { %4736 = vst.msk [vmem:[%s8710_s6 + $0x68] sm:$0xff] %vm4722_vm8, %v4263_v58  ;;  %v4284_v14 = vadd.f32 %v5200_v3, %v3739_v62  ;;  %5298 = vmatprep.mubr.msk.bf16.mxu0 %vm1838_vm4, %v10211_v13  ;;  %v3734_v62 = vadd.f32 %v8297_v15, %v10213_v16  ;;  %v3755_v3 = vadd.f32 %v8344_v18, %v10214_v7  ;;  %v1837_v15 = vpop.permute.xlu0 %1836  ;;  %v10216_v13 = vld [vmem:[#allocation110_spill] sm:$0xff]  ;;  %v10218_v16 = vld [vmem:[#allocation35_spill] sm:$0xff] }
 0x314   : > { %v8831_v49 = vpop.f32.mrf.mxu1  ;;  %v4275_v54 = vpop.f32.mrf.mxu0 }
 0x315   : > { %4741 = vst.msk [vmem:[%s8710_s6 + $0x90] sm:$0xff] %vm4722_vm8, %v4284_v14  ;;  %v4276_v56 = vadd.f32 %v4275_v54, %v3731_v32  ;;  %v10215_v14 = vld [vmem:[#allocation142_spill] sm:$0xff]  ;;  %v3747_v54 = vadd.f32 %v8327_v31, %v10216_v13 }
 0x316   : > { %v3959_v26 = vpop.f32.mrf.mxu1  ;;  %v5201_v30 = vpop.f32.mrf.mxu0  ;;  %v2669_v31 = vsel %vm1838_vm4, %v10215_v14, %v1837_v15 }
 0x317   : > { %4739 = vst.msk [vmem:[%s8710_s6 + $0x80] sm:$0xff] %vm4722_vm8, %v4276_v56  ;;  %v4287_v58 = vadd.f32 %v5201_v30, %v3742_v46  ;;  %v3758_v46 = vadd.f32 %v8350_v61, %v10217_v51  ;;  %v5551_v30 = vld [vmem:[%s5716_s23 + $0x1f0] sm:$0xff]  }
 0x318   : > { %v8847_v22 = vpop.f32.mrf.mxu1  ;;  %4153 = vmatmul.mubr.bf16.gmra.mxu1 %v2411_v40  ;;  %v4278_v23 = vpop.f32.mrf.mxu0 }
 0x319   : > { %4160 = vmatprep.mubr.bf16.mxu1 %v2665_v43  ;;  %4742 = vst.msk [vmem:[%s8710_s6 + $0x98] sm:$0xff] %vm4722_vm8, %v4287_v58  ;;  %v4279_v5 = vadd.f32 %v4278_v23, %v3734_v62  ;;  %v2413_v62 = vsel %vm1838_vm4, %v5551_v30, %v10218_v16  ;;  %v10219_v58 = vld [vmem:[#allocation7_spill] sm:$0xff] }
 0x31a   : > { %v3964_v20 = vpop.f32.mrf.mxu1  ;;  %v5204_v32 = vpop.f32.mrf.mxu0  ;;  %5299 = vmatmul.mubr.msk.bf16.gmra.mxu0 %vm1838_vm4, %v10215_v14 }
 0x31b   : > { %4740 = vst.msk [vmem:[%s8710_s6 + $0x88] sm:$0xff] %vm4722_vm8, %v4279_v5  ;;  %v4300_v34 = vadd.f32 %v5204_v32, %v3755_v3  ;;  %5302 = vmatprep.mubr.msk.bf16.mxu0 %vm1838_vm4, %v8270_v41  ;;  %v3750_v41 = vadd.f32 %v8333_v19, %v10219_v58  ;;  %v10220_v3 = vld [vmem:[#allocation12_spill] sm:$0xff]  ;;  %v10225_v58 = vld [vmem:[#allocation14_spill] sm:$0xff] }
 0x31c   : > { %v8859_v40 = vpop.f32.mrf.mxu1  ;;  %v4291_v18 = vpop.f32.mrf.mxu0  ;;  %v3771_v5 = vadd.f32 %v8378_v57, %v10220_v3  ;;  %v10221_v19 = vld [vmem:[#allocation116_spill] sm:$0xff] }
 0x31d   : > { %4745 = vst.msk [vmem:[%s8710_s6 + $0xb0] sm:$0xff] %vm4722_vm8, %v4300_v34  ;;  %v4292_v56 = vadd.f32 %v4291_v18, %v3747_v54  ;;  %v3763_v15 = vadd.f32 %v8361_v50, %v10221_v19  ;;  %v10222_v34 = vmov 0   ;;  %v10223_v18 = vld [vmem:[#allocation77_spill] sm:$0xff] }
 0x31e   : > { %v3967_v26 = vpop.f32.mrf.mxu1  ;;  %v5205_v43 = vpop.f32.mrf.mxu0  ;;  %v3774_v51 = vadd.f32 %v8384_v8, %v10223_v18 }
 0x31f   : > { %4743 = vst.msk [vmem:[%s8710_s6 + $0xa0] sm:$0xff] %vm4722_vm8, %v4292_v56  ;;  %v4303_v61 = vadd.f32 %v5205_v43, %v3758_v46  ;;  %v5552_v26 = vld [vmem:[%s5716_s23 + $0x1f8] sm:$0xff]  }
 0x320   : > { %v8876_v23 = vpop.f32.mrf.mxu1  ;;  %4161 = vmatmul.mubr.bf16.gmra.mxu1 %v2413_v62  ;;  %v4294_v7 = vpop.f32.mrf.mxu0  ;;  %v2415_v50 = vsel %vm1838_vm4, %v5552_v26, %v10218_v16 }
 0x321   : > { %4168 = vmatprep.mubr.bf16.mxu1 %v2669_v31  ;;  %4746 = vst.msk [vmem:[%s8710_s6 + $0xb8] sm:$0xff] %vm4722_vm8, %v4303_v61  ;;  %v4295_v20 = vadd.f32 %v4294_v7, %v3750_v41  ;;  %v10224_v31 = vld [vmem:[#allocation11_spill] sm:$0xff]  ;;  %v3787_v41 = vadd.f32 %v8412_v24, %v10225_v58 }
 0x322   : > { %v3972_v32 = vpop.f32.mrf.mxu1  ;;  %v5208_v14 = vpop.f32.mrf.mxu0  ;;  %5303 = vmatmul.mubr.msk.bf16.gmra.mxu0 %vm1838_vm4, %v8295_v35  ;;  %v3766_v43 = vadd.f32 %v8367_v60, %v10224_v31  ;;  %v10226_v60 = vld [vmem:[#allocation81_spill] sm:$0xff] }
 0x323   : > { %4744 = vst.msk [vmem:[%s8710_s6 + $0xa8] sm:$0xff] %vm4722_vm8, %v4295_v20  ;;  %v4316_v13 = vadd.f32 %v5208_v14, %v3771_v5  ;;  %5306 = vmatprep.mubr.bf16.mxu0 %v10222_v34  ;;  %v3779_v3 = vadd.f32 %v8395_v10, %v10226_v60  ;;  %v10227_v14 = vld [vmem:[#allocation79_spill] sm:$0xff] }
 0x324   : > { %v8888_v54 = vpop.f32.mrf.mxu1  ;;  %v4307_v57 = vpop.f32.mrf.mxu0  ;;  %v3790_v24 = vadd.f32 %v8418_v4, %v10227_v14 }
 0x325   : > { %4749 = vst.msk [vmem:[%s8710_s6 + $0xd0] sm:$0xff] %vm4722_vm8, %v4316_v13  ;;  %v4308_v46 = vadd.f32 %v4307_v57, %v3763_v15 }
 0x326   : > { %v3975_v56 = vpop.f32.mrf.mxu1  ;;  %v5209_v35 = vpop.f32.mrf.mxu0 }
 0x327   : > { %4747 = vst.msk [vmem:[%s8710_s6 + $0xc0] sm:$0xff] %vm4722_vm8, %v4308_v46  ;;  %v4319_v30 = vadd.f32 %v5209_v35, %v3774_v51  ;;  %v10229_v46 = vld [vmem:[#allocation18_spill] sm:$0xff] }
 0x328   : > { %v8902_v62 = vpop.f32.mrf.mxu1  ;;  %4169 = vmatmul.mubr.bf16.gmra.mxu1 %v2415_v50  ;;  %v4310_v8 = vpop.f32.mrf.mxu0  ;;  %v3803_v56 = vadd.f32 %v8446_v9, %v10229_v46  ;;  %v10230_v50 = vld [vmem:[#allocation55_spill] sm:$0xff] }
 0x329   : > { %4750 = vst.msk [vmem:[%s8710_s6 + $0xd8] sm:$0xff] %vm4722_vm8, %v4319_v30  ;;  %v4311_v61 = vadd.f32 %v4310_v8, %v3766_v43  ;;  %v3795_v31 = vadd.f32 %v8429_v48, %v10230_v50  ;;  %v10231_v8 = vld [vmem:[#allocation82_spill] sm:$0xff]  ;;  %v10237_v50 = vld [vmem:[#allocation8_spill] sm:$0xff] }
 0x32a   : > { %v3980_v7 = vpop.f32.mrf.mxu1  ;;  %v5212_v16 = vpop.f32.mrf.mxu0  ;;  %5307 = vmatmul.mubr.bf16.gmra.mxu0 %v10222_v34  ;;  %v10228_v34 = vld [vmem:[#allocation13_spill] sm:$0xff]  ;;  %v3806_v58 = vadd.f32 %v8452_v38, %v10231_v8 }
 0x32b   : > { %4748 = vst.msk [vmem:[%s8710_s6 + $0xc8] sm:$0xff] %vm4722_vm8, %v4311_v61  ;;  %v4332_v5 = vadd.f32 %v5212_v16, %v3787_v41  ;;  %v3782_v57 = vadd.f32 %v8401_v63, %v10228_v34  ;;  %v10232_v7 = vld [vmem:[#allocation17_spill] sm:$0xff] }
 0x32c   : > { %v8913_v20 = vpop.f32.mrf.mxu1  ;;  %v4323_v32 = vpop.f32.mrf.mxu0  ;;  %v3798_v16 = vadd.f32 %v8435_v6, %v10232_v7  ;;  %v10238_v8 = vld [vmem:[#allocation45_spill] sm:$0xff] }
 0x32d   : > { %4753 = vst.msk [vmem:[%s8710_s6 + $0xf0] sm:$0xff] %vm4722_vm8, %v4332_v5  ;;  %v4324_v19 = vadd.f32 %v4323_v32, %v3779_v3  ;;  %v10233_v5 = vld [vmem:[#allocation59_spill] sm:$0xff] }
 0x32e   : > { %v3983_v15 = vpop.f32.mrf.mxu1  ;;  %v5213_v13 = vpop.f32.mrf.mxu0  ;;  %v3819_v32 = vadd.f32 %v8480_v25, %v10233_v5 }
 0x32f   : > { %4751 = vst.msk [vmem:[%s8710_s6 + $0xe0] sm:$0xff] %vm4722_vm8, %v4324_v19  ;;  %v4335_v10 = vadd.f32 %v5213_v13, %v3790_v24  ;;  %v10234_v19 = vld [vmem:[#allocation134_spill] sm:$0xff] }
 0x330   : > { %v8923_v18 = vpop.f32.mrf.mxu1  ;;  %v4326_v51 = vpop.f32.mrf.mxu0  ;;  %v3811_v15 = vadd.f32 %v8463_v59, %v10234_v19 }
 0x331   : > { %4754 = vst.msk [vmem:[%s8710_s6 + $0xf8] sm:$0xff] %vm4722_vm8, %v4335_v10  ;;  %v4327_v4 = vadd.f32 %v4326_v51, %v3782_v57  ;;  %v10235_v57 = vld [vmem:[#allocation26_spill] sm:$0xff] }
 0x332   : > { %v3988_v35 = vpop.f32.mrf.mxu1  ;;  %v5216_v26 = vpop.f32.mrf.mxu0  ;;  %v3822_v10 = vadd.f32 %v8486_v45, %v10235_v57 }
 0x333   : > { %4752 = vst.msk [vmem:[%s8710_s6 + $0xe8] sm:$0xff] %vm4722_vm8, %v4327_v4  ;;  %v4348_v63 = vadd.f32 %v5216_v26, %v3803_v56  ;;  %v10236_v56 = vld [vmem:[#allocation20_spill] sm:$0xff] }
 0x334   : > { %v8933_v43 = vpop.f32.mrf.mxu1  ;;  %v4339_v30 = vpop.f32.mrf.mxu0  ;;  %v3814_v4 = vadd.f32 %v8469_v12, %v10236_v56  ;;  %v10244_v56 = vld [vmem:[#allocation154_spill] sm:$0xff] }
 0x335   : > { %4757 = vst.msk [vmem:[%s8710_s6 + $0x110] sm:$0xff] %vm4722_vm8, %v4348_v63  ;;  %v4340_v9 = vadd.f32 %v4339_v30, %v3795_v31  ;;  %v3835_v31 = vadd.f32 %v8514_v53, %v10237_v50  ;;  %v10245_v50 = vld [vmem:[#allocation15_spill] sm:$0xff] }
 0x336   : > { %v3991_v41 = vpop.f32.mrf.mxu1  ;;  %v5217_v61 = vpop.f32.mrf.mxu0 }
 0x337   : > { %4755 = vst.msk [vmem:[%s8710_s6 + $0x100] sm:$0xff] %vm4722_vm8, %v4340_v9  ;;  %v4351_v48 = vadd.f32 %v5217_v61, %v3806_v58  ;;  %v3827_v58 = vadd.f32 %v8497_v33, %v10238_v8  ;;  %v10239_v61 = vld [vmem:[#allocation63_spill] sm:$0xff] }
 0x338   : > { %v8943_v60 = vpop.f32.mrf.mxu1  ;;  %v4342_v3 = vpop.f32.mrf.mxu0  ;;  %v3838_v7 = vadd.f32 %v8520_v52, %v10239_v61  ;;  %v10247_v61 = vld [vmem:[#allocation50_spill] sm:$0xff] }
 0x339   : > { %4758 = vst.msk [vmem:[%s8710_s6 + $0x118] sm:$0xff] %vm4722_vm8, %v4351_v48  ;;  %v4343_v38 = vadd.f32 %v4342_v3, %v3798_v16  ;;  %v10240_v3 = vld [vmem:[#allocation24_spill] sm:$0xff] }
 0x33a   : > { %v3996_v14 = vpop.f32.mrf.mxu1  ;;  %v5220_v24 = vpop.f32.mrf.mxu0  ;;  %v3830_v5 = vadd.f32 %v8503_v2, %v10240_v3  ;;  %v10249_v3 = vld [vmem:[#allocation37_spill] sm:$0xff] }
 0x33b   : > { %4756 = vst.msk [vmem:[%s8710_s6 + $0x108] sm:$0xff] %vm4722_vm8, %v4343_v38  ;;  %v4364_v6 = vadd.f32 %v5220_v24, %v3819_v32  ;;  %v3851_v14 = vadd.f32 %v8548_v29, %v8267_v36 }
 0x33c   : > { %v8953_v13 = vpop.f32.mrf.mxu1  ;;  %v4355_v34 = vpop.f32.mrf.mxu0 }
 0x33d   : > { %4761 = vst.msk [vmem:[%s8710_s6 + $0x130] sm:$0xff] %vm4722_vm8, %v4364_v6  ;;  %v4356_v25 = vadd.f32 %v4355_v34, %v3811_v15  ;;  %v10241_v15 = vld [vmem:[#allocation10_spill] sm:$0xff] }
 0x33e   : > { %v3999_v51 = vpop.f32.mrf.mxu1  ;;  %v5221_v46 = vpop.f32.mrf.mxu0  ;;  %v3843_v6 = vadd.f32 %v8531_v37, %v10241_v15 }
 0x33f   : > { %4759 = vst.msk [vmem:[%s8710_s6 + $0x120] sm:$0xff] %vm4722_vm8, %v4356_v25  ;;  %v4367_v59 = vadd.f32 %v5221_v46, %v3822_v10  ;;  %v10242_v10 = vld [vmem:[#allocation155_spill] sm:$0xff] }
 0x340   : > { %v8963_v35 = vpop.f32.mrf.mxu1  ;;  %v4358_v26 = vpop.f32.mrf.mxu0  ;;  %v3854_v25 = vadd.f32 %v10242_v10, %v8283_v1  ;;  %v10243_v46 = vld [vmem:[#allocation31_spill] sm:$0xff] }
 0x341   : > { %4762 = vst.msk [vmem:[%s8710_s6 + $0x138] sm:$0xff] %vm4722_vm8, %v4367_v59  ;;  %v4359_v45 = vadd.f32 %v4358_v26, %v3814_v4  ;;  %v3846_v4 = vadd.f32 %v10244_v56, %v10243_v46 }
 0x342   : > { %v4004_v63 = vpop.f32.mrf.mxu1  ;;  %v5224_v30 = vpop.f32.mrf.mxu0 }
 0x343   : > { %4760 = vst.msk [vmem:[%s8710_s6 + $0x128] sm:$0xff] %vm4722_vm8, %v4359_v45  ;;  %v4380_v12 = vadd.f32 %v5224_v30, %v3835_v31  ;;  %v3867_v31 = vadd.f32 %v8582_v42, %v10245_v50  ;;  %v10246_v30 = vld [vmem:[#allocation60_spill] sm:$0xff] }
 0x344   : > { %v8973_v9 = vpop.f32.mrf.mxu1  ;;  %v4371_v41 = vpop.f32.mrf.mxu0  ;;  %v3859_v8 = vadd.f32 %v8565_v55, %v10246_v30 }
 0x345   : > { %4765 = vst.msk [vmem:[%s8710_s6 + $0x150] sm:$0xff] %vm4722_vm8, %v4380_v12  ;;  %v4372_v53 = vadd.f32 %v4371_v41, %v3827_v58 }
 0x346   : > { %v4007_v16 = vpop.f32.mrf.mxu1  ;;  %v5225_v48 = vpop.f32.mrf.mxu0 }
 0x347   : > { %4763 = vst.msk [vmem:[%s8710_s6 + $0x140] sm:$0xff] %vm4722_vm8, %v4372_v53  ;;  %v4383_v33 = vadd.f32 %v5225_v48, %v3838_v7  ;;  %v10248_v7 = vld [vmem:[#allocation157_spill] sm:$0xff] }
 0x348   : > { %v8983_v32 = vpop.f32.mrf.mxu1  ;;  %v4374_v38 = vpop.f32.mrf.mxu0  ;;  %v3870_v53 = vadd.f32 %v10248_v7, %v10247_v61  ;;  %v10259_v61 = vld [vmem:[#allocation57_spill] sm:$0xff] }
 0x349   : > { %4766 = vst.msk [vmem:[%s8710_s6 + $0x158] sm:$0xff] %vm4722_vm8, %v4383_v33  ;;  %v4375_v52 = vadd.f32 %v4374_v38, %v3830_v5  ;;  %v10250_v5 = vld [vmem:[#allocation156_spill] sm:$0xff] }
 0x34a   : > { %v4012_v24 = vpop.f32.mrf.mxu1  ;;  %v5228_v19 = vpop.f32.mrf.mxu0  ;;  %v3862_v33 = vadd.f32 %v10250_v5, %v10249_v3  ;;  %v10261_v3 = vld [vmem:[#allocation162_spill] sm:$0xff] }
 0x34b   : > { %4764 = vst.msk [vmem:[%s8710_s6 + $0x148] sm:$0xff] %vm4722_vm8, %v4375_v52  ;;  %v4396_v2 = vadd.f32 %v5228_v19, %v3851_v14  ;;  %v10251_v52 = vld [vmem:[#allocation19_spill] sm:$0xff] }
 0x34c   : > { %v8993_v34 = vpop.f32.mrf.mxu1  ;;  %v4387_v57 = vpop.f32.mrf.mxu0  ;;  %v3883_v24 = vadd.f32 %v8616_v11, %v10251_v52  ;;  %v10263_v52 = vld [vmem:[#allocation161_spill] sm:$0xff] }
 0x34d   : > { %4769 = vst.msk [vmem:[%s8710_s6 + $0x170] sm:$0xff] %vm4722_vm8, %v4396_v2  ;;  %v4388_v36 = vadd.f32 %v4387_v57, %v3843_v6  ;;  %v10252_v2 = vld [vmem:[#allocation16_spill] sm:$0xff] }
 0x34e   : > { %v4015_v29 = vpop.f32.mrf.mxu1  ;;  %v5229_v51 = vpop.f32.mrf.mxu0  ;;  %v3875_v57 = vadd.f32 %v8599_v47, %v10252_v2  ;;  %v10264_v2 = vld [vmem:[#allocation150_spill] sm:$0xff] }
 0x34f   : > { %4767 = vst.msk [vmem:[%s8710_s6 + $0x160] sm:$0xff] %vm4722_vm8, %v4388_v36  ;;  %v4399_v37 = vadd.f32 %v5229_v51, %v3854_v25  ;;  %v10253_v29 = vld [vmem:[#allocation56_spill] sm:$0xff]  ;;  %v10254_v51 = vld [vmem:[#allocation159_spill] sm:$0xff] }
 0x350   : > { %v9003_v59 = vpop.f32.mrf.mxu1  ;;  %v4390_v26 = vpop.f32.mrf.mxu0  ;;  %v3886_v46 = vadd.f32 %v10254_v51, %v10253_v29 }
 0x351   : > { %4770 = vst.msk [vmem:[%s8710_s6 + $0x178] sm:$0xff] %vm4722_vm8, %v4399_v37  ;;  %v4391_v1 = vadd.f32 %v4390_v26, %v3846_v4  ;;  %v10255_v37 = vld [vmem:[#allocation52_spill] sm:$0xff]  ;;  %v10256_v26 = vld [vmem:[#allocation158_spill] sm:$0xff] }
 0x352   : > { %v4020_v45 = vpop.f32.mrf.mxu1  ;;  %v5232_v63 = vpop.f32.mrf.mxu0  ;;  %v3878_v50 = vadd.f32 %v10256_v26, %v10255_v37 }
 0x353   : > { %4768 = vst.msk [vmem:[%s8710_s6 + $0x168] sm:$0xff] %vm4722_vm8, %v4391_v1  ;;  %v4412_v58 = vadd.f32 %v5232_v63, %v3867_v31  ;;  %v10257_v45 = vld [vmem:[#allocation146_spill] sm:$0xff] }
 0x354   : > { %v9013_v12 = vpop.f32.mrf.mxu1  ;;  %v4403_v41 = vpop.f32.mrf.mxu0  ;;  %v3899_v63 = vadd.f32 %v8650_v44, %v10257_v45 }
 0x355   : > { %4773 = vst.msk [vmem:[%s8710_s6 + $0x190] sm:$0xff] %vm4722_vm8, %v4412_v58  ;;  %v4404_v42 = vadd.f32 %v4403_v41, %v3859_v8  ;;  %v10258_v41 = vld [vmem:[#allocation144_spill] sm:$0xff] }
 0x356   : > { %v4023_v16 = vpop.f32.mrf.mxu1  ;;  %v5233_v48 = vpop.f32.mrf.mxu0  ;;  %v3891_v7 = vadd.f32 %v10259_v61, %v10258_v41 }
 0x357   : > { %4771 = vst.msk [vmem:[%s8710_s6 + $0x180] sm:$0xff] %vm4722_vm8, %v4404_v42  ;;  %v4415_v55 = vadd.f32 %v5233_v48, %v3870_v53  ;;  %v10260_v48 = vld [vmem:[#allocation147_spill] sm:$0xff] }
 0x358   : > { %v9023_v38 = vpop.f32.mrf.mxu1  ;;  %v4406_v14 = vpop.f32.mrf.mxu0  ;;  %v3902_v5 = vadd.f32 %v10261_v3, %v10260_v48 }
 0x359   : > { %4774 = vst.msk [vmem:[%s8710_s6 + $0x198] sm:$0xff] %vm4722_vm8, %v4415_v55  ;;  %v4407_v19 = vadd.f32 %v4406_v14, %v3862_v33  ;;  %v10262_v14 = vld [vmem:[#allocation145_spill] sm:$0xff] }
 0x35a   : > { %v4028_v15 = vpop.f32.mrf.mxu1  ;;  %v5236_v6 = vpop.f32.mrf.mxu0 }
 0x35b   : > { %4772 = vst.msk [vmem:[%s8710_s6 + $0x188] sm:$0xff] %vm4722_vm8, %v4407_v19  ;;  %v4428_v10 = vadd.f32 %v5236_v6, %v3883_v24  ;;  %v3894_v24 = vadd.f32 %v10263_v52, %v10262_v14 }
 0x35c   : > { %v9033_v25 = vpop.f32.mrf.mxu1  ;;  %v4419_v36 = vpop.f32.mrf.mxu0 }
 0x35d   : > { %4777 = vst.msk [vmem:[%s8710_s6 + $0x1b0] sm:$0xff] %vm4722_vm8, %v4428_v10  ;;  %v4420_v11 = vadd.f32 %v4419_v36, %v3875_v57  ;;  %v10265_v57 = vld [vmem:[#allocation32_spill] sm:$0xff] }
 0x35e   : > { %v4031_v56 = vpop.f32.mrf.mxu1  ;;  %v5237_v4 = vpop.f32.mrf.mxu0  ;;  %v3915_v10 = vadd.f32 %v10265_v57, %v10264_v2 }
 0x35f   : > { %4775 = vst.msk [vmem:[%s8710_s6 + $0x1a0] sm:$0xff] %vm4722_vm8, %v4420_v11  ;;  %v4431_v47 = vadd.f32 %v5237_v4, %v3886_v46  ;;  %v10266_v46 = vld [vmem:[#allocation148_spill] sm:$0xff]  ;;  %v10267_v11 = vld [vmem:[#allocation62_spill] sm:$0xff] }
 0x360   : > { %v9043_v31 = vpop.f32.mrf.mxu1  ;;  %v4422_v1 = vpop.f32.mrf.mxu0  ;;  %v3907_v56 = vadd.f32 %v10267_v11, %v10266_v46 }
 0x361   : > { %4778 = vst.msk [vmem:[%s8710_s6 + $0x1b8] sm:$0xff] %vm4722_vm8, %v4431_v47  ;;  %v4423_v30 = vadd.f32 %v4422_v1, %v3878_v50  ;;  %v10268_v50 = vld [vmem:[#allocation151_spill] sm:$0xff]  ;;  %v10269_v47 = vld [vmem:[#allocation166_spill] sm:$0xff] }
 0x362   : > { %v4036_v8 = vpop.f32.mrf.mxu1  ;;  %v5240_v58 = vpop.f32.mrf.mxu0  ;;  %v3918_v1 = vadd.f32 %v10269_v47, %v10268_v50 }
 0x363   : > { %4776 = vst.msk [vmem:[%s8710_s6 + $0x1a8] sm:$0xff] %vm4722_vm8, %v4423_v30  ;;  %v4444_v53 = vadd.f32 %v5240_v58, %v3899_v63  ;;  %v10270_v8 = vld [vmem:[#allocation149_spill] sm:$0xff]  ;;  %v10271_v58 = vld [vmem:[#allocation164_spill] sm:$0xff] }
 0x364   : > { %v9053_v42 = vpop.f32.mrf.mxu1  ;;  %v4435_v16 = vpop.f32.mrf.mxu0  ;;  %v3910_v41 = vadd.f32 %v10271_v58, %v10270_v8  ;;  %v10280_v58 = vld [vmem:[#allocation93_spill] sm:$0xff] }
 0x365   : > { %4781 = vst.msk [vmem:[%s8710_s6 + $0x1d0] sm:$0xff] %vm4722_vm8, %v4444_v53  ;;  %v4436_v44 = vadd.f32 %v4435_v16, %v3891_v7  ;;  %v10272_v16 = vld [vmem:[#allocation153_spill] sm:$0xff] }
 0x366   : > { %v4039_v33 = vpop.f32.mrf.mxu1  ;;  %v5241_v55 = vpop.f32.mrf.mxu0  ;;  %v3931_v48 = vadd.f32 %v8733_v28, %v10272_v16  ;;  %v10281_v16 = vld [vmem:[#allocation80_spill] sm:$0xff] }
 0x367   : > { %4779 = vst.msk [vmem:[%s8710_s6 + $0x1c0] sm:$0xff] %vm4722_vm8, %v4436_v44  ;;  %v4447_v19 = vadd.f32 %v5241_v55, %v3902_v5  ;;  %v10273_v33 = vld [vmem:[#allocation152_spill] sm:$0xff]  ;;  %v10274_v55 = vld [vmem:[#allocation65_spill] sm:$0xff] }
 0x368   : > { %v9063_v15 = vpop.f32.mrf.mxu1  ;;  %v4438_v6 = vpop.f32.mrf.mxu0  ;;  %v3923_v14 = vadd.f32 %v10274_v55, %v10273_v33  ;;  %v10283_v33 = vld [vmem:[#allocation44_spill] sm:$0xff] }
 0x369   : > { %4782 = vst.msk [vmem:[%s8710_s6 + $0x1d8] sm:$0xff] %vm4722_vm8, %v4447_v19  ;;  %v4439_v36 = vadd.f32 %v4438_v6, %v3894_v24  ;;  %v10275_v6 = vld [vmem:[#allocation78_spill] sm:$0xff]  ;;  %v3963_v55 = vadd.f32 %v8847_v22, %v10283_v33 }
 0x36a   : > { %v4044_v29 = vpop.f32.mrf.mxu1  ;;  %v5244_v51 = vpop.f32.mrf.mxu0  ;;  %v3934_v2 = vadd.f32 %v8745_v21, %v10275_v6 }
 0x36b   : > { %4780 = vst.msk [vmem:[%s8710_s6 + $0x1c8] sm:$0xff] %vm4722_vm8, %v4439_v36  ;;  %v4460_v4 = vadd.f32 %v5244_v51, %v3915_v10  ;;  %v10276_v36 = vld [vmem:[#allocation28_spill] sm:$0xff]  ;;  %v10277_v29 = vld [vmem:[#allocation34_spill] sm:$0xff] }
 0x36c   : > { %v9073_v37 = vpop.f32.mrf.mxu1  ;;  %v4451_v26 = vpop.f32.mrf.mxu0  ;;  %v3926_v51 = vadd.f32 %v10277_v29, %v10276_v36 }
 0x36d   : > { %4785 = vst.msk [vmem:[%s8710_s6 + $0x1f0] sm:$0xff] %vm4722_vm8, %v4460_v4  ;;  %v4452_v45 = vadd.f32 %v4451_v26, %v3907_v56  ;;  %v10278_v4 = vld [vmem:[#allocation90_spill] sm:$0xff] }
 0x36e   : > { %v4047_v63 = vpop.f32.mrf.mxu1  ;;  %v5245_v30 = vpop.f32.mrf.mxu0  ;;  %v3947_v26 = vadd.f32 %v8791_v17, %v10278_v4 }
 0x36f   : > { %4783 = vst.msk [vmem:[%s8710_s6 + $0x1e0] sm:$0xff] %vm4722_vm8, %v4452_v45  ;;  %v4463_v61 = vadd.f32 %v5245_v30, %v3918_v1  ;;  %v10279_v1 = vld [vmem:[#allocation86_spill] sm:$0xff] }
 0x370   : > { %v9083_v7 = vpop.f32.mrf.mxu1  ;;  %v4454_v53 = vpop.f32.mrf.mxu0  ;;  %v3939_v45 = vadd.f32 %v8762_v0, %v10279_v1 }
 0x371   : > { %4786 = vst.msk [vmem:[%s8710_s6 + $0x1f8] sm:$0xff] %vm4722_vm8, %v4463_v61  ;;  %v4455_v3 = vadd.f32 %v4454_v53, %v3910_v41  ;;  %v3950_v41 = vadd.f32 %v8803_v39, %v10280_v58 }
 0x372   : > { %v4052_v5 = vpop.f32.mrf.mxu1  ;;  %v5248_v44 = vpop.f32.mrf.mxu0 }
 0x373   : > { %4784 = vst.msk [vmem:[%s8710_s6 + $0x1e8] sm:$0xff] %vm4722_vm8, %v4455_v3  ;;  %v4476_v52 = vadd.f32 %v5248_v44, %v3931_v48  ;;  %v10282_v48 = vld [vmem:[#allocation130_spill] sm:$0xff] }
 0x374   : > { %v9093_v24 = vpop.f32.mrf.mxu1  ;;  %v4467_v19 = vpop.f32.mrf.mxu0  ;;  %v3942_v3 = vadd.f32 %v10282_v48, %v10281_v16  ;;  %v10290_v16 = vld [vmem:[#allocation101_spill] sm:$0xff] }
 0x375   : > { %4789 = vst.msk [vmem:[%s8710_s6 + $0x210] sm:$0xff] %vm4722_vm8, %v4476_v52  ;;  %v4468_v28 = vadd.f32 %v4467_v19, %v3923_v14  ;;  %v10284_v19 = vld [vmem:[#allocation40_spill] sm:$0xff]  ;;  %v3974_v48 = vadd.f32 %v8888_v54, %v10290_v16 }
 0x376   : > { %v4055_v57 = vpop.f32.mrf.mxu1  ;;  %v5249_v10 = vpop.f32.mrf.mxu0  ;;  %v3955_v6 = vadd.f32 %v8819_v27, %v10284_v19 }
 0x377   : > { %4787 = vst.msk [vmem:[%s8710_s6 + $0x200] sm:$0xff] %vm4722_vm8, %v4468_v28  ;;  %v4479_v46 = vadd.f32 %v5249_v10, %v3934_v2  ;;  %v10285_v10 = vld [vmem:[#allocation99_spill] sm:$0xff] }
 0x378   : > { %v9103_v11 = vpop.f32.mrf.mxu1  ;;  %v4470_v56 = vpop.f32.mrf.mxu0  ;;  %v3966_v36 = vadd.f32 %v8859_v40, %v10285_v10 }
 0x379   : > { %4790 = vst.msk [vmem:[%s8710_s6 + $0x218] sm:$0xff] %vm4722_vm8, %v4479_v46  ;;  %v4471_v21 = vadd.f32 %v4470_v56, %v3926_v51  ;;  %v10286_v46 = vld [vmem:[#allocation96_spill] sm:$0xff] }
 0x37a   : > { %v4060_v50 = vpop.f32.mrf.mxu1  ;;  %v5252_v47 = vpop.f32.mrf.mxu0  ;;  %v3958_v56 = vadd.f32 %v8831_v49, %v10286_v46 }
 0x37b   : > { %4788 = vst.msk [vmem:[%s8710_s6 + $0x208] sm:$0xff] %vm4722_vm8, %v4471_v21  ;;  %v4492_v63 = vadd.f32 %v5252_v47, %v3947_v26  ;;  %v10287_v21 = vld [vmem:[#allocation48_spill] sm:$0xff] }
 0x37c   : > { %v9113_v30 = vpop.f32.mrf.mxu1  ;;  %v4483_v8 = vpop.f32.mrf.mxu0  ;;  %v3979_v50 = vadd.f32 %v8902_v62, %v10287_v21 }
 0x37d   : > { %4793 = vst.msk [vmem:[%s8710_s6 + $0x230] sm:$0xff] %vm4722_vm8, %v4492_v63  ;;  %v4484_v17 = vadd.f32 %v4483_v8, %v3939_v45  ;;  %v10288_v45 = vld [vmem:[#allocation46_spill] sm:$0xff] }
 0x37e   : > { %v4063_v61 = vpop.f32.mrf.mxu1  ;;  %v5253_v53 = vpop.f32.mrf.mxu0  ;;  %v3971_v63 = vadd.f32 %v8876_v23, %v10288_v45  ;;  %v10297_v45 = vld [vmem:[#allocation117_spill] sm:$0xff] }
 0x37f   : > { %4791 = vst.msk [vmem:[%s8710_s6 + $0x220] sm:$0xff] %vm4722_vm8, %v4484_v17  ;;  %v4495_v0 = vadd.f32 %v5253_v53, %v3950_v41  ;;  %v10289_v41 = vld [vmem:[#allocation105_spill] sm:$0xff] }
 0x380   : > { %v9123_v5 = vpop.f32.mrf.mxu1  ;;  %v4486_v44 = vpop.f32.mrf.mxu0  ;;  %v3982_v17 = vadd.f32 %v8913_v20, %v10289_v41  ;;  %v10298_v41 = vld [vmem:[#allocation113_spill] sm:$0xff] }
 0x381   : > { %4794 = vst.msk [vmem:[%s8710_s6 + $0x238] sm:$0xff] %vm4722_vm8, %v4495_v0  ;;  %v4487_v39 = vadd.f32 %v4486_v44, %v3942_v3  ;;  %v10291_v44 = vld [vmem:[#allocation51_spill] sm:$0xff] }
 0x382   : > { %v4068_v14 = vpop.f32.mrf.mxu1  ;;  %v5256_v52 = vpop.f32.mrf.mxu0  ;;  %v3995_v33 = vadd.f32 %v8943_v60, %v10291_v44 }
 0x383   : > { %4792 = vst.msk [vmem:[%s8710_s6 + $0x228] sm:$0xff] %vm4722_vm8, %v4487_v39  ;;  %v4508_v2 = vadd.f32 %v5256_v52, %v3963_v55  ;;  %v10292_v14 = vld [vmem:[#allocation49_spill] sm:$0xff] }
 0x384   : > { %v9133_v28 = vpop.f32.mrf.mxu1  ;;  %v4499_v57 = vpop.f32.mrf.mxu0  ;;  %v3987_v52 = vadd.f32 %v8923_v18, %v10292_v14 }
 0x385   : > { %4797 = vst.msk [vmem:[%s8710_s6 + $0x250] sm:$0xff] %vm4722_vm8, %v4508_v2  ;;  %v4500_v22 = vadd.f32 %v4499_v57, %v3955_v6  ;;  %v10293_v2 = vld [vmem:[#allocation111_spill] sm:$0xff] }
 0x386   : > { %v4071_v29 = vpop.f32.mrf.mxu1  ;;  %v5257_v51 = vpop.f32.mrf.mxu0  ;;  %v3998_v57 = vadd.f32 %v8953_v13, %v10293_v2 }
 0x387   : > { %4795 = vst.msk [vmem:[%s8710_s6 + $0x240] sm:$0xff] %vm4722_vm8, %v4500_v22  ;;  %v4511_v27 = vadd.f32 %v5257_v51, %v3966_v36  ;;  %v10294_v22 = vld [vmem:[#allocation107_spill] sm:$0xff] }
 0x388   : > { %v9143_v4 = vpop.f32.mrf.mxu1  ;;  %v4502_v26 = vpop.f32.mrf.mxu0  ;;  %v3990_v29 = vadd.f32 %v8933_v43, %v10294_v22 }
 0x389   : > { %4798 = vst.msk [vmem:[%s8710_s6 + $0x258] sm:$0xff] %vm4722_vm8, %v4511_v27  ;;  %v4503_v40 = vadd.f32 %v4502_v26, %v3958_v56  ;;  %v10295_v56 = vld [vmem:[#allocation54_spill] sm:$0xff] }
 0x38a   : > { %v4076_v47 = vpop.f32.mrf.mxu1  ;;  %v5260_v1 = vpop.f32.mrf.mxu0  ;;  %v4011_v27 = vadd.f32 %v8983_v32, %v10295_v56 }
 0x38b   : > { %4796 = vst.msk [vmem:[%s8710_s6 + $0x248] sm:$0xff] %vm4722_vm8, %v4503_v40  ;;  %v4524_v49 = vadd.f32 %v5260_v1, %v3979_v50  ;;  %v10296_v50 = vld [vmem:[#allocation53_spill] sm:$0xff] }
 0x38c   : > { %v9153_v8 = vpop.f32.mrf.mxu1  ;;  %v4515_v58 = vpop.f32.mrf.mxu0  ;;  %v4003_v40 = vadd.f32 %v8963_v35, %v10296_v50  ;;  %v10306_v50 = vld [vmem:[#allocation125_spill] sm:$0xff] }
 0x38d   : > { %4801 = vst.msk [vmem:[%s8710_s6 + $0x270] sm:$0xff] %vm4722_vm8, %v4524_v49  ;;  %v4516_v62 = vadd.f32 %v4515_v58, %v3971_v63  ;;  %v4014_v63 = vadd.f32 %v8993_v34, %v10297_v45  ;;  %v10307_v45 = vld [vmem:[#allocation83_spill] sm:$0xff] }
 0x38e   : > { %v4079_v61 = vpop.f32.mrf.mxu1  ;;  %v5261_v53 = vpop.f32.mrf.mxu0 }
 0x38f   : > { %4799 = vst.msk [vmem:[%s8710_s6 + $0x260] sm:$0xff] %vm4722_vm8, %v4516_v62  ;;  %v4527_v23 = vadd.f32 %v5261_v53, %v3982_v17  ;;  %v4006_v17 = vadd.f32 %v8973_v9, %v10298_v41  ;;  %v10299_v53 = vld [vmem:[#allocation61_spill] sm:$0xff] }
 0x390   : > { %v9163_v3 = vpop.f32.mrf.mxu1  ;;  %v4518_v0 = vpop.f32.mrf.mxu0  ;;  %v4027_v16 = vadd.f32 %v9023_v38, %v10299_v53 }
 0x391   : > { %4802 = vst.msk [vmem:[%s8710_s6 + $0x278] sm:$0xff] %vm4722_vm8, %v4527_v23  ;;  %v4519_v20 = vadd.f32 %v4518_v0, %v3974_v48  ;;  %v10300_v0 = vld [vmem:[#allocation160_spill] sm:$0xff] }
 0x392   : > { %v4084_v55 = vpop.f32.mrf.mxu1  ;;  %v5264_v39 = vpop.f32.mrf.mxu0  ;;  %v4019_v44 = vadd.f32 %v9003_v59, %v10300_v0 }
 0x393   : > { %4800 = vst.msk [vmem:[%s8710_s6 + $0x268] sm:$0xff] %vm4722_vm8, %v4519_v20  ;;  %v4540_v54 = vadd.f32 %v5264_v39, %v3995_v33  ;;  %v10301_v55 = vld [vmem:[#allocation122_spill] sm:$0xff] }
 0x394   : > { %v9173_v19 = vpop.f32.mrf.mxu1  ;;  %v4531_v6 = vpop.f32.mrf.mxu0  ;;  %v4030_v39 = vadd.f32 %v9033_v25, %v10301_v55 }
 0x395   : > { %4805 = vst.msk [vmem:[%s8710_s6 + $0x290] sm:$0xff] %vm4722_vm8, %v4540_v54  ;;  %v4532_v60 = vadd.f32 %v4531_v6, %v3987_v52  ;;  %v10302_v54 = vld [vmem:[#allocation119_spill] sm:$0xff] }
 0x396   : > { %v4087_v10 = vpop.f32.mrf.mxu1  ;;  %v5265_v36 = vpop.f32.mrf.mxu0  ;;  %v4022_v6 = vadd.f32 %v9013_v12, %v10302_v54 }
 0x397   : > { %4803 = vst.msk [vmem:[%s8710_s6 + $0x280] sm:$0xff] %vm4722_vm8, %v4532_v60  ;;  %v4543_v18 = vadd.f32 %v5265_v36, %v3998_v57  ;;  %v10303_v60 = vld [vmem:[#allocation165_spill] sm:$0xff] }
 0x398   : > { %v9183_v51 = vpop.f32.mrf.mxu1  ;;  %v4534_v46 = vpop.f32.mrf.mxu0  ;;  %v4043_v10 = vadd.f32 %v9063_v15, %v10303_v60 }
 0x399   : > { %4806 = vst.msk [vmem:[%s8710_s6 + $0x298] sm:$0xff] %vm4722_vm8, %v4543_v18  ;;  %v4535_v13 = vadd.f32 %v4534_v46, %v3990_v29  ;;  %v10304_v29 = vld [vmem:[#allocation163_spill] sm:$0xff] }
 0x39a   : > { %v4092_v26 = vpop.f32.mrf.mxu1  ;;  %v5268_v21 = vpop.f32.mrf.mxu0  ;;  %v4035_v18 = vadd.f32 %v9043_v31, %v10304_v29  ;;  %v10315_v29 = vld [vmem:[#allocation95_spill] sm:$0xff] }
 0x39b   : > { %4804 = vst.msk [vmem:[%s8710_s6 + $0x288] sm:$0xff] %vm4722_vm8, %v4535_v13  ;;  %v4556_v43 = vadd.f32 %v5268_v21, %v4011_v27  ;;  %v10305_v27 = vld [vmem:[#allocation128_spill] sm:$0xff] }
 0x39c   : > { %v9193_v47 = vpop.f32.mrf.mxu1  ;;  %v4547_v1 = vpop.f32.mrf.mxu0  ;;  %v4046_v13 = vadd.f32 %v9073_v37, %v10305_v27  ;;  %v10316_v27 = vld [vmem:[#allocation92_spill] sm:$0xff] }
 0x39d   : > { %4809 = vst.msk [vmem:[%s8710_s6 + $0x2b0] sm:$0xff] %vm4722_vm8, %v4556_v43  ;;  %v4548_v32 = vadd.f32 %v4547_v1, %v4003_v40  ;;  %v4038_v40 = vadd.f32 %v9053_v42, %v10306_v50 }
 0x39e   : > { %v4095_v49 = vpop.f32.mrf.mxu1  ;;  %v5269_v58 = vpop.f32.mrf.mxu0 }
 0x39f   : > { %4807 = vst.msk [vmem:[%s8710_s6 + $0x2a0] sm:$0xff] %vm4722_vm8, %v4548_v32  ;;  %v4559_v35 = vadd.f32 %v5269_v58, %v4014_v63  ;;  %v4059_v63 = vadd.f32 %v9103_v11, %v10307_v45  ;;  %v10308_v58 = vld [vmem:[#allocation27_spill] sm:$0xff] }
 0x3a0   : > { %v9203_v62 = vpop.f32.mrf.mxu1  ;;  %v4550_v61 = vpop.f32.mrf.mxu0  ;;  %v4051_v41 = vadd.f32 %v9083_v7, %v10308_v58 }
 0x3a1   : > { %4810 = vst.msk [vmem:[%s8710_s6 + $0x2b8] sm:$0xff] %vm4722_vm8, %v4559_v35  ;;  %v4551_v34 = vadd.f32 %v4550_v61, %v4006_v17  ;;  %v10309_v61 = vld [vmem:[#allocation84_spill] sm:$0xff] }
 0x3a2   : > { %v4100_v48 = vpop.f32.mrf.mxu1  ;;  %v5272_v23 = vpop.f32.mrf.mxu0  ;;  %v4062_v53 = vadd.f32 %v9113_v30, %v10309_v61 }
 0x3a3   : > { %4808 = vst.msk [vmem:[%s8710_s6 + $0x2a8] sm:$0xff] %vm4722_vm8, %v4551_v34  ;;  %v4572_v9 = vadd.f32 %v5272_v23, %v4027_v16  ;;  %v10310_v48 = vld [vmem:[#allocation43_spill] sm:$0xff] }
 0x3a4   : > { %v9213_v33 = vpop.f32.mrf.mxu1  ;;  %v4563_v20 = vpop.f32.mrf.mxu0  ;;  %v4054_v23 = vadd.f32 %v9093_v24, %v10310_v48 }
 0x3a5   : > { %4813 = vst.msk [vmem:[%s8710_s6 + $0x2d0] sm:$0xff] %vm4722_vm8, %v4572_v9  ;;  %v4564_v38 = vadd.f32 %v4563_v20, %v4019_v44  ;;  %v10311_v9 = vld [vmem:[#allocation89_spill] sm:$0xff] }
 0x3a6   : > { %v4103_v14 = vpop.f32.mrf.mxu1  ;;  %v5273_v52 = vpop.f32.mrf.mxu0  ;;  %v4075_v20 = vadd.f32 %v9143_v4, %v10311_v9 }
 0x3a7   : > { %4811 = vst.msk [vmem:[%s8710_s6 + $0x2c0] sm:$0xff] %vm4722_vm8, %v4564_v38  ;;  %v4575_v59 = vadd.f32 %v5273_v52, %v4030_v39  ;;  %v10312_v38 = vld [vmem:[#allocation85_spill] sm:$0xff] }
 0x3a8   : > { %v9223_v2 = vpop.f32.mrf.mxu1  ;;  %v4566_v57 = vpop.f32.mrf.mxu0  ;;  %v4067_v14 = vadd.f32 %v9123_v5, %v10312_v38  ;;  %v10324_v38 = vld [vmem:[#allocation103_spill] sm:$0xff] }
 0x3a9   : > { %4814 = vst.msk [vmem:[%s8710_s6 + $0x2d8] sm:$0xff] %vm4722_vm8, %v4575_v59  ;;  %v4567_v25 = vadd.f32 %v4566_v57, %v4022_v6  ;;  %v10313_v6 = vld [vmem:[#allocation91_spill] sm:$0xff] }
 0x3aa   : > { %v4108_v36 = vpop.f32.mrf.mxu1  ;;  %v5276_v22 = vpop.f32.mrf.mxu0  ;;  %v4078_v59 = vadd.f32 %v9153_v8, %v10313_v6  ;;  %v10325_v6 = vld [vmem:[#allocation108_spill] sm:$0xff] }
 0x3ab   : > { %4812 = vst.msk [vmem:[%s8710_s6 + $0x2c8] sm:$0xff] %vm4722_vm8, %v4567_v25  ;;  %v4588_v12 = vadd.f32 %v5276_v22, %v4043_v10  ;;  %v10314_v10 = vld [vmem:[#allocation87_spill] sm:$0xff] }
 0x3ac   : > { %v9233_v46 = vpop.f32.mrf.mxu1  ;;  %v4579_v56 = vpop.f32.mrf.mxu0  ;;  %v4070_v25 = vadd.f32 %v9133_v28, %v10314_v10 }
 0x3ad   : > { %4817 = vst.msk [vmem:[%s8710_s6 + $0x2f0] sm:$0xff] %vm4722_vm8, %v4588_v12  ;;  %v4580_v15 = vadd.f32 %v4579_v56, %v4035_v18  ;;  %v4091_v18 = vadd.f32 %v9183_v51, %v10315_v29 }
 0x3ae   : > { %v4111_v26 = vpop.f32.mrf.mxu1  ;;  %v5277_v21 = vpop.f32.mrf.mxu0 }
 0x3af   : > { %4815 = vst.msk [vmem:[%s8710_s6 + $0x2e0] sm:$0xff] %vm4722_vm8, %v4580_v15  ;;  %v4591_v31 = vadd.f32 %v5277_v21, %v4046_v13  ;;  %v4083_v13 = vadd.f32 %v9163_v3, %v10316_v27  ;;  %v10317_v21 = vld [vmem:[#allocation97_spill] sm:$0xff] }
 0x3b0   : > { %v9243_v43 = vpop.f32.mrf.mxu1  ;;  %v4582_v1 = vpop.f32.mrf.mxu0  ;;  %v4094_v50 = vadd.f32 %v9193_v47, %v10317_v21 }
 0x3b1   : > { %4818 = vst.msk [vmem:[%s8710_s6 + $0x2f8] sm:$0xff] %vm4722_vm8, %v4591_v31  ;;  %v4583_v37 = vadd.f32 %v4582_v1, %v4038_v40  ;;  %v10318_v1 = vld [vmem:[#allocation94_spill] sm:$0xff] }
 0x3b2   : > { %v4116_v32 = vpop.f32.mrf.mxu1  ;;  %v5280_v49 = vpop.f32.mrf.mxu0  ;;  %v4086_v45 = vadd.f32 %v9173_v19, %v10318_v1 }
 0x3b3   : > { %4816 = vst.msk [vmem:[%s8710_s6 + $0x2e8] sm:$0xff] %vm4722_vm8, %v4583_v37  ;;  %v4604_v42 = vadd.f32 %v5280_v49, %v4059_v63  ;;  %v10319_v32 = vld [vmem:[#allocation36_spill] sm:$0xff] }
 0x3b4   : > { %v9253_v17 = vpop.f32.mrf.mxu1  ;;  %v4595_v35 = vpop.f32.mrf.mxu0  ;;  %v4107_v49 = vadd.f32 %v9223_v2, %v10319_v32 }
 0x3b5   : > { %4821 = vst.msk [vmem:[%s8710_s6 + $0x310] sm:$0xff] %vm4722_vm8, %v4604_v42  ;;  %v4596_v11 = vadd.f32 %v4595_v35, %v4051_v41  ;;  %v10320_v42 = vld [vmem:[#allocation98_spill] sm:$0xff] }
 0x3b6   : > { %v4119_v16 = vpop.f32.mrf.mxu1  ;;  %v5281_v34 = vpop.f32.mrf.mxu0  ;;  %v4099_v35 = vadd.f32 %v9203_v62, %v10320_v42 }
 0x3b7   : > { %4819 = vst.msk [vmem:[%s8710_s6 + $0x300] sm:$0xff] %vm4722_vm8, %v4596_v11  ;;  %v4607_v7 = vadd.f32 %v5281_v34, %v4062_v53  ;;  %v10321_v11 = vld [vmem:[#allocation102_spill] sm:$0xff] }
 0x3b8   : > { %v4122_v0 = vpop.f32.mrf.mxu1  ;;  %v4598_v44 = vpop.f32.mrf.mxu0  ;;  %v4110_v16 = vadd.f32 %v9233_v46, %v10321_v11 }
 0x3b9   : > { %4822 = vst.msk [vmem:[%s8710_s6 + $0x318] sm:$0xff] %vm4722_vm8, %v4607_v7  ;;  %v4599_v30 = vadd.f32 %v4598_v44, %v4054_v23  ;;  %v10322_v23 = vld [vmem:[#allocation100_spill] sm:$0xff] }
 0x3ba   : > { %v4124_v55 = vpop.f32.mrf.mxu1  ;;  %v5284_v39 = vpop.f32.mrf.mxu0  ;;  %v4102_v7 = vadd.f32 %v9213_v33, %v10322_v23  ;;  %v10335_v23 = vld [vmem:[#allocation124_spill] sm:$0xff] }
 0x3bb   : > { %4820 = vst.msk [vmem:[%s8710_s6 + $0x308] sm:$0xff] %vm4722_vm8, %v4599_v30  ;;  %v4620_v24 = vadd.f32 %v5284_v39, %v4075_v20  ;;  %v10323_v20 = vld [vmem:[#allocation47_spill] sm:$0xff] }
 0x3bc   : > { %v4125_v52 = vpop.f32.mrf.mxu1  ;;  %v4611_v54 = vpop.f32.mrf.mxu0  ;;  %v4123_v30 = vadd.f32 %v4122_v0, %v10323_v20 }
 0x3bd   : > { %4825 = vst.msk [vmem:[%s8710_s6 + $0x330] sm:$0xff] %vm4722_vm8, %v4620_v24  ;;  %v4612_v4 = vadd.f32 %v4611_v54, %v4067_v14  ;;  %v4115_v14 = vadd.f32 %v9243_v43, %v10324_v38  ;;  %v10337_v38 = vld [vmem:[#allocation126_spill] sm:$0xff] }
 0x3be   : > { %v4127_v57 = vpop.f32.mrf.mxu1  ;;  %v5285_v60 = vpop.f32.mrf.mxu0 }
 0x3bf   : > { %4823 = vst.msk [vmem:[%s8710_s6 + $0x320] sm:$0xff] %vm4722_vm8, %v4612_v4  ;;  %v4623_v5 = vadd.f32 %v5285_v60, %v4078_v59  ;;  %v4126_v59 = vadd.f32 %v4125_v52, %v10325_v6  ;;  %v10326_v60 = vld [vmem:[#allocation106_spill] sm:$0xff] }
 0x3c0   : > { %v9279_v36 = vpop.f32.mrf.mxu1  ;;  %v4614_v22 = vpop.f32.mrf.mxu0  ;;  %v4118_v10 = vadd.f32 %v9253_v17, %v10326_v60 }
 0x3c1   : > { %4826 = vst.msk [vmem:[%s8710_s6 + $0x338] sm:$0xff] %vm4722_vm8, %v4623_v5  ;;  %v4615_v8 = vadd.f32 %v4614_v22, %v4070_v25  ;;  %v10327_v22 = vld [vmem:[#allocation73_spill] sm:$0xff] }
 0x3c2   : > { %v4132_v12 = vpop.f32.mrf.mxu1  ;;  %v5288_v56 = vpop.f32.mrf.mxu0 }
 0x3c3   : > { %4824 = vst.msk [vmem:[%s8710_s6 + $0x328] sm:$0xff] %vm4722_vm8, %v4615_v8  ;;  %v4636_v28 = vadd.f32 %v5288_v56, %v4091_v18  ;;  %v10328_v12 = vld [vmem:[#allocation109_spill] sm:$0xff] }
 0x3c4   : > { %v9289_v15 = vpop.f32.mrf.mxu1  ;;  %v4627_v26 = vpop.f32.mrf.mxu0  ;;  %v4131_v56 = vadd.f32 %v9279_v36, %v10328_v12 }
 0x3c5   : > { %4829 = vst.msk [vmem:[%s8710_s6 + $0x350] sm:$0xff] %vm4722_vm8, %v4636_v28  ;;  %v4628_v51 = vadd.f32 %v4627_v26, %v4083_v13  ;;  %v10329_v28 = vld [vmem:[#allocation114_spill] sm:$0xff] }
 0x3c6   : > { %v4135_v40 = vpop.f32.mrf.mxu1  ;;  %v5289_v31 = vpop.f32.mrf.mxu0 }
 0x3c7   : > { %4827 = vst.msk [vmem:[%s8710_s6 + $0x340] sm:$0xff] %vm4722_vm8, %v4628_v51  ;;  %v4639_v3 = vadd.f32 %v5289_v31, %v4094_v50  ;;  %v10330_v40 = vld [vmem:[#allocation112_spill] sm:$0xff] }
 0x3c8   : > { %v4138_v63 = vpop.f32.mrf.mxu1  ;;  %v4630_v37 = vpop.f32.mrf.mxu0  ;;  %v4134_v31 = vadd.f32 %v9289_v15, %v10330_v40 }
 0x3c9   : > { %4830 = vst.msk [vmem:[%s8710_s6 + $0x358] sm:$0xff] %vm4722_vm8, %v4639_v3  ;;  %v4631_v47 = vadd.f32 %v4630_v37, %v4086_v45  ;;  %v4139_v29 = vadd.f32 %v4138_v63, %v10327_v22  ;;  %v10331_v3 = vld [vmem:[#allocation76_spill] sm:$0xff] }
 0x3ca   : > { %v4140_v58 = vpop.f32.mrf.mxu1  ;;  %v5292_v41 = vpop.f32.mrf.mxu0 }
 0x3cb   : > { %4828 = vst.msk [vmem:[%s8710_s6 + $0x348] sm:$0xff] %vm4722_vm8, %v4631_v47  ;;  %v4652_v19 = vadd.f32 %v5292_v41, %v4107_v49  ;;  %v10332_v47 = vld [vmem:[#allocation115_spill] sm:$0xff] }
 0x3cc   : > { %v4141_v61 = vpop.f32.mrf.mxu1  ;;  %v4643_v53 = vpop.f32.mrf.mxu0 }
 0x3cd   : > { %4833 = vst.msk [vmem:[%s8710_s6 + $0x370] sm:$0xff] %vm4722_vm8, %v4652_v19  ;;  %v4644_v2 = vadd.f32 %v4643_v53, %v4099_v35  ;;  %v4142_v26 = vadd.f32 %v4141_v61, %v10329_v28  ;;  %v10333_v35 = vld [vmem:[#allocation120_spill] sm:$0xff] }
 0x3ce   : > { %v4143_v34 = vpop.f32.mrf.mxu1  ;;  %v5293_v48 = vpop.f32.mrf.mxu0 }
 0x3cf   : > { %4831 = vst.msk [vmem:[%s8710_s6 + $0x360] sm:$0xff] %vm4722_vm8, %v4644_v2  ;;  %v4655_v62 = vadd.f32 %v5293_v48, %v4110_v16  ;;  %v10334_v16 = vld [vmem:[#allocation118_spill] sm:$0xff] }
 0x3d0   : > { %v4146_v44 = vpop.f32.mrf.mxu1  ;;  %v4646_v9 = vpop.f32.mrf.mxu0 }
 0x3d1   : > { %4834 = vst.msk [vmem:[%s8710_s6 + $0x378] sm:$0xff] %vm4722_vm8, %v4655_v62  ;;  %v4647_v46 = vadd.f32 %v4646_v9, %v4102_v7  ;;  %v4147_v58 = vadd.f32 %v4146_v44, %v10332_v47 }
 0x3d2   : > { %v4148_v55 = vpop.f32.mrf.mxu1  ;;  %v5296_v39 = vpop.f32.mrf.mxu0 }
 0x3d3   : > { %4832 = vst.msk [vmem:[%s8710_s6 + $0x368] sm:$0xff] %vm4722_vm8, %v4647_v46  ;;  %v4668_v33 = vadd.f32 %v5296_v39, %v4123_v30  ;;  %v10336_v30 = vld [vmem:[#allocation121_spill] sm:$0xff] }
 0x3d4   : > { %v4149_v24 = vpop.f32.mrf.mxu1  ;;  %v4659_v54 = vpop.f32.mrf.mxu0 }
 0x3d5   : > { %4837 = vst.msk [vmem:[%s8710_s6 + $0x390] sm:$0xff] %vm4722_vm8, %v4668_v33  ;;  %v4660_v0 = vadd.f32 %v4659_v54, %v4115_v14  ;;  %v4150_v2 = vadd.f32 %v4149_v24, %v10334_v16 }
 0x3d6   : > { %v4151_v4 = vpop.f32.mrf.mxu1  ;;  %v5297_v57 = vpop.f32.mrf.mxu0 }
 0x3d7   : > { %4835 = vst.msk [vmem:[%s8710_s6 + $0x380] sm:$0xff] %vm4722_vm8, %v4660_v0  ;;  %v4671_v43 = vadd.f32 %v5297_v57, %v4126_v59  ;;  %v10338_v59 = vld [vmem:[#allocation123_spill] sm:$0xff] }
 0x3d8   : > { %v4154_v25 = vpop.f32.mrf.mxu1  ;;  %v4662_v5 = vpop.f32.mrf.mxu0 }
 0x3d9   : > { %4838 = vst.msk [vmem:[%s8710_s6 + $0x398] sm:$0xff] %vm4722_vm8, %v4671_v43  ;;  %v4663_v52 = vadd.f32 %v4662_v5, %v4118_v10  ;;  %v4155_v63 = vadd.f32 %v4154_v25, %v10331_v3 }
 0x3da   : > { %v4156_v18 = vpop.f32.mrf.mxu1  ;;  %v5300_v8 = vpop.f32.mrf.mxu0 }
 0x3db   : > { %4836 = vst.msk [vmem:[%s8710_s6 + $0x388] sm:$0xff] %vm4722_vm8, %v4663_v52  ;;  %v4684_v17 = vadd.f32 %v5300_v8, %v4139_v29 }
 0x3dc   : > { %v4157_v27 = vpop.f32.mrf.mxu1  ;;  %v4675_v13 = vpop.f32.mrf.mxu0 }
 0x3dd   : > { %4841 = vst.msk [vmem:[%s8710_s6 + $0x3b0] sm:$0xff] %vm4722_vm8, %v4684_v17  ;;  %v4676_v21 = vadd.f32 %v4675_v13, %v4131_v56  ;;  %v4158_v19 = vadd.f32 %v4157_v27, %v10333_v35 }
 0x3de   : > { %v4159_v50 = vpop.f32.mrf.mxu1  ;;  %v5301_v51 = vpop.f32.mrf.mxu0 }
 0x3df   : > { %4839 = vst.msk [vmem:[%s8710_s6 + $0x3a0] sm:$0xff] %vm4722_vm8, %v4676_v21  ;;  %v4687_v36 = vadd.f32 %v5301_v51, %v4142_v26 }
 0x3e0   : > { %v4162_v1 = vpop.f32.mrf.mxu1  ;;  %v4678_v45 = vpop.f32.mrf.mxu0 }
 0x3e1   : > { %4842 = vst.msk [vmem:[%s8710_s6 + $0x3b8] sm:$0xff] %vm4722_vm8, %v4687_v36  ;;  %v4679_v37 = vadd.f32 %v4678_v45, %v4134_v31  ;;  %v4163_v46 = vadd.f32 %v4162_v1, %v10336_v30 }
 0x3e2   : > { %v4164_v32 = vpop.f32.mrf.mxu1  ;;  %v5304_v49 = vpop.f32.mrf.mxu0 }
 0x3e3   : > { %4840 = vst.msk [vmem:[%s8710_s6 + $0x3a8] sm:$0xff] %vm4722_vm8, %v4679_v37  ;;  %v4700_v15 = vadd.f32 %v5304_v49, %v4155_v63 }
 0x3e4   : > { %v4165_v41 = vpop.f32.mrf.mxu1  ;;  %v4691_v42 = vpop.f32.mrf.mxu0 }
 0x3e5   : > { %4845 = vst.msk [vmem:[%s8710_s6 + $0x3d0] sm:$0xff] %vm4722_vm8, %v4700_v15  ;;  %v4692_v61 = vadd.f32 %v4691_v42, %v4147_v58  ;;  %v4166_v0 = vadd.f32 %v4165_v41, %v10338_v59 }
 0x3e6   : > { %v4167_v53 = vpop.f32.mrf.mxu1  ;;  %v5305_v11 = vpop.f32.mrf.mxu0 }
 0x3e7   : > { %4843 = vst.msk [vmem:[%s8710_s6 + $0x3c0] sm:$0xff] %vm4722_vm8, %v4692_v61  ;;  %v4703_v34 = vadd.f32 %v5305_v11, %v4158_v19 }
 0x3e8   : > { %v4170_v48 = vpop.f32.mrf.mxu1  ;;  %v4694_v62 = vpop.f32.mrf.mxu0 }
 0x3e9   : > { %v4171_v7 = vadd.f32 %v4170_v48, %v10335_v23  ;;  %4846 = vst.msk [vmem:[%s8710_s6 + $0x3d8] sm:$0xff] %vm4722_vm8, %v4703_v34  ;;  %v4695_v44 = vadd.f32 %v4694_v62, %v4150_v2 }
 0x3ea   : > { %v4172_v9 = vpop.f32.mrf.mxu1  ;;  %v5308_v20 = vpop.f32.mrf.mxu0 }
 0x3eb   : > { %4844 = vst.msk [vmem:[%s8710_s6 + $0x3c8] sm:$0xff] %vm4722_vm8, %v4695_v44  ;;  %v4716_v55 = vadd.f32 %v5308_v20, %v4171_v7 }
 0x3ec   : > { %v4173_v39 = vpop.f32.mrf.mxu1  ;;  %v4707_v33 = vpop.f32.mrf.mxu0 }
 0x3ed   : > { %v4174_v14 = vadd.f32 %v4173_v39, %v10337_v38  ;;  %4849 = vst.msk [vmem:[%s8710_s6 + $0x3f0] sm:$0xff] %vm4722_vm8, %v4716_v55  ;;  %v4708_v24 = vadd.f32 %v4707_v33, %v4163_v46 }
 0x3ee   : > { %v4175_v54 = vpop.f32.mrf.mxu1  ;;  %v5309_v6 = vpop.f32.mrf.mxu0 }
 0x3ef   : > { %4847 = vst.msk [vmem:[%s8710_s6 + $0x3e0] sm:$0xff] %vm4722_vm8, %v4708_v24  ;;  %v4719_v4 = vadd.f32 %v5309_v6, %v4174_v14 }
 0x3f0   : > { %v4710_v57 = vpop.f32.mrf.mxu0 }
 0x3f1   : > { %4850 = vst.msk [vmem:[%s8710_s6 + $0x3f8] sm:$0xff] %vm4722_vm8, %v4719_v4  ;;  %v4711_v60 = vadd.f32 %v4710_v57, %v4166_v0 }
 0x3f3   : > { %4848 = vst.msk [vmem:[%s8710_s6 + $0x3e8] sm:$0xff] %vm4722_vm8, %v4711_v60 }
 0x3f4 PF: > { %p12_p9 = scmp.ge.s32.totalorder %s5659_s14, 4   ;;  %s10339_s9 = smov %s5607_s10 }
 0x3f5   : > { %s10340_s10 = smov %s5611_s11  ;;  %s10341_s11 = smov %s5669_s17 }
 0x3f6   : > { %s10342_s12 = smov %s5659_s14  ;;  %14 = sbr.rel (!%p12_p9) target bundleno = 3 (0x3), region = 68 }
 0x3fb   :  { %4872 = vsyncpa [#allocation3], 1 }
 0x3fc   :  { %4874 = vsyncpa [#allocation3 + $0x1], 1 }

</bundles_post_ra>
